<compile_context>
chip_gen: v7x
topology: tpu7x:2x2x1
jax: 0.10.0
libtpu: 0.0.40
codegen_flags: <defaults>
</compile_context>

<pallas_src>
import functools
import math

import jax
import jax.numpy as jnp
import numpy as np
from jax import lax
from jax.experimental import pallas as pl
from jax.experimental.pallas import tpu as pltpu


def _round_up(x, m):
    return (x + m - 1) // m * m


def _time_chunk(T, cap):
    """Largest divisor of T that is <= cap (so the grid tiles T exactly)."""
    cap = max(1, min(T, cap))
    for c in range(cap, 0, -1):
        if T % c == 0:
            return c
    return 1


def _pad_gate_cols(w, H, Hp):
    """Pad the gate axis (..., 4H) -> (..., 4Hp) keeping the (i,f,g,o) blocks
    aligned to Hp-lane boundaries.  Padded columns are zero."""
    if Hp == H:
        return w
    lead = w.shape[:-1]
    w4 = w.reshape(*lead, 4, H)
    pad = [(0, 0)] * (len(lead) + 1) + [(0, Hp - H)]
    return jnp.pad(w4, pad).reshape(*lead, 4 * Hp)


def _pad_rows(w, axis, H, Hp):
    """Zero-pad a hidden-sized input axis H -> Hp."""
    if Hp == H:
        return w
    pad = [(0, 0)] * w.ndim
    pad[axis] = (0, Hp - H)
    return jnp.pad(w, pad)


def _make_lstm_kernel(num_layers: int, chunk_len: int, Bp: int, Hp: int):
    L, Tc = num_layers, chunk_len

    def kernel(gx_ref, whh0_ref, wcat_ref, brest_ref,   # inputs
               hout_ref,                                # output
               xh_ref, h_ref, c_ref):                   # scratch
        # h/c persist across time-chunk grid iterations; zero them only once.
        @pl.when(pl.program_id(0) == 0)
        def _():
            h_ref[...] = jnp.zeros_like(h_ref)
            c_ref[...] = jnp.zeros_like(c_ref)

        # Small bias broadcasts hoisted out of the time loop (4 vregs/layer).
        # Weight loads are intentionally NOT hoisted (see header note on spills).
        bs = [jnp.broadcast_to(brest_ref[l], (Bp, 4 * Hp)) for l in range(L - 1)]

        def sigmoid(x):
            # tanh form: one EUP push per call instead of exp + reciprocal.
            return 0.5 * jnp.tanh(0.5 * x) + 0.5

        def cell(gates, c_prev):
            # Gate blocks are Hp(=multiple of 128)-lane aligned -> cheap slices.
            i_g = sigmoid(gates[:, 0 * Hp:1 * Hp])
            f_g = sigmoid(gates[:, 1 * Hp:2 * Hp])
            g_g = jnp.tanh(gates[:, 2 * Hp:3 * Hp])
            o_g = sigmoid(gates[:, 3 * Hp:4 * Hp])
            c_new = f_g * c_prev + i_g * g_g           # f32 cell state
            h_new = o_g * jnp.tanh(c_new)
            return h_new, c_new

        def step(t, carry):
            hs, cs = carry
            # Layer 0: x_t @ W_ih0 + b0 was precomputed (gx, bf16); only the
            # recurrent bf16 matmul sits on the serial critical path.
            gates0 = gx_ref[t].astype(jnp.float32) + jnp.dot(
                hs[0].astype(jnp.bfloat16), whh0_ref[...],
                preferred_element_type=jnp.float32)
            h_new, c_new = cell(gates0, cs[0])
            new_h, new_c = [h_new], [c_new]
            x_in = h_new
            for l in range(1, L):                       # static layer loop
                # Stage [x_in | h_prev] into the persistent bf16 slab (two
                # 128-lane-aligned stores) and feed the fused K=2Hp dot from it.
                xh_ref[:, :Hp] = x_in.astype(jnp.bfloat16)
                xh_ref[:, Hp:] = hs[l].astype(jnp.bfloat16)
                gates = jnp.dot(xh_ref[...], wcat_ref[l - 1],
                                preferred_element_type=jnp.float32) + bs[l - 1]
                h_l, c_l = cell(gates, cs[l])
                new_h.append(h_l)
                new_c.append(c_l)
                x_in = h_l
            return tuple(new_h), tuple(new_c)

        init = (tuple(h_ref[l] for l in range(L)),
                tuple(c_ref[l] for l in range(L)))
        # Bounded unroll: Tc steps per grid iteration (Tc <= time_chunk cap).
        hs, cs = lax.fori_loop(0, Tc, step, init, unroll=True)

        # Write the carried state back for the next time chunk.
        for l in range(L):
            h_ref[l] = hs[l]
            c_ref[l] = cs[l]
        hout_ref[...] = hs[L - 1]                       # lane-dense (Bp, Hp)

    return kernel


def lstm_forward(x, params, *, num_layers, hidden_size, time_chunk=8):
    """x: (B, T, input_size) f32 -> (B, output_size) f32 (== PyTorch pred[:, -1, :])."""
    B, T, I = x.shape
    H, L = hidden_size, num_layers
    Hp = _round_up(H, 128)           # 128-lane alignment per gate block
    Bp = _round_up(B, 8)             # fill f32 sublanes
    Lr = max(L - 1, 1)
    Tc = _time_chunk(T, time_chunk)  # grid chunk along time

    # ---- weight packing (cheap one-time XLA ops under jit) ------------------
    w_ih0_p = _pad_gate_cols(params["w_ih0"], H, Hp)                      # (I, 4Hp)
    w_hh_p = _pad_gate_cols(_pad_rows(params["w_hh"], 1, H, Hp), H, Hp)   # (L, Hp, 4Hp)
    b_p = _pad_gate_cols(params["b"], H, Hp)                              # (L, 1, 4Hp)

    if L > 1:
        w_ihr_p = _pad_gate_cols(
            _pad_rows(params["w_ih_rest"][:L - 1], 1, H, Hp), H, Hp)      # (L-1, Hp, 4Hp)
        w_cat = jnp.concatenate([w_ihr_p, w_hh_p[1:]], axis=1)            # (L-1, 2Hp, 4Hp)
        b_rest = b_p[1:]                                                  # (L-1, 1, 4Hp)
    else:
        w_cat = jnp.zeros((1, 2 * Hp, 4 * Hp), jnp.float32)               # dummy, unused
        b_rest = jnp.zeros((1, 1, 4 * Hp), jnp.float32)

    # bf16 MXU operands (f32 accumulation + f32 cell state inside the kernel).
    whh0_bf = w_hh_p[0].astype(jnp.bfloat16)                              # (Hp, 4Hp)
    w_cat_bf = w_cat.astype(jnp.bfloat16)                                 # (Lr, 2Hp, 4Hp)

    # ---- hoisted layer-0 input projection, batched over all T steps ---------
    x_p = jnp.pad(x, ((0, Bp - B), (0, 0), (0, 0)))                       # (Bp, T, I)
    x_tbi = jnp.transpose(x_p, (1, 0, 2))                                 # (T, Bp, I)
    gx = (jnp.einsum("tbi,ig->tbg", x_tbi, w_ih0_p,
                     preferred_element_type=jnp.float32)
          + b_p[0][None]).astype(jnp.bfloat16)                            # (T, Bp, 4Hp) bf16

    kernel = _make_lstm_kernel(L, Tc, Bp, Hp)
    h_last = pl.pallas_call(
        kernel,
        out_shape=jax.ShapeDtypeStruct((Bp, Hp), jnp.float32),
        grid=(T // Tc,),
        in_specs=[
            # Time-chunked, double-buffered gate projection stream.
            pl.BlockSpec((Tc, Bp, 4 * Hp), lambda i: (i, 0, 0)),
            # Weights / biases: whole-array, resident, single-buffered VMEM.
            pl.BlockSpec(memory_space=pltpu.MemorySpace.VMEM),   # W_hh layer 0 (bf16)
            pl.BlockSpec(memory_space=pltpu.MemorySpace.VMEM),   # fused [W_ih;W_hh] 1..L-1
            pl.BlockSpec(memory_space=pltpu.MemorySpace.VMEM),   # biases layers 1..L-1 (f32)
        ],
        out_specs=pl.BlockSpec((Bp, Hp), lambda i: (0, 0)),
        scratch_shapes=[
            pltpu.VMEM((Bp, 2 * Hp), jnp.bfloat16),   # [x | h] slab for fused dot
            pltpu.VMEM((L, Bp, Hp), jnp.float32),     # h state, persists across chunks
            pltpu.VMEM((L, Bp, Hp), jnp.float32),     # c state, persists across chunks
        ],
        compiler_params=pltpu.CompilerParams(
            dimension_semantics=("arbitrary",),        # time chunks are sequential
            vmem_limit_bytes=64 * 1024 * 1024),
    )(gx, whh0_bf, w_cat_bf, b_rest)

    # Final Linear on the last hidden state (tiny, O=4-wide) done in XLA so the
    # kernel's output stays a full 128-lane unmasked store.
    return h_last[:B, :H] @ params["w_lin"] + params["b_lin"]


def init_params(key, *, input_size, hidden_size, num_layers, output_size):
    """Deterministic init mirroring PyTorch's default U(-1/sqrt(H), 1/sqrt(H))."""
    H, I, L, O = hidden_size, input_size, num_layers, output_size
    Lr = max(L - 1, 1)
    stdv = 1.0 / np.sqrt(H)
    ks = jax.random.split(key, 8)

    def u(k, shape, bound):
        return jax.random.uniform(k, shape, jnp.float32, -bound, bound)

    w_ih0 = u(ks[0], (I, 4 * H), stdv)
    w_ih_rest = u(ks[1], (Lr, H, 4 * H), stdv)
    w_hh = u(ks[2], (L, H, 4 * H), stdv)
    # PyTorch has b_ih + b_hh; fold into one bias per layer, kept 2D for TPU.
    b = u(ks[3], (L, 1, 4 * H), stdv) + u(ks[4], (L, 1, 4 * H), stdv)
    lin_bound = 1.0 / np.sqrt(H)
    w_lin = u(ks[5], (H, O), lin_bound)
    b_lin = u(ks[6], (1, O), lin_bound)
    return dict(w_ih0=w_ih0, w_ih_rest=w_ih_rest, w_hh=w_hh, b=b,
                w_lin=w_lin, b_lin=b_lin)


def lstm_reference(x, params, *, num_layers, hidden_size):
    """Pure-JAX f32 reference of the PyTorch module's forward pass."""
    B, T, I = x.shape
    H = hidden_size
    L = num_layers
    h0 = jnp.zeros((L, B, H), jnp.float32)
    c0 = jnp.zeros((L, B, H), jnp.float32)

    def step(carry, x_t):
        h, c = carry
        x_in = x_t
        hs, cs = [], []
        for l in range(L):
            w_ih = params["w_ih0"] if l == 0 else params["w_ih_rest"][l - 1]
            gates = x_in @ w_ih + h[l] @ params["w_hh"][l] + params["b"][l]
            i_g = jax.nn.sigmoid(gates[:, :H])
            f_g = jax.nn.sigmoid(gates[:, H:2 * H])
            g_g = jnp.tanh(gates[:, 2 * H:3 * H])
            o_g = jax.nn.sigmoid(gates[:, 3 * H:])
            c_new = f_g * c[l] + i_g * g_g
            h_new = o_g * jnp.tanh(c_new)
            hs.append(h_new)
            cs.append(c_new)
            x_in = h_new
        return (jnp.stack(hs), jnp.stack(cs)), x_in

    (_, _), outs = jax.lax.scan(step, (h0, c0), jnp.transpose(x, (1, 0, 2)))
    last = outs[-1]                                          # (B, H) == output[:, -1, :]
    return last @ params["w_lin"] + params["b_lin"]


if __name__ == "__main__":
    input_size, hidden_size, num_layers, output_size = 8, 32, 2, 4
    batch_size, seq_len = 2, 8

    key = jax.random.PRNGKey(0)
    k_param, k_x = jax.random.split(key)
    params = init_params(k_param, input_size=input_size, hidden_size=hidden_size,
                         num_layers=num_layers, output_size=output_size)
    x = jax.random.normal(k_x, (batch_size, seq_len, input_size), jnp.float32)

    fwd = jax.jit(functools.partial(lstm_forward, num_layers=num_layers,
                                    hidden_size=hidden_size))
    pred = jax.block_until_ready(fwd(x, params))

    ref = lstm_reference(x, params, num_layers=num_layers, hidden_size=hidden_size)
    # bf16 MXU operands -> recurrent rounding compounds over T; f32 cell state keeps
    # it small.  Tolerance loosened accordingly (per the perf-review correctness note).
    np.testing.assert_allclose(np.asarray(pred), np.asarray(ref),
                               rtol=2e-2, atol=2e-2)
    assert pred.shape == (batch_size, output_size)
    print("KERNEL_OK")
</pallas_src>

<mosaic_0001>
module attributes {stable_mosaic.version = 11 : i64} {
  func.func @kernel(%arg0: i32, %arg1: memref<8x8x512xbf16, #tpu.memory_space<vmem>>, %arg2: memref<128x512xbf16, #tpu.memory_space<vmem>>, %arg3: memref<1x256x512xbf16, #tpu.memory_space<vmem>>, %arg4: memref<1x1x512xf32, #tpu.memory_space<vmem>>, %arg5: memref<8x128xf32, #tpu.memory_space<vmem>>, %arg6: memref<8x256xbf16, #tpu.memory_space<vmem>>, %arg7: memref<2x8x128xf32, #tpu.memory_space<vmem>>, %arg8: memref<2x8x128xf32, #tpu.memory_space<vmem>>) attributes {dimension_semantics = [#tpu.dimension_semantics<arbitrary>], iteration_bounds = array<i64: 1>, scalar_prefetch = 0 : i64, scratch_operands = 3 : i64, tpu.core_type = #tpu.core_type<tc>, window_params = [{transform_indices = @transform_0, window_bounds = array<i64: 8, 8, 512>}, {pipeline_mode = #tpu.pipeline_mode<synchronous>, transform_indices = @transform_1, window_bounds = array<i64: 128, 512>}, {pipeline_mode = #tpu.pipeline_mode<synchronous>, transform_indices = @transform_2, window_bounds = array<i64: 1, 256, 512>}, {pipeline_mode = #tpu.pipeline_mode<synchronous>, transform_indices = @transform_3, window_bounds = array<i64: 1, 1, 512>}, {pipeline_mode = #tpu.pipeline_mode<synchronous>, transform_indices = @transform_4, window_bounds = array<i64: 8, 128>}]} {
    %c0_i32 = arith.constant 0 : i32
    %0 = arith.cmpi eq, %arg0, %c0_i32 : i32
    %1 = arith.extui %0 : i1 to i32
    %c0_i32_0 = arith.constant 0 : i32
    %2 = arith.cmpi ne, %1, %c0_i32_0 : i32
    scf.if %2 {
      %cst_291 = arith.constant 0.000000e+00 : f32
      %660 = vector.broadcast %cst_291 : f32 to vector<2x8x128xf32>
      %c0_292 = arith.constant 0 : index
      %c0_293 = arith.constant 0 : index
      %c0_294 = arith.constant 0 : index
      %661 = vector.load %arg7[%c0_292, %c0_293, %c0_294] : memref<2x8x128xf32, #tpu.memory_space<vmem>>, vector<2x8x128xf32>
      tpu.vector_store %arg7[%c0_292, %c0_293, %c0_294], %660 {strides = array<i32>} : memref<2x8x128xf32, #tpu.memory_space<vmem>>, vector<2x8x128xf32>,
      %cst_295 = arith.constant 0.000000e+00 : f32
      %662 = vector.broadcast %cst_295 : f32 to vector<2x8x128xf32>
      %c0_296 = arith.constant 0 : index
      %c0_297 = arith.constant 0 : index
      %c0_298 = arith.constant 0 : index
      %663 = vector.load %arg8[%c0_296, %c0_297, %c0_298] : memref<2x8x128xf32, #tpu.memory_space<vmem>>, vector<2x8x128xf32>
      tpu.vector_store %arg8[%c0_296, %c0_297, %c0_298], %662 {strides = array<i32>} : memref<2x8x128xf32, #tpu.memory_space<vmem>>, vector<2x8x128xf32>,
    } else {
    }
    %c0 = arith.constant 0 : index
    %c0_1 = arith.constant 0 : index
    %c0_2 = arith.constant 0 : index
    %3 = vector.load %arg4[%c0, %c0_1, %c0_2] : memref<1x1x512xf32, #tpu.memory_space<vmem>>, vector<1x1x512xf32>
    %4 = vector.shape_cast %3 : vector<1x1x512xf32> to vector<1x512xf32>
    %5 = vector.shape_cast %4 : vector<1x512xf32> to vector<1x512xf32>
    %6 = vector.broadcast %5 : vector<1x512xf32> to vector<8x512xf32>
    %c0_3 = arith.constant 0 : index
    %c0_4 = arith.constant 0 : index
    %c0_5 = arith.constant 0 : index
    %7 = vector.load %arg7[%c0_3, %c0_4, %c0_5] : memref<2x8x128xf32, #tpu.memory_space<vmem>>, vector<1x8x128xf32>
    %8 = vector.shape_cast %7 : vector<1x8x128xf32> to vector<8x128xf32>
    %c1 = arith.constant 1 : index
    %c0_6 = arith.constant 0 : index
    %c0_7 = arith.constant 0 : index
    %9 = vector.load %arg7[%c1, %c0_6, %c0_7] : memref<2x8x128xf32, #tpu.memory_space<vmem>>, vector<1x8x128xf32>
    %10 = vector.shape_cast %9 : vector<1x8x128xf32> to vector<8x128xf32>
    %c0_8 = arith.constant 0 : index
    %c0_9 = arith.constant 0 : index
    %c0_10 = arith.constant 0 : index
    %11 = vector.load %arg8[%c0_8, %c0_9, %c0_10] : memref<2x8x128xf32, #tpu.memory_space<vmem>>, vector<1x8x128xf32>
    %12 = vector.shape_cast %11 : vector<1x8x128xf32> to vector<8x128xf32>
    %c1_11 = arith.constant 1 : index
    %c0_12 = arith.constant 0 : index
    %c0_13 = arith.constant 0 : index
    %13 = vector.load %arg8[%c1_11, %c0_12, %c0_13] : memref<2x8x128xf32, #tpu.memory_space<vmem>>, vector<1x8x128xf32>
    %14 = vector.shape_cast %13 : vector<1x8x128xf32> to vector<8x128xf32>
    %c0_i32_14 = arith.constant 0 : i32
    %15 = arith.index_cast %c0_i32_14 : i32 to index
    %c0_15 = arith.constant 0 : index
    %c0_16 = arith.constant 0 : index
    %16 = vector.load %arg1[%15, %c0_15, %c0_16] : memref<8x8x512xbf16, #tpu.memory_space<vmem>>, vector<1x8x512xbf16>
    %17 = vector.shape_cast %16 : vector<1x8x512xbf16> to vector<8x512xbf16>
    %18 = arith.extf %17 : vector<8x512xbf16> to vector<8x512xf32>
    %19 = arith.truncf %8 : vector<8x128xf32> to vector<8x128xbf16>
    %c0_17 = arith.constant 0 : index
    %c0_18 = arith.constant 0 : index
    %20 = vector.load %arg2[%c0_17, %c0_18] : memref<128x512xbf16, #tpu.memory_space<vmem>>, vector<128x512xbf16>
    %cst = arith.constant dense<0.000000e+00> : vector<8x512xf32>
    %21 = tpu.matmul %19, %20, %cst {dimension_numbers = #tpu.dot_dimension_numbers<[1], [0], [0], [1], [0, 0, 1, 1], [], []>} : vector<8x128xbf16>, vector<128x512xbf16>, vector<8x512xf32> -> vector<8x512xf32>
    %22 = arith.addf %18, %21 : vector<8x512xf32>
    %23 = vector.extract_strided_slice %22 {offsets = [0, 0], sizes = [8, 128], strides = [1, 1]} : vector<8x512xf32> to vector<8x128xf32>
    %cst_19 = arith.constant 5.000000e-01 : f32
    %24 = vector.broadcast %cst_19 : f32 to vector<8x128xf32>
    %25 = arith.mulf %24, %23 : vector<8x128xf32>
    %26 = math.tanh %25 : vector<8x128xf32>
    %cst_20 = arith.constant 5.000000e-01 : f32
    %27 = vector.broadcast %cst_20 : f32 to vector<8x128xf32>
    %28 = arith.mulf %27, %26 : vector<8x128xf32>
    %cst_21 = arith.constant 5.000000e-01 : f32
    %29 = vector.broadcast %cst_21 : f32 to vector<8x128xf32>
    %30 = arith.addf %28, %29 : vector<8x128xf32>
    %31 = vector.extract_strided_slice %22 {offsets = [0, 128], sizes = [8, 128], strides = [1, 1]} : vector<8x512xf32> to vector<8x128xf32>
    %cst_22 = arith.constant 5.000000e-01 : f32
    %32 = vector.broadcast %cst_22 : f32 to vector<8x128xf32>
    %33 = arith.mulf %32, %31 : vector<8x128xf32>
    %34 = math.tanh %33 : vector<8x128xf32>
    %cst_23 = arith.constant 5.000000e-01 : f32
    %35 = vector.broadcast %cst_23 : f32 to vector<8x128xf32>
    %36 = arith.mulf %35, %34 : vector<8x128xf32>
    %cst_24 = arith.constant 5.000000e-01 : f32
    %37 = vector.broadcast %cst_24 : f32 to vector<8x128xf32>
    %38 = arith.addf %36, %37 : vector<8x128xf32>
    %39 = vector.extract_strided_slice %22 {offsets = [0, 256], sizes = [8, 128], strides = [1, 1]} : vector<8x512xf32> to vector<8x128xf32>
    %40 = math.tanh %39 : vector<8x128xf32>
    %41 = vector.extract_strided_slice %22 {offsets = [0, 384], sizes = [8, 128], strides = [1, 1]} : vector<8x512xf32> to vector<8x128xf32>
    %cst_25 = arith.constant 5.000000e-01 : f32
    %42 = vector.broadcast %cst_25 : f32 to vector<8x128xf32>
    %43 = arith.mulf %42, %41 : vector<8x128xf32>
    %44 = math.tanh %43 : vector<8x128xf32>
    %cst_26 = arith.constant 5.000000e-01 : f32
    %45 = vector.broadcast %cst_26 : f32 to vector<8x128xf32>
    %46 = arith.mulf %45, %44 : vector<8x128xf32>
    %cst_27 = arith.constant 5.000000e-01 : f32
    %47 = vector.broadcast %cst_27 : f32 to vector<8x128xf32>
    %48 = arith.addf %46, %47 : vector<8x128xf32>
    %49 = arith.mulf %38, %12 : vector<8x128xf32>
    %50 = arith.mulf %30, %40 : vector<8x128xf32>
    %51 = arith.addf %49, %50 : vector<8x128xf32>
    %52 = math.tanh %51 : vector<8x128xf32>
    %53 = arith.mulf %48, %52 : vector<8x128xf32>
    %54 = arith.truncf %53 : vector<8x128xf32> to vector<8x128xbf16>
    %c0_28 = arith.constant 0 : index
    %c0_29 = arith.constant 0 : index
    %55 = vector.load %arg6[%c0_28, %c0_29] : memref<8x256xbf16, #tpu.memory_space<vmem>>, vector<8x128xbf16>
    tpu.vector_store %arg6[%c0_28, %c0_29], %54 {strides = array<i32>} : memref<8x256xbf16, #tpu.memory_space<vmem>>, vector<8x128xbf16>,
    %56 = arith.truncf %10 : vector<8x128xf32> to vector<8x128xbf16>
    %c0_30 = arith.constant 0 : index
    %c128 = arith.constant 128 : index
    %57 = vector.load %arg6[%c0_30, %c128] : memref<8x256xbf16, #tpu.memory_space<vmem>>, vector<8x128xbf16>
    tpu.vector_store %arg6[%c0_30, %c128], %56 {strides = array<i32>} : memref<8x256xbf16, #tpu.memory_space<vmem>>, vector<8x128xbf16>,
    %c0_31 = arith.constant 0 : index
    %c0_32 = arith.constant 0 : index
    %58 = vector.load %arg6[%c0_31, %c0_32] : memref<8x256xbf16, #tpu.memory_space<vmem>>, vector<8x256xbf16>
    %c0_33 = arith.constant 0 : index
    %c0_34 = arith.constant 0 : index
    %c0_35 = arith.constant 0 : index
    %59 = vector.load %arg3[%c0_33, %c0_34, %c0_35] : memref<1x256x512xbf16, #tpu.memory_space<vmem>>, vector<1x256x512xbf16>
    %60 = vector.shape_cast %59 : vector<1x256x512xbf16> to vector<256x512xbf16>
    %cst_36 = arith.constant dense<0.000000e+00> : vector<8x512xf32>
    %61 = tpu.matmul %58, %60, %cst_36 {dimension_numbers = #tpu.dot_dimension_numbers<[1], [0], [0], [1], [0, 0, 1, 1], [], []>} : vector<8x256xbf16>, vector<256x512xbf16>, vector<8x512xf32> -> vector<8x512xf32>
    %62 = arith.addf %61, %6 : vector<8x512xf32>
    %63 = vector.extract_strided_slice %62 {offsets = [0, 0], sizes = [8, 128], strides = [1, 1]} : vector<8x512xf32> to vector<8x128xf32>
    %cst_37 = arith.constant 5.000000e-01 : f32
    %64 = vector.broadcast %cst_37 : f32 to vector<8x128xf32>
    %65 = arith.mulf %64, %63 : vector<8x128xf32>
    %66 = math.tanh %65 : vector<8x128xf32>
    %cst_38 = arith.constant 5.000000e-01 : f32
    %67 = vector.broadcast %cst_38 : f32 to vector<8x128xf32>
    %68 = arith.mulf %67, %66 : vector<8x128xf32>
    %cst_39 = arith.constant 5.000000e-01 : f32
    %69 = vector.broadcast %cst_39 : f32 to vector<8x128xf32>
    %70 = arith.addf %68, %69 : vector<8x128xf32>
    %71 = vector.extract_strided_slice %62 {offsets = [0, 128], sizes = [8, 128], strides = [1, 1]} : vector<8x512xf32> to vector<8x128xf32>
    %cst_40 = arith.constant 5.000000e-01 : f32
    %72 = vector.broadcast %cst_40 : f32 to vector<8x128xf32>
    %73 = arith.mulf %72, %71 : vector<8x128xf32>
    %74 = math.tanh %73 : vector<8x128xf32>
    %cst_41 = arith.constant 5.000000e-01 : f32
    %75 = vector.broadcast %cst_41 : f32 to vector<8x128xf32>
    %76 = arith.mulf %75, %74 : vector<8x128xf32>
    %cst_42 = arith.constant 5.000000e-01 : f32
    %77 = vector.broadcast %cst_42 : f32 to vector<8x128xf32>
    %78 = arith.addf %76, %77 : vector<8x128xf32>
    %79 = vector.extract_strided_slice %62 {offsets = [0, 256], sizes = [8, 128], strides = [1, 1]} : vector<8x512xf32> to vector<8x128xf32>
    %80 = math.tanh %79 : vector<8x128xf32>
    %81 = vector.extract_strided_slice %62 {offsets = [0, 384], sizes = [8, 128], strides = [1, 1]} : vector<8x512xf32> to vector<8x128xf32>
    %cst_43 = arith.constant 5.000000e-01 : f32
    %82 = vector.broadcast %cst_43 : f32 to vector<8x128xf32>
    %83 = arith.mulf %82, %81 : vector<8x128xf32>
    %84 = math.tanh %83 : vector<8x128xf32>
    %cst_44 = arith.constant 5.000000e-01 : f32
    %85 = vector.broadcast %cst_44 : f32 to vector<8x128xf32>
    %86 = arith.mulf %85, %84 : vector<8x128xf32>
    %cst_45 = arith.constant 5.000000e-01 : f32
    %87 = vector.broadcast %cst_45 : f32 to vector<8x128xf32>
    %88 = arith.addf %86, %87 : vector<8x128xf32>
    %89 = arith.mulf %78, %14 : vector<8x128xf32>
    %90 = arith.mulf %70, %80 : vector<8x128xf32>
    %91 = arith.addf %89, %90 : vector<8x128xf32>
    %92 = math.tanh %91 : vector<8x128xf32>
    %93 = arith.mulf %88, %92 : vector<8x128xf32>
    %c1_i32 = arith.constant 1 : i32
    %94 = arith.index_cast %c1_i32 : i32 to index
    %c0_46 = arith.constant 0 : index
    %c0_47 = arith.constant 0 : index
    %95 = vector.load %arg1[%94, %c0_46, %c0_47] : memref<8x8x512xbf16, #tpu.memory_space<vmem>>, vector<1x8x512xbf16>
    %96 = vector.shape_cast %95 : vector<1x8x512xbf16> to vector<8x512xbf16>
    %97 = arith.extf %96 : vector<8x512xbf16> to vector<8x512xf32>
    %98 = arith.truncf %53 : vector<8x128xf32> to vector<8x128xbf16>
    %c0_48 = arith.constant 0 : index
    %c0_49 = arith.constant 0 : index
    %99 = vector.load %arg2[%c0_48, %c0_49] : memref<128x512xbf16, #tpu.memory_space<vmem>>, vector<128x512xbf16>
    %cst_50 = arith.constant dense<0.000000e+00> : vector<8x512xf32>
    %100 = tpu.matmul %98, %99, %cst_50 {dimension_numbers = #tpu.dot_dimension_numbers<[1], [0], [0], [1], [0, 0, 1, 1], [], []>} : vector<8x128xbf16>, vector<128x512xbf16>, vector<8x512xf32> -> vector<8x512xf32>
    %101 = arith.addf %97, %100 : vector<8x512xf32>
    %102 = vector.extract_strided_slice %101 {offsets = [0, 0], sizes = [8, 128], strides = [1, 1]} : vector<8x512xf32> to vector<8x128xf32>
    %cst_51 = arith.constant 5.000000e-01 : f32
    %103 = vector.broadcast %cst_51 : f32 to vector<8x128xf32>
    %104 = arith.mulf %103, %102 : vector<8x128xf32>
    %105 = math.tanh %104 : vector<8x128xf32>
    %cst_52 = arith.constant 5.000000e-01 : f32
    %106 = vector.broadcast %cst_52 : f32 to vector<8x128xf32>
    %107 = arith.mulf %106, %105 : vector<8x128xf32>
    %cst_53 = arith.constant 5.000000e-01 : f32
    %108 = vector.broadcast %cst_53 : f32 to vector<8x128xf32>
    %109 = arith.addf %107, %108 : vector<8x128xf32>
    %110 = vector.extract_strided_slice %101 {offsets = [0, 128], sizes = [8, 128], strides = [1, 1]} : vector<8x512xf32> to vector<8x128xf32>
    %cst_54 = arith.constant 5.000000e-01 : f32
    %111 = vector.broadcast %cst_54 : f32 to vector<8x128xf32>
    %112 = arith.mulf %111, %110 : vector<8x128xf32>
    %113 = math.tanh %112 : vector<8x128xf32>
    %cst_55 = arith.constant 5.000000e-01 : f32
    %114 = vector.broadcast %cst_55 : f32 to vector<8x128xf32>
    %115 = arith.mulf %114, %113 : vector<8x128xf32>
    %cst_56 = arith.constant 5.000000e-01 : f32
    %116 = vector.broadcast %cst_56 : f32 to vector<8x128xf32>
    %117 = arith.addf %115, %116 : vector<8x128xf32>
    %118 = vector.extract_strided_slice %101 {offsets = [0, 256], sizes = [8, 128], strides = [1, 1]} : vector<8x512xf32> to vector<8x128xf32>
    %119 = math.tanh %118 : vector<8x128xf32>
    %120 = vector.extract_strided_slice %101 {offsets = [0, 384], sizes = [8, 128], strides = [1, 1]} : vector<8x512xf32> to vector<8x128xf32>
    %cst_57 = arith.constant 5.000000e-01 : f32
    %121 = vector.broadcast %cst_57 : f32 to vector<8x128xf32>
    %122 = arith.mulf %121, %120 : vector<8x128xf32>
    %123 = math.tanh %122 : vector<8x128xf32>
    %cst_58 = arith.constant 5.000000e-01 : f32
    %124 = vector.broadcast %cst_58 : f32 to vector<8x128xf32>
    %125 = arith.mulf %124, %123 : vector<8x128xf32>
    %cst_59 = arith.constant 5.000000e-01 : f32
    %126 = vector.broadcast %cst_59 : f32 to vector<8x128xf32>
    %127 = arith.addf %125, %126 : vector<8x128xf32>
    %128 = arith.mulf %117, %51 : vector<8x128xf32>
    %129 = arith.mulf %109, %119 : vector<8x128xf32>
    %130 = arith.addf %128, %129 : vector<8x128xf32>
    %131 = math.tanh %130 : vector<8x128xf32>
    %132 = arith.mulf %127, %131 : vector<8x128xf32>
    %133 = arith.truncf %132 : vector<8x128xf32> to vector<8x128xbf16>
    %c0_60 = arith.constant 0 : index
    %c0_61 = arith.constant 0 : index
    %134 = vector.load %arg6[%c0_60, %c0_61] : memref<8x256xbf16, #tpu.memory_space<vmem>>, vector<8x128xbf16>
    tpu.vector_store %arg6[%c0_60, %c0_61], %133 {strides = array<i32>} : memref<8x256xbf16, #tpu.memory_space<vmem>>, vector<8x128xbf16>,
    %135 = arith.truncf %93 : vector<8x128xf32> to vector<8x128xbf16>
    %c0_62 = arith.constant 0 : index
    %c128_63 = arith.constant 128 : index
    %136 = vector.load %arg6[%c0_62, %c128_63] : memref<8x256xbf16, #tpu.memory_space<vmem>>, vector<8x128xbf16>
    tpu.vector_store %arg6[%c0_62, %c128_63], %135 {strides = array<i32>} : memref<8x256xbf16, #tpu.memory_space<vmem>>, vector<8x128xbf16>,
    %c0_64 = arith.constant 0 : index
    %c0_65 = arith.constant 0 : index
    %137 = vector.load %arg6[%c0_64, %c0_65] : memref<8x256xbf16, #tpu.memory_space<vmem>>, vector<8x256xbf16>
    %c0_66 = arith.constant 0 : index
    %c0_67 = arith.constant 0 : index
    %c0_68 = arith.constant 0 : index
    %138 = vector.load %arg3[%c0_66, %c0_67, %c0_68] : memref<1x256x512xbf16, #tpu.memory_space<vmem>>, vector<1x256x512xbf16>
    %139 = vector.shape_cast %138 : vector<1x256x512xbf16> to vector<256x512xbf16>
    %cst_69 = arith.constant dense<0.000000e+00> : vector<8x512xf32>
    %140 = tpu.matmul %137, %139, %cst_69 {dimension_numbers = #tpu.dot_dimension_numbers<[1], [0], [0], [1], [0, 0, 1, 1], [], []>} : vector<8x256xbf16>, vector<256x512xbf16>, vector<8x512xf32> -> vector<8x512xf32>
    %141 = arith.addf %140, %6 : vector<8x512xf32>
    %142 = vector.extract_strided_slice %141 {offsets = [0, 0], sizes = [8, 128], strides = [1, 1]} : vector<8x512xf32> to vector<8x128xf32>
    %cst_70 = arith.constant 5.000000e-01 : f32
    %143 = vector.broadcast %cst_70 : f32 to vector<8x128xf32>
    %144 = arith.mulf %143, %142 : vector<8x128xf32>
    %145 = math.tanh %144 : vector<8x128xf32>
    %cst_71 = arith.constant 5.000000e-01 : f32
    %146 = vector.broadcast %cst_71 : f32 to vector<8x128xf32>
    %147 = arith.mulf %146, %145 : vector<8x128xf32>
    %cst_72 = arith.constant 5.000000e-01 : f32
    %148 = vector.broadcast %cst_72 : f32 to vector<8x128xf32>
    %149 = arith.addf %147, %148 : vector<8x128xf32>
    %150 = vector.extract_strided_slice %141 {offsets = [0, 128], sizes = [8, 128], strides = [1, 1]} : vector<8x512xf32> to vector<8x128xf32>
    %cst_73 = arith.constant 5.000000e-01 : f32
    %151 = vector.broadcast %cst_73 : f32 to vector<8x128xf32>
    %152 = arith.mulf %151, %150 : vector<8x128xf32>
    %153 = math.tanh %152 : vector<8x128xf32>
    %cst_74 = arith.constant 5.000000e-01 : f32
    %154 = vector.broadcast %cst_74 : f32 to vector<8x128xf32>
    %155 = arith.mulf %154, %153 : vector<8x128xf32>
    %cst_75 = arith.constant 5.000000e-01 : f32
    %156 = vector.broadcast %cst_75 : f32 to vector<8x128xf32>
    %157 = arith.addf %155, %156 : vector<8x128xf32>
    %158 = vector.extract_strided_slice %141 {offsets = [0, 256], sizes = [8, 128], strides = [1, 1]} : vector<8x512xf32> to vector<8x128xf32>
    %159 = math.tanh %158 : vector<8x128xf32>
    %160 = vector.extract_strided_slice %141 {offsets = [0, 384], sizes = [8, 128], strides = [1, 1]} : vector<8x512xf32> to vector<8x128xf32>
    %cst_76 = arith.constant 5.000000e-01 : f32
    %161 = vector.broadcast %cst_76 : f32 to vector<8x128xf32>
    %162 = arith.mulf %161, %160 : vector<8x128xf32>
    %163 = math.tanh %162 : vector<8x128xf32>
    %cst_77 = arith.constant 5.000000e-01 : f32
    %164 = vector.broadcast %cst_77 : f32 to vector<8x128xf32>
    %165 = arith.mulf %164, %163 : vector<8x128xf32>
    %cst_78 = arith.constant 5.000000e-01 : f32
    %166 = vector.broadcast %cst_78 : f32 to vector<8x128xf32>
    %167 = arith.addf %165, %166 : vector<8x128xf32>
    %168 = arith.mulf %157, %91 : vector<8x128xf32>
    %169 = arith.mulf %149, %159 : vector<8x128xf32>
    %170 = arith.addf %168, %169 : vector<8x128xf32>
    %171 = math.tanh %170 : vector<8x128xf32>
    %172 = arith.mulf %167, %171 : vector<8x128xf32>
    %c2_i32 = arith.constant 2 : i32
    %173 = arith.index_cast %c2_i32 : i32 to index
    %c0_79 = arith.constant 0 : index
    %c0_80 = arith.constant 0 : index
    %174 = vector.load %arg1[%173, %c0_79, %c0_80] : memref<8x8x512xbf16, #tpu.memory_space<vmem>>, vector<1x8x512xbf16>
    %175 = vector.shape_cast %174 : vector<1x8x512xbf16> to vector<8x512xbf16>
    %176 = arith.extf %175 : vector<8x512xbf16> to vector<8x512xf32>
    %177 = arith.truncf %132 : vector<8x128xf32> to vector<8x128xbf16>
    %c0_81 = arith.constant 0 : index
    %c0_82 = arith.constant 0 : index
    %178 = vector.load %arg2[%c0_81, %c0_82] : memref<128x512xbf16, #tpu.memory_space<vmem>>, vector<128x512xbf16>
    %cst_83 = arith.constant dense<0.000000e+00> : vector<8x512xf32>
    %179 = tpu.matmul %177, %178, %cst_83 {dimension_numbers = #tpu.dot_dimension_numbers<[1], [0], [0], [1], [0, 0, 1, 1], [], []>} : vector<8x128xbf16>, vector<128x512xbf16>, vector<8x512xf32> -> vector<8x512xf32>
    %180 = arith.addf %176, %179 : vector<8x512xf32>
    %181 = vector.extract_strided_slice %180 {offsets = [0, 0], sizes = [8, 128], strides = [1, 1]} : vector<8x512xf32> to vector<8x128xf32>
    %cst_84 = arith.constant 5.000000e-01 : f32
    %182 = vector.broadcast %cst_84 : f32 to vector<8x128xf32>
    %183 = arith.mulf %182, %181 : vector<8x128xf32>
    %184 = math.tanh %183 : vector<8x128xf32>
    %cst_85 = arith.constant 5.000000e-01 : f32
    %185 = vector.broadcast %cst_85 : f32 to vector<8x128xf32>
    %186 = arith.mulf %185, %184 : vector<8x128xf32>
    %cst_86 = arith.constant 5.000000e-01 : f32
    %187 = vector.broadcast %cst_86 : f32 to vector<8x128xf32>
    %188 = arith.addf %186, %187 : vector<8x128xf32>
    %189 = vector.extract_strided_slice %180 {offsets = [0, 128], sizes = [8, 128], strides = [1, 1]} : vector<8x512xf32> to vector<8x128xf32>
    %cst_87 = arith.constant 5.000000e-01 : f32
    %190 = vector.broadcast %cst_87 : f32 to vector<8x128xf32>
    %191 = arith.mulf %190, %189 : vector<8x128xf32>
    %192 = math.tanh %191 : vector<8x128xf32>
    %cst_88 = arith.constant 5.000000e-01 : f32
    %193 = vector.broadcast %cst_88 : f32 to vector<8x128xf32>
    %194 = arith.mulf %193, %192 : vector<8x128xf32>
    %cst_89 = arith.constant 5.000000e-01 : f32
    %195 = vector.broadcast %cst_89 : f32 to vector<8x128xf32>
    %196 = arith.addf %194, %195 : vector<8x128xf32>
    %197 = vector.extract_strided_slice %180 {offsets = [0, 256], sizes = [8, 128], strides = [1, 1]} : vector<8x512xf32> to vector<8x128xf32>
    %198 = math.tanh %197 : vector<8x128xf32>
    %199 = vector.extract_strided_slice %180 {offsets = [0, 384], sizes = [8, 128], strides = [1, 1]} : vector<8x512xf32> to vector<8x128xf32>
    %cst_90 = arith.constant 5.000000e-01 : f32
    %200 = vector.broadcast %cst_90 : f32 to vector<8x128xf32>
    %201 = arith.mulf %200, %199 : vector<8x128xf32>
    %202 = math.tanh %201 : vector<8x128xf32>
    %cst_91 = arith.constant 5.000000e-01 : f32
    %203 = vector.broadcast %cst_91 : f32 to vector<8x128xf32>
    %204 = arith.mulf %203, %202 : vector<8x128xf32>
    %cst_92 = arith.constant 5.000000e-01 : f32
    %205 = vector.broadcast %cst_92 : f32 to vector<8x128xf32>
    %206 = arith.addf %204, %205 : vector<8x128xf32>
    %207 = arith.mulf %196, %130 : vector<8x128xf32>
    %208 = arith.mulf %188, %198 : vector<8x128xf32>
    %209 = arith.addf %207, %208 : vector<8x128xf32>
    %210 = math.tanh %209 : vector<8x128xf32>
    %211 = arith.mulf %206, %210 : vector<8x128xf32>
    %212 = arith.truncf %211 : vector<8x128xf32> to vector<8x128xbf16>
    %c0_93 = arith.constant 0 : index
    %c0_94 = arith.constant 0 : index
    %213 = vector.load %arg6[%c0_93, %c0_94] : memref<8x256xbf16, #tpu.memory_space<vmem>>, vector<8x128xbf16>
    tpu.vector_store %arg6[%c0_93, %c0_94], %212 {strides = array<i32>} : memref<8x256xbf16, #tpu.memory_space<vmem>>, vector<8x128xbf16>,
    %214 = arith.truncf %172 : vector<8x128xf32> to vector<8x128xbf16>
    %c0_95 = arith.constant 0 : index
    %c128_96 = arith.constant 128 : index
    %215 = vector.load %arg6[%c0_95, %c128_96] : memref<8x256xbf16, #tpu.memory_space<vmem>>, vector<8x128xbf16>
    tpu.vector_store %arg6[%c0_95, %c128_96], %214 {strides = array<i32>} : memref<8x256xbf16, #tpu.memory_space<vmem>>, vector<8x128xbf16>,
    %c0_97 = arith.constant 0 : index
    %c0_98 = arith.constant 0 : index
    %216 = vector.load %arg6[%c0_97, %c0_98] : memref<8x256xbf16, #tpu.memory_space<vmem>>, vector<8x256xbf16>
    %c0_99 = arith.constant 0 : index
    %c0_100 = arith.constant 0 : index
    %c0_101 = arith.constant 0 : index
    %217 = vector.load %arg3[%c0_99, %c0_100, %c0_101] : memref<1x256x512xbf16, #tpu.memory_space<vmem>>, vector<1x256x512xbf16>
    %218 = vector.shape_cast %217 : vector<1x256x512xbf16> to vector<256x512xbf16>
    %cst_102 = arith.constant dense<0.000000e+00> : vector<8x512xf32>
    %219 = tpu.matmul %216, %218, %cst_102 {dimension_numbers = #tpu.dot_dimension_numbers<[1], [0], [0], [1], [0, 0, 1, 1], [], []>} : vector<8x256xbf16>, vector<256x512xbf16>, vector<8x512xf32> -> vector<8x512xf32>
    %220 = arith.addf %219, %6 : vector<8x512xf32>
    %221 = vector.extract_strided_slice %220 {offsets = [0, 0], sizes = [8, 128], strides = [1, 1]} : vector<8x512xf32> to vector<8x128xf32>
    %cst_103 = arith.constant 5.000000e-01 : f32
    %222 = vector.broadcast %cst_103 : f32 to vector<8x128xf32>
    %223 = arith.mulf %222, %221 : vector<8x128xf32>
    %224 = math.tanh %223 : vector<8x128xf32>
    %cst_104 = arith.constant 5.000000e-01 : f32
    %225 = vector.broadcast %cst_104 : f32 to vector<8x128xf32>
    %226 = arith.mulf %225, %224 : vector<8x128xf32>
    %cst_105 = arith.constant 5.000000e-01 : f32
    %227 = vector.broadcast %cst_105 : f32 to vector<8x128xf32>
    %228 = arith.addf %226, %227 : vector<8x128xf32>
    %229 = vector.extract_strided_slice %220 {offsets = [0, 128], sizes = [8, 128], strides = [1, 1]} : vector<8x512xf32> to vector<8x128xf32>
    %cst_106 = arith.constant 5.000000e-01 : f32
    %230 = vector.broadcast %cst_106 : f32 to vector<8x128xf32>
    %231 = arith.mulf %230, %229 : vector<8x128xf32>
    %232 = math.tanh %231 : vector<8x128xf32>
    %cst_107 = arith.constant 5.000000e-01 : f32
    %233 = vector.broadcast %cst_107 : f32 to vector<8x128xf32>
    %234 = arith.mulf %233, %232 : vector<8x128xf32>
    %cst_108 = arith.constant 5.000000e-01 : f32
    %235 = vector.broadcast %cst_108 : f32 to vector<8x128xf32>
    %236 = arith.addf %234, %235 : vector<8x128xf32>
    %237 = vector.extract_strided_slice %220 {offsets = [0, 256], sizes = [8, 128], strides = [1, 1]} : vector<8x512xf32> to vector<8x128xf32>
    %238 = math.tanh %237 : vector<8x128xf32>
    %239 = vector.extract_strided_slice %220 {offsets = [0, 384], sizes = [8, 128], strides = [1, 1]} : vector<8x512xf32> to vector<8x128xf32>
    %cst_109 = arith.constant 5.000000e-01 : f32
    %240 = vector.broadcast %cst_109 : f32 to vector<8x128xf32>
    %241 = arith.mulf %240, %239 : vector<8x128xf32>
    %242 = math.tanh %241 : vector<8x128xf32>
    %cst_110 = arith.constant 5.000000e-01 : f32
    %243 = vector.broadcast %cst_110 : f32 to vector<8x128xf32>
    %244 = arith.mulf %243, %242 : vector<8x128xf32>
    %cst_111 = arith.constant 5.000000e-01 : f32
    %245 = vector.broadcast %cst_111 : f32 to vector<8x128xf32>
    %246 = arith.addf %244, %245 : vector<8x128xf32>
    %247 = arith.mulf %236, %170 : vector<8x128xf32>
    %248 = arith.mulf %228, %238 : vector<8x128xf32>
    %249 = arith.addf %247, %248 : vector<8x128xf32>
    %250 = math.tanh %249 : vector<8x128xf32>
    %251 = arith.mulf %246, %250 : vector<8x128xf32>
    %c3_i32 = arith.constant 3 : i32
    %252 = arith.index_cast %c3_i32 : i32 to index
    %c0_112 = arith.constant 0 : index
    %c0_113 = arith.constant 0 : index
    %253 = vector.load %arg1[%252, %c0_112, %c0_113] : memref<8x8x512xbf16, #tpu.memory_space<vmem>>, vector<1x8x512xbf16>
    %254 = vector.shape_cast %253 : vector<1x8x512xbf16> to vector<8x512xbf16>
    %255 = arith.extf %254 : vector<8x512xbf16> to vector<8x512xf32>
    %256 = arith.truncf %211 : vector<8x128xf32> to vector<8x128xbf16>
    %c0_114 = arith.constant 0 : index
    %c0_115 = arith.constant 0 : index
    %257 = vector.load %arg2[%c0_114, %c0_115] : memref<128x512xbf16, #tpu.memory_space<vmem>>, vector<128x512xbf16>
    %cst_116 = arith.constant dense<0.000000e+00> : vector<8x512xf32>
    %258 = tpu.matmul %256, %257, %cst_116 {dimension_numbers = #tpu.dot_dimension_numbers<[1], [0], [0], [1], [0, 0, 1, 1], [], []>} : vector<8x128xbf16>, vector<128x512xbf16>, vector<8x512xf32> -> vector<8x512xf32>
    %259 = arith.addf %255, %258 : vector<8x512xf32>
    %260 = vector.extract_strided_slice %259 {offsets = [0, 0], sizes = [8, 128], strides = [1, 1]} : vector<8x512xf32> to vector<8x128xf32>
    %cst_117 = arith.constant 5.000000e-01 : f32
    %261 = vector.broadcast %cst_117 : f32 to vector<8x128xf32>
    %262 = arith.mulf %261, %260 : vector<8x128xf32>
    %263 = math.tanh %262 : vector<8x128xf32>
    %cst_118 = arith.constant 5.000000e-01 : f32
    %264 = vector.broadcast %cst_118 : f32 to vector<8x128xf32>
    %265 = arith.mulf %264, %263 : vector<8x128xf32>
    %cst_119 = arith.constant 5.000000e-01 : f32
    %266 = vector.broadcast %cst_119 : f32 to vector<8x128xf32>
    %267 = arith.addf %265, %266 : vector<8x128xf32>
    %268 = vector.extract_strided_slice %259 {offsets = [0, 128], sizes = [8, 128], strides = [1, 1]} : vector<8x512xf32> to vector<8x128xf32>
    %cst_120 = arith.constant 5.000000e-01 : f32
    %269 = vector.broadcast %cst_120 : f32 to vector<8x128xf32>
    %270 = arith.mulf %269, %268 : vector<8x128xf32>
    %271 = math.tanh %270 : vector<8x128xf32>
    %cst_121 = arith.constant 5.000000e-01 : f32
    %272 = vector.broadcast %cst_121 : f32 to vector<8x128xf32>
    %273 = arith.mulf %272, %271 : vector<8x128xf32>
    %cst_122 = arith.constant 5.000000e-01 : f32
    %274 = vector.broadcast %cst_122 : f32 to vector<8x128xf32>
    %275 = arith.addf %273, %274 : vector<8x128xf32>
    %276 = vector.extract_strided_slice %259 {offsets = [0, 256], sizes = [8, 128], strides = [1, 1]} : vector<8x512xf32> to vector<8x128xf32>
    %277 = math.tanh %276 : vector<8x128xf32>
    %278 = vector.extract_strided_slice %259 {offsets = [0, 384], sizes = [8, 128], strides = [1, 1]} : vector<8x512xf32> to vector<8x128xf32>
    %cst_123 = arith.constant 5.000000e-01 : f32
    %279 = vector.broadcast %cst_123 : f32 to vector<8x128xf32>
    %280 = arith.mulf %279, %278 : vector<8x128xf32>
    %281 = math.tanh %280 : vector<8x128xf32>
    %cst_124 = arith.constant 5.000000e-01 : f32
    %282 = vector.broadcast %cst_124 : f32 to vector<8x128xf32>
    %283 = arith.mulf %282, %281 : vector<8x128xf32>
    %cst_125 = arith.constant 5.000000e-01 : f32
    %284 = vector.broadcast %cst_125 : f32 to vector<8x128xf32>
    %285 = arith.addf %283, %284 : vector<8x128xf32>
    %286 = arith.mulf %275, %209 : vector<8x128xf32>
    %287 = arith.mulf %267, %277 : vector<8x128xf32>
    %288 = arith.addf %286, %287 : vector<8x128xf32>
    %289 = math.tanh %288 : vector<8x128xf32>
    %290 = arith.mulf %285, %289 : vector<8x128xf32>
    %291 = arith.truncf %290 : vector<8x128xf32> to vector<8x128xbf16>
    %c0_126 = arith.constant 0 : index
    %c0_127 = arith.constant 0 : index
    %292 = vector.load %arg6[%c0_126, %c0_127] : memref<8x256xbf16, #tpu.memory_space<vmem>>, vector<8x128xbf16>
    tpu.vector_store %arg6[%c0_126, %c0_127], %291 {strides = array<i32>} : memref<8x256xbf16, #tpu.memory_space<vmem>>, vector<8x128xbf16>,
    %293 = arith.truncf %251 : vector<8x128xf32> to vector<8x128xbf16>
    %c0_128 = arith.constant 0 : index
    %c128_129 = arith.constant 128 : index
    %294 = vector.load %arg6[%c0_128, %c128_129] : memref<8x256xbf16, #tpu.memory_space<vmem>>, vector<8x128xbf16>
    tpu.vector_store %arg6[%c0_128, %c128_129], %293 {strides = array<i32>} : memref<8x256xbf16, #tpu.memory_space<vmem>>, vector<8x128xbf16>,
    %c0_130 = arith.constant 0 : index
    %c0_131 = arith.constant 0 : index
    %295 = vector.load %arg6[%c0_130, %c0_131] : memref<8x256xbf16, #tpu.memory_space<vmem>>, vector<8x256xbf16>
    %c0_132 = arith.constant 0 : index
    %c0_133 = arith.constant 0 : index
    %c0_134 = arith.constant 0 : index
    %296 = vector.load %arg3[%c0_132, %c0_133, %c0_134] : memref<1x256x512xbf16, #tpu.memory_space<vmem>>, vector<1x256x512xbf16>
    %297 = vector.shape_cast %296 : vector<1x256x512xbf16> to vector<256x512xbf16>
    %cst_135 = arith.constant dense<0.000000e+00> : vector<8x512xf32>
    %298 = tpu.matmul %295, %297, %cst_135 {dimension_numbers = #tpu.dot_dimension_numbers<[1], [0], [0], [1], [0, 0, 1, 1], [], []>} : vector<8x256xbf16>, vector<256x512xbf16>, vector<8x512xf32> -> vector<8x512xf32>
    %299 = arith.addf %298, %6 : vector<8x512xf32>
    %300 = vector.extract_strided_slice %299 {offsets = [0, 0], sizes = [8, 128], strides = [1, 1]} : vector<8x512xf32> to vector<8x128xf32>
    %cst_136 = arith.constant 5.000000e-01 : f32
    %301 = vector.broadcast %cst_136 : f32 to vector<8x128xf32>
    %302 = arith.mulf %301, %300 : vector<8x128xf32>
    %303 = math.tanh %302 : vector<8x128xf32>
    %cst_137 = arith.constant 5.000000e-01 : f32
    %304 = vector.broadcast %cst_137 : f32 to vector<8x128xf32>
    %305 = arith.mulf %304, %303 : vector<8x128xf32>
    %cst_138 = arith.constant 5.000000e-01 : f32
    %306 = vector.broadcast %cst_138 : f32 to vector<8x128xf32>
    %307 = arith.addf %305, %306 : vector<8x128xf32>
    %308 = vector.extract_strided_slice %299 {offsets = [0, 128], sizes = [8, 128], strides = [1, 1]} : vector<8x512xf32> to vector<8x128xf32>
    %cst_139 = arith.constant 5.000000e-01 : f32
    %309 = vector.broadcast %cst_139 : f32 to vector<8x128xf32>
    %310 = arith.mulf %309, %308 : vector<8x128xf32>
    %311 = math.tanh %310 : vector<8x128xf32>
    %cst_140 = arith.constant 5.000000e-01 : f32
    %312 = vector.broadcast %cst_140 : f32 to vector<8x128xf32>
    %313 = arith.mulf %312, %311 : vector<8x128xf32>
    %cst_141 = arith.constant 5.000000e-01 : f32
    %314 = vector.broadcast %cst_141 : f32 to vector<8x128xf32>
    %315 = arith.addf %313, %314 : vector<8x128xf32>
    %316 = vector.extract_strided_slice %299 {offsets = [0, 256], sizes = [8, 128], strides = [1, 1]} : vector<8x512xf32> to vector<8x128xf32>
    %317 = math.tanh %316 : vector<8x128xf32>
    %318 = vector.extract_strided_slice %299 {offsets = [0, 384], sizes = [8, 128], strides = [1, 1]} : vector<8x512xf32> to vector<8x128xf32>
    %cst_142 = arith.constant 5.000000e-01 : f32
    %319 = vector.broadcast %cst_142 : f32 to vector<8x128xf32>
    %320 = arith.mulf %319, %318 : vector<8x128xf32>
    %321 = math.tanh %320 : vector<8x128xf32>
    %cst_143 = arith.constant 5.000000e-01 : f32
    %322 = vector.broadcast %cst_143 : f32 to vector<8x128xf32>
    %323 = arith.mulf %322, %321 : vector<8x128xf32>
    %cst_144 = arith.constant 5.000000e-01 : f32
    %324 = vector.broadcast %cst_144 : f32 to vector<8x128xf32>
    %325 = arith.addf %323, %324 : vector<8x128xf32>
    %326 = arith.mulf %315, %249 : vector<8x128xf32>
    %327 = arith.mulf %307, %317 : vector<8x128xf32>
    %328 = arith.addf %326, %327 : vector<8x128xf32>
    %329 = math.tanh %328 : vector<8x128xf32>
    %330 = arith.mulf %325, %329 : vector<8x128xf32>
    %c4_i32 = arith.constant 4 : i32
    %331 = arith.index_cast %c4_i32 : i32 to index
    %c0_145 = arith.constant 0 : index
    %c0_146 = arith.constant 0 : index
    %332 = vector.load %arg1[%331, %c0_145, %c0_146] : memref<8x8x512xbf16, #tpu.memory_space<vmem>>, vector<1x8x512xbf16>
    %333 = vector.shape_cast %332 : vector<1x8x512xbf16> to vector<8x512xbf16>
    %334 = arith.extf %333 : vector<8x512xbf16> to vector<8x512xf32>
    %335 = arith.truncf %290 : vector<8x128xf32> to vector<8x128xbf16>
    %c0_147 = arith.constant 0 : index
    %c0_148 = arith.constant 0 : index
    %336 = vector.load %arg2[%c0_147, %c0_148] : memref<128x512xbf16, #tpu.memory_space<vmem>>, vector<128x512xbf16>
    %cst_149 = arith.constant dense<0.000000e+00> : vector<8x512xf32>
    %337 = tpu.matmul %335, %336, %cst_149 {dimension_numbers = #tpu.dot_dimension_numbers<[1], [0], [0], [1], [0, 0, 1, 1], [], []>} : vector<8x128xbf16>, vector<128x512xbf16>, vector<8x512xf32> -> vector<8x512xf32>
    %338 = arith.addf %334, %337 : vector<8x512xf32>
    %339 = vector.extract_strided_slice %338 {offsets = [0, 0], sizes = [8, 128], strides = [1, 1]} : vector<8x512xf32> to vector<8x128xf32>
    %cst_150 = arith.constant 5.000000e-01 : f32
    %340 = vector.broadcast %cst_150 : f32 to vector<8x128xf32>
    %341 = arith.mulf %340, %339 : vector<8x128xf32>
    %342 = math.tanh %341 : vector<8x128xf32>
    %cst_151 = arith.constant 5.000000e-01 : f32
    %343 = vector.broadcast %cst_151 : f32 to vector<8x128xf32>
    %344 = arith.mulf %343, %342 : vector<8x128xf32>
    %cst_152 = arith.constant 5.000000e-01 : f32
    %345 = vector.broadcast %cst_152 : f32 to vector<8x128xf32>
    %346 = arith.addf %344, %345 : vector<8x128xf32>
    %347 = vector.extract_strided_slice %338 {offsets = [0, 128], sizes = [8, 128], strides = [1, 1]} : vector<8x512xf32> to vector<8x128xf32>
    %cst_153 = arith.constant 5.000000e-01 : f32
    %348 = vector.broadcast %cst_153 : f32 to vector<8x128xf32>
    %349 = arith.mulf %348, %347 : vector<8x128xf32>
    %350 = math.tanh %349 : vector<8x128xf32>
    %cst_154 = arith.constant 5.000000e-01 : f32
    %351 = vector.broadcast %cst_154 : f32 to vector<8x128xf32>
    %352 = arith.mulf %351, %350 : vector<8x128xf32>
    %cst_155 = arith.constant 5.000000e-01 : f32
    %353 = vector.broadcast %cst_155 : f32 to vector<8x128xf32>
    %354 = arith.addf %352, %353 : vector<8x128xf32>
    %355 = vector.extract_strided_slice %338 {offsets = [0, 256], sizes = [8, 128], strides = [1, 1]} : vector<8x512xf32> to vector<8x128xf32>
    %356 = math.tanh %355 : vector<8x128xf32>
    %357 = vector.extract_strided_slice %338 {offsets = [0, 384], sizes = [8, 128], strides = [1, 1]} : vector<8x512xf32> to vector<8x128xf32>
    %cst_156 = arith.constant 5.000000e-01 : f32
    %358 = vector.broadcast %cst_156 : f32 to vector<8x128xf32>
    %359 = arith.mulf %358, %357 : vector<8x128xf32>
    %360 = math.tanh %359 : vector<8x128xf32>
    %cst_157 = arith.constant 5.000000e-01 : f32
    %361 = vector.broadcast %cst_157 : f32 to vector<8x128xf32>
    %362 = arith.mulf %361, %360 : vector<8x128xf32>
    %cst_158 = arith.constant 5.000000e-01 : f32
    %363 = vector.broadcast %cst_158 : f32 to vector<8x128xf32>
    %364 = arith.addf %362, %363 : vector<8x128xf32>
    %365 = arith.mulf %354, %288 : vector<8x128xf32>
    %366 = arith.mulf %346, %356 : vector<8x128xf32>
    %367 = arith.addf %365, %366 : vector<8x128xf32>
    %368 = math.tanh %367 : vector<8x128xf32>
    %369 = arith.mulf %364, %368 : vector<8x128xf32>
    %370 = arith.truncf %369 : vector<8x128xf32> to vector<8x128xbf16>
    %c0_159 = arith.constant 0 : index
    %c0_160 = arith.constant 0 : index
    %371 = vector.load %arg6[%c0_159, %c0_160] : memref<8x256xbf16, #tpu.memory_space<vmem>>, vector<8x128xbf16>
    tpu.vector_store %arg6[%c0_159, %c0_160], %370 {strides = array<i32>} : memref<8x256xbf16, #tpu.memory_space<vmem>>, vector<8x128xbf16>,
    %372 = arith.truncf %330 : vector<8x128xf32> to vector<8x128xbf16>
    %c0_161 = arith.constant 0 : index
    %c128_162 = arith.constant 128 : index
    %373 = vector.load %arg6[%c0_161, %c128_162] : memref<8x256xbf16, #tpu.memory_space<vmem>>, vector<8x128xbf16>
    tpu.vector_store %arg6[%c0_161, %c128_162], %372 {strides = array<i32>} : memref<8x256xbf16, #tpu.memory_space<vmem>>, vector<8x128xbf16>,
    %c0_163 = arith.constant 0 : index
    %c0_164 = arith.constant 0 : index
    %374 = vector.load %arg6[%c0_163, %c0_164] : memref<8x256xbf16, #tpu.memory_space<vmem>>, vector<8x256xbf16>
    %c0_165 = arith.constant 0 : index
    %c0_166 = arith.constant 0 : index
    %c0_167 = arith.constant 0 : index
    %375 = vector.load %arg3[%c0_165, %c0_166, %c0_167] : memref<1x256x512xbf16, #tpu.memory_space<vmem>>, vector<1x256x512xbf16>
    %376 = vector.shape_cast %375 : vector<1x256x512xbf16> to vector<256x512xbf16>
    %cst_168 = arith.constant dense<0.000000e+00> : vector<8x512xf32>
    %377 = tpu.matmul %374, %376, %cst_168 {dimension_numbers = #tpu.dot_dimension_numbers<[1], [0], [0], [1], [0, 0, 1, 1], [], []>} : vector<8x256xbf16>, vector<256x512xbf16>, vector<8x512xf32> -> vector<8x512xf32>
    %378 = arith.addf %377, %6 : vector<8x512xf32>
    %379 = vector.extract_strided_slice %378 {offsets = [0, 0], sizes = [8, 128], strides = [1, 1]} : vector<8x512xf32> to vector<8x128xf32>
    %cst_169 = arith.constant 5.000000e-01 : f32
    %380 = vector.broadcast %cst_169 : f32 to vector<8x128xf32>
    %381 = arith.mulf %380, %379 : vector<8x128xf32>
    %382 = math.tanh %381 : vector<8x128xf32>
    %cst_170 = arith.constant 5.000000e-01 : f32
    %383 = vector.broadcast %cst_170 : f32 to vector<8x128xf32>
    %384 = arith.mulf %383, %382 : vector<8x128xf32>
    %cst_171 = arith.constant 5.000000e-01 : f32
    %385 = vector.broadcast %cst_171 : f32 to vector<8x128xf32>
    %386 = arith.addf %384, %385 : vector<8x128xf32>
    %387 = vector.extract_strided_slice %378 {offsets = [0, 128], sizes = [8, 128], strides = [1, 1]} : vector<8x512xf32> to vector<8x128xf32>
    %cst_172 = arith.constant 5.000000e-01 : f32
    %388 = vector.broadcast %cst_172 : f32 to vector<8x128xf32>
    %389 = arith.mulf %388, %387 : vector<8x128xf32>
    %390 = math.tanh %389 : vector<8x128xf32>
    %cst_173 = arith.constant 5.000000e-01 : f32
    %391 = vector.broadcast %cst_173 : f32 to vector<8x128xf32>
    %392 = arith.mulf %391, %390 : vector<8x128xf32>
    %cst_174 = arith.constant 5.000000e-01 : f32
    %393 = vector.broadcast %cst_174 : f32 to vector<8x128xf32>
    %394 = arith.addf %392, %393 : vector<8x128xf32>
    %395 = vector.extract_strided_slice %378 {offsets = [0, 256], sizes = [8, 128], strides = [1, 1]} : vector<8x512xf32> to vector<8x128xf32>
    %396 = math.tanh %395 : vector<8x128xf32>
    %397 = vector.extract_strided_slice %378 {offsets = [0, 384], sizes = [8, 128], strides = [1, 1]} : vector<8x512xf32> to vector<8x128xf32>
    %cst_175 = arith.constant 5.000000e-01 : f32
    %398 = vector.broadcast %cst_175 : f32 to vector<8x128xf32>
    %399 = arith.mulf %398, %397 : vector<8x128xf32>
    %400 = math.tanh %399 : vector<8x128xf32>
    %cst_176 = arith.constant 5.000000e-01 : f32
    %401 = vector.broadcast %cst_176 : f32 to vector<8x128xf32>
    %402 = arith.mulf %401, %400 : vector<8x128xf32>
    %cst_177 = arith.constant 5.000000e-01 : f32
    %403 = vector.broadcast %cst_177 : f32 to vector<8x128xf32>
    %404 = arith.addf %402, %403 : vector<8x128xf32>
    %405 = arith.mulf %394, %328 : vector<8x128xf32>
    %406 = arith.mulf %386, %396 : vector<8x128xf32>
    %407 = arith.addf %405, %406 : vector<8x128xf32>
    %408 = math.tanh %407 : vector<8x128xf32>
    %409 = arith.mulf %404, %408 : vector<8x128xf32>
    %c5_i32 = arith.constant 5 : i32
    %410 = arith.index_cast %c5_i32 : i32 to index
    %c0_178 = arith.constant 0 : index
    %c0_179 = arith.constant 0 : index
    %411 = vector.load %arg1[%410, %c0_178, %c0_179] : memref<8x8x512xbf16, #tpu.memory_space<vmem>>, vector<1x8x512xbf16>
    %412 = vector.shape_cast %411 : vector<1x8x512xbf16> to vector<8x512xbf16>
    %413 = arith.extf %412 : vector<8x512xbf16> to vector<8x512xf32>
    %414 = arith.truncf %369 : vector<8x128xf32> to vector<8x128xbf16>
    %c0_180 = arith.constant 0 : index
    %c0_181 = arith.constant 0 : index
    %415 = vector.load %arg2[%c0_180, %c0_181] : memref<128x512xbf16, #tpu.memory_space<vmem>>, vector<128x512xbf16>
    %cst_182 = arith.constant dense<0.000000e+00> : vector<8x512xf32>
    %416 = tpu.matmul %414, %415, %cst_182 {dimension_numbers = #tpu.dot_dimension_numbers<[1], [0], [0], [1], [0, 0, 1, 1], [], []>} : vector<8x128xbf16>, vector<128x512xbf16>, vector<8x512xf32> -> vector<8x512xf32>
    %417 = arith.addf %413, %416 : vector<8x512xf32>
    %418 = vector.extract_strided_slice %417 {offsets = [0, 0], sizes = [8, 128], strides = [1, 1]} : vector<8x512xf32> to vector<8x128xf32>
    %cst_183 = arith.constant 5.000000e-01 : f32
    %419 = vector.broadcast %cst_183 : f32 to vector<8x128xf32>
    %420 = arith.mulf %419, %418 : vector<8x128xf32>
    %421 = math.tanh %420 : vector<8x128xf32>
    %cst_184 = arith.constant 5.000000e-01 : f32
    %422 = vector.broadcast %cst_184 : f32 to vector<8x128xf32>
    %423 = arith.mulf %422, %421 : vector<8x128xf32>
    %cst_185 = arith.constant 5.000000e-01 : f32
    %424 = vector.broadcast %cst_185 : f32 to vector<8x128xf32>
    %425 = arith.addf %423, %424 : vector<8x128xf32>
    %426 = vector.extract_strided_slice %417 {offsets = [0, 128], sizes = [8, 128], strides = [1, 1]} : vector<8x512xf32> to vector<8x128xf32>
    %cst_186 = arith.constant 5.000000e-01 : f32
    %427 = vector.broadcast %cst_186 : f32 to vector<8x128xf32>
    %428 = arith.mulf %427, %426 : vector<8x128xf32>
    %429 = math.tanh %428 : vector<8x128xf32>
    %cst_187 = arith.constant 5.000000e-01 : f32
    %430 = vector.broadcast %cst_187 : f32 to vector<8x128xf32>
    %431 = arith.mulf %430, %429 : vector<8x128xf32>
    %cst_188 = arith.constant 5.000000e-01 : f32
    %432 = vector.broadcast %cst_188 : f32 to vector<8x128xf32>
    %433 = arith.addf %431, %432 : vector<8x128xf32>
    %434 = vector.extract_strided_slice %417 {offsets = [0, 256], sizes = [8, 128], strides = [1, 1]} : vector<8x512xf32> to vector<8x128xf32>
    %435 = math.tanh %434 : vector<8x128xf32>
    %436 = vector.extract_strided_slice %417 {offsets = [0, 384], sizes = [8, 128], strides = [1, 1]} : vector<8x512xf32> to vector<8x128xf32>
    %cst_189 = arith.constant 5.000000e-01 : f32
    %437 = vector.broadcast %cst_189 : f32 to vector<8x128xf32>
    %438 = arith.mulf %437, %436 : vector<8x128xf32>
    %439 = math.tanh %438 : vector<8x128xf32>
    %cst_190 = arith.constant 5.000000e-01 : f32
    %440 = vector.broadcast %cst_190 : f32 to vector<8x128xf32>
    %441 = arith.mulf %440, %439 : vector<8x128xf32>
    %cst_191 = arith.constant 5.000000e-01 : f32
    %442 = vector.broadcast %cst_191 : f32 to vector<8x128xf32>
    %443 = arith.addf %441, %442 : vector<8x128xf32>
    %444 = arith.mulf %433, %367 : vector<8x128xf32>
    %445 = arith.mulf %425, %435 : vector<8x128xf32>
    %446 = arith.addf %444, %445 : vector<8x128xf32>
    %447 = math.tanh %446 : vector<8x128xf32>
    %448 = arith.mulf %443, %447 : vector<8x128xf32>
    %449 = arith.truncf %448 : vector<8x128xf32> to vector<8x128xbf16>
    %c0_192 = arith.constant 0 : index
    %c0_193 = arith.constant 0 : index
    %450 = vector.load %arg6[%c0_192, %c0_193] : memref<8x256xbf16, #tpu.memory_space<vmem>>, vector<8x128xbf16>
    tpu.vector_store %arg6[%c0_192, %c0_193], %449 {strides = array<i32>} : memref<8x256xbf16, #tpu.memory_space<vmem>>, vector<8x128xbf16>,
    %451 = arith.truncf %409 : vector<8x128xf32> to vector<8x128xbf16>
    %c0_194 = arith.constant 0 : index
    %c128_195 = arith.constant 128 : index
    %452 = vector.load %arg6[%c0_194, %c128_195] : memref<8x256xbf16, #tpu.memory_space<vmem>>, vector<8x128xbf16>
    tpu.vector_store %arg6[%c0_194, %c128_195], %451 {strides = array<i32>} : memref<8x256xbf16, #tpu.memory_space<vmem>>, vector<8x128xbf16>,
    %c0_196 = arith.constant 0 : index
    %c0_197 = arith.constant 0 : index
    %453 = vector.load %arg6[%c0_196, %c0_197] : memref<8x256xbf16, #tpu.memory_space<vmem>>, vector<8x256xbf16>
    %c0_198 = arith.constant 0 : index
    %c0_199 = arith.constant 0 : index
    %c0_200 = arith.constant 0 : index
    %454 = vector.load %arg3[%c0_198, %c0_199, %c0_200] : memref<1x256x512xbf16, #tpu.memory_space<vmem>>, vector<1x256x512xbf16>
    %455 = vector.shape_cast %454 : vector<1x256x512xbf16> to vector<256x512xbf16>
    %cst_201 = arith.constant dense<0.000000e+00> : vector<8x512xf32>
    %456 = tpu.matmul %453, %455, %cst_201 {dimension_numbers = #tpu.dot_dimension_numbers<[1], [0], [0], [1], [0, 0, 1, 1], [], []>} : vector<8x256xbf16>, vector<256x512xbf16>, vector<8x512xf32> -> vector<8x512xf32>
    %457 = arith.addf %456, %6 : vector<8x512xf32>
    %458 = vector.extract_strided_slice %457 {offsets = [0, 0], sizes = [8, 128], strides = [1, 1]} : vector<8x512xf32> to vector<8x128xf32>
    %cst_202 = arith.constant 5.000000e-01 : f32
    %459 = vector.broadcast %cst_202 : f32 to vector<8x128xf32>
    %460 = arith.mulf %459, %458 : vector<8x128xf32>
    %461 = math.tanh %460 : vector<8x128xf32>
    %cst_203 = arith.constant 5.000000e-01 : f32
    %462 = vector.broadcast %cst_203 : f32 to vector<8x128xf32>
    %463 = arith.mulf %462, %461 : vector<8x128xf32>
    %cst_204 = arith.constant 5.000000e-01 : f32
    %464 = vector.broadcast %cst_204 : f32 to vector<8x128xf32>
    %465 = arith.addf %463, %464 : vector<8x128xf32>
    %466 = vector.extract_strided_slice %457 {offsets = [0, 128], sizes = [8, 128], strides = [1, 1]} : vector<8x512xf32> to vector<8x128xf32>
    %cst_205 = arith.constant 5.000000e-01 : f32
    %467 = vector.broadcast %cst_205 : f32 to vector<8x128xf32>
    %468 = arith.mulf %467, %466 : vector<8x128xf32>
    %469 = math.tanh %468 : vector<8x128xf32>
    %cst_206 = arith.constant 5.000000e-01 : f32
    %470 = vector.broadcast %cst_206 : f32 to vector<8x128xf32>
    %471 = arith.mulf %470, %469 : vector<8x128xf32>
    %cst_207 = arith.constant 5.000000e-01 : f32
    %472 = vector.broadcast %cst_207 : f32 to vector<8x128xf32>
    %473 = arith.addf %471, %472 : vector<8x128xf32>
    %474 = vector.extract_strided_slice %457 {offsets = [0, 256], sizes = [8, 128], strides = [1, 1]} : vector<8x512xf32> to vector<8x128xf32>
    %475 = math.tanh %474 : vector<8x128xf32>
    %476 = vector.extract_strided_slice %457 {offsets = [0, 384], sizes = [8, 128], strides = [1, 1]} : vector<8x512xf32> to vector<8x128xf32>
    %cst_208 = arith.constant 5.000000e-01 : f32
    %477 = vector.broadcast %cst_208 : f32 to vector<8x128xf32>
    %478 = arith.mulf %477, %476 : vector<8x128xf32>
    %479 = math.tanh %478 : vector<8x128xf32>
    %cst_209 = arith.constant 5.000000e-01 : f32
    %480 = vector.broadcast %cst_209 : f32 to vector<8x128xf32>
    %481 = arith.mulf %480, %479 : vector<8x128xf32>
    %cst_210 = arith.constant 5.000000e-01 : f32
    %482 = vector.broadcast %cst_210 : f32 to vector<8x128xf32>
    %483 = arith.addf %481, %482 : vector<8x128xf32>
    %484 = arith.mulf %473, %407 : vector<8x128xf32>
    %485 = arith.mulf %465, %475 : vector<8x128xf32>
    %486 = arith.addf %484, %485 : vector<8x128xf32>
    %487 = math.tanh %486 : vector<8x128xf32>
    %488 = arith.mulf %483, %487 : vector<8x128xf32>
    %c6_i32 = arith.constant 6 : i32
    %489 = arith.index_cast %c6_i32 : i32 to index
    %c0_211 = arith.constant 0 : index
    %c0_212 = arith.constant 0 : index
    %490 = vector.load %arg1[%489, %c0_211, %c0_212] : memref<8x8x512xbf16, #tpu.memory_space<vmem>>, vector<1x8x512xbf16>
    %491 = vector.shape_cast %490 : vector<1x8x512xbf16> to vector<8x512xbf16>
    %492 = arith.extf %491 : vector<8x512xbf16> to vector<8x512xf32>
    %493 = arith.truncf %448 : vector<8x128xf32> to vector<8x128xbf16>
    %c0_213 = arith.constant 0 : index
    %c0_214 = arith.constant 0 : index
    %494 = vector.load %arg2[%c0_213, %c0_214] : memref<128x512xbf16, #tpu.memory_space<vmem>>, vector<128x512xbf16>
    %cst_215 = arith.constant dense<0.000000e+00> : vector<8x512xf32>
    %495 = tpu.matmul %493, %494, %cst_215 {dimension_numbers = #tpu.dot_dimension_numbers<[1], [0], [0], [1], [0, 0, 1, 1], [], []>} : vector<8x128xbf16>, vector<128x512xbf16>, vector<8x512xf32> -> vector<8x512xf32>
    %496 = arith.addf %492, %495 : vector<8x512xf32>
    %497 = vector.extract_strided_slice %496 {offsets = [0, 0], sizes = [8, 128], strides = [1, 1]} : vector<8x512xf32> to vector<8x128xf32>
    %cst_216 = arith.constant 5.000000e-01 : f32
    %498 = vector.broadcast %cst_216 : f32 to vector<8x128xf32>
    %499 = arith.mulf %498, %497 : vector<8x128xf32>
    %500 = math.tanh %499 : vector<8x128xf32>
    %cst_217 = arith.constant 5.000000e-01 : f32
    %501 = vector.broadcast %cst_217 : f32 to vector<8x128xf32>
    %502 = arith.mulf %501, %500 : vector<8x128xf32>
    %cst_218 = arith.constant 5.000000e-01 : f32
    %503 = vector.broadcast %cst_218 : f32 to vector<8x128xf32>
    %504 = arith.addf %502, %503 : vector<8x128xf32>
    %505 = vector.extract_strided_slice %496 {offsets = [0, 128], sizes = [8, 128], strides = [1, 1]} : vector<8x512xf32> to vector<8x128xf32>
    %cst_219 = arith.constant 5.000000e-01 : f32
    %506 = vector.broadcast %cst_219 : f32 to vector<8x128xf32>
    %507 = arith.mulf %506, %505 : vector<8x128xf32>
    %508 = math.tanh %507 : vector<8x128xf32>
    %cst_220 = arith.constant 5.000000e-01 : f32
    %509 = vector.broadcast %cst_220 : f32 to vector<8x128xf32>
    %510 = arith.mulf %509, %508 : vector<8x128xf32>
    %cst_221 = arith.constant 5.000000e-01 : f32
    %511 = vector.broadcast %cst_221 : f32 to vector<8x128xf32>
    %512 = arith.addf %510, %511 : vector<8x128xf32>
    %513 = vector.extract_strided_slice %496 {offsets = [0, 256], sizes = [8, 128], strides = [1, 1]} : vector<8x512xf32> to vector<8x128xf32>
    %514 = math.tanh %513 : vector<8x128xf32>
    %515 = vector.extract_strided_slice %496 {offsets = [0, 384], sizes = [8, 128], strides = [1, 1]} : vector<8x512xf32> to vector<8x128xf32>
    %cst_222 = arith.constant 5.000000e-01 : f32
    %516 = vector.broadcast %cst_222 : f32 to vector<8x128xf32>
    %517 = arith.mulf %516, %515 : vector<8x128xf32>
    %518 = math.tanh %517 : vector<8x128xf32>
    %cst_223 = arith.constant 5.000000e-01 : f32
    %519 = vector.broadcast %cst_223 : f32 to vector<8x128xf32>
    %520 = arith.mulf %519, %518 : vector<8x128xf32>
    %cst_224 = arith.constant 5.000000e-01 : f32
    %521 = vector.broadcast %cst_224 : f32 to vector<8x128xf32>
    %522 = arith.addf %520, %521 : vector<8x128xf32>
    %523 = arith.mulf %512, %446 : vector<8x128xf32>
    %524 = arith.mulf %504, %514 : vector<8x128xf32>
    %525 = arith.addf %523, %524 : vector<8x128xf32>
    %526 = math.tanh %525 : vector<8x128xf32>
    %527 = arith.mulf %522, %526 : vector<8x128xf32>
    %528 = arith.truncf %527 : vector<8x128xf32> to vector<8x128xbf16>
    %c0_225 = arith.constant 0 : index
    %c0_226 = arith.constant 0 : index
    %529 = vector.load %arg6[%c0_225, %c0_226] : memref<8x256xbf16, #tpu.memory_space<vmem>>, vector<8x128xbf16>
    tpu.vector_store %arg6[%c0_225, %c0_226], %528 {strides = array<i32>} : memref<8x256xbf16, #tpu.memory_space<vmem>>, vector<8x128xbf16>,
    %530 = arith.truncf %488 : vector<8x128xf32> to vector<8x128xbf16>
    %c0_227 = arith.constant 0 : index
    %c128_228 = arith.constant 128 : index
    %531 = vector.load %arg6[%c0_227, %c128_228] : memref<8x256xbf16, #tpu.memory_space<vmem>>, vector<8x128xbf16>
    tpu.vector_store %arg6[%c0_227, %c128_228], %530 {strides = array<i32>} : memref<8x256xbf16, #tpu.memory_space<vmem>>, vector<8x128xbf16>,
    %c0_229 = arith.constant 0 : index
    %c0_230 = arith.constant 0 : index
    %532 = vector.load %arg6[%c0_229, %c0_230] : memref<8x256xbf16, #tpu.memory_space<vmem>>, vector<8x256xbf16>
    %c0_231 = arith.constant 0 : index
    %c0_232 = arith.constant 0 : index
    %c0_233 = arith.constant 0 : index
    %533 = vector.load %arg3[%c0_231, %c0_232, %c0_233] : memref<1x256x512xbf16, #tpu.memory_space<vmem>>, vector<1x256x512xbf16>
    %534 = vector.shape_cast %533 : vector<1x256x512xbf16> to vector<256x512xbf16>
    %cst_234 = arith.constant dense<0.000000e+00> : vector<8x512xf32>
    %535 = tpu.matmul %532, %534, %cst_234 {dimension_numbers = #tpu.dot_dimension_numbers<[1], [0], [0], [1], [0, 0, 1, 1], [], []>} : vector<8x256xbf16>, vector<256x512xbf16>, vector<8x512xf32> -> vector<8x512xf32>
    %536 = arith.addf %535, %6 : vector<8x512xf32>
    %537 = vector.extract_strided_slice %536 {offsets = [0, 0], sizes = [8, 128], strides = [1, 1]} : vector<8x512xf32> to vector<8x128xf32>
    %cst_235 = arith.constant 5.000000e-01 : f32
    %538 = vector.broadcast %cst_235 : f32 to vector<8x128xf32>
    %539 = arith.mulf %538, %537 : vector<8x128xf32>
    %540 = math.tanh %539 : vector<8x128xf32>
    %cst_236 = arith.constant 5.000000e-01 : f32
    %541 = vector.broadcast %cst_236 : f32 to vector<8x128xf32>
    %542 = arith.mulf %541, %540 : vector<8x128xf32>
    %cst_237 = arith.constant 5.000000e-01 : f32
    %543 = vector.broadcast %cst_237 : f32 to vector<8x128xf32>
    %544 = arith.addf %542, %543 : vector<8x128xf32>
    %545 = vector.extract_strided_slice %536 {offsets = [0, 128], sizes = [8, 128], strides = [1, 1]} : vector<8x512xf32> to vector<8x128xf32>
    %cst_238 = arith.constant 5.000000e-01 : f32
    %546 = vector.broadcast %cst_238 : f32 to vector<8x128xf32>
    %547 = arith.mulf %546, %545 : vector<8x128xf32>
    %548 = math.tanh %547 : vector<8x128xf32>
    %cst_239 = arith.constant 5.000000e-01 : f32
    %549 = vector.broadcast %cst_239 : f32 to vector<8x128xf32>
    %550 = arith.mulf %549, %548 : vector<8x128xf32>
    %cst_240 = arith.constant 5.000000e-01 : f32
    %551 = vector.broadcast %cst_240 : f32 to vector<8x128xf32>
    %552 = arith.addf %550, %551 : vector<8x128xf32>
    %553 = vector.extract_strided_slice %536 {offsets = [0, 256], sizes = [8, 128], strides = [1, 1]} : vector<8x512xf32> to vector<8x128xf32>
    %554 = math.tanh %553 : vector<8x128xf32>
    %555 = vector.extract_strided_slice %536 {offsets = [0, 384], sizes = [8, 128], strides = [1, 1]} : vector<8x512xf32> to vector<8x128xf32>
    %cst_241 = arith.constant 5.000000e-01 : f32
    %556 = vector.broadcast %cst_241 : f32 to vector<8x128xf32>
    %557 = arith.mulf %556, %555 : vector<8x128xf32>
    %558 = math.tanh %557 : vector<8x128xf32>
    %cst_242 = arith.constant 5.000000e-01 : f32
    %559 = vector.broadcast %cst_242 : f32 to vector<8x128xf32>
    %560 = arith.mulf %559, %558 : vector<8x128xf32>
    %cst_243 = arith.constant 5.000000e-01 : f32
    %561 = vector.broadcast %cst_243 : f32 to vector<8x128xf32>
    %562 = arith.addf %560, %561 : vector<8x128xf32>
    %563 = arith.mulf %552, %486 : vector<8x128xf32>
    %564 = arith.mulf %544, %554 : vector<8x128xf32>
    %565 = arith.addf %563, %564 : vector<8x128xf32>
    %566 = math.tanh %565 : vector<8x128xf32>
    %567 = arith.mulf %562, %566 : vector<8x128xf32>
    %c7_i32 = arith.constant 7 : i32
    %568 = arith.index_cast %c7_i32 : i32 to index
    %c0_244 = arith.constant 0 : index
    %c0_245 = arith.constant 0 : index
    %569 = vector.load %arg1[%568, %c0_244, %c0_245] : memref<8x8x512xbf16, #tpu.memory_space<vmem>>, vector<1x8x512xbf16>
    %570 = vector.shape_cast %569 : vector<1x8x512xbf16> to vector<8x512xbf16>
    %571 = arith.extf %570 : vector<8x512xbf16> to vector<8x512xf32>
    %572 = arith.truncf %527 : vector<8x128xf32> to vector<8x128xbf16>
    %c0_246 = arith.constant 0 : index
    %c0_247 = arith.constant 0 : index
    %573 = vector.load %arg2[%c0_246, %c0_247] : memref<128x512xbf16, #tpu.memory_space<vmem>>, vector<128x512xbf16>
    %cst_248 = arith.constant dense<0.000000e+00> : vector<8x512xf32>
    %574 = tpu.matmul %572, %573, %cst_248 {dimension_numbers = #tpu.dot_dimension_numbers<[1], [0], [0], [1], [0, 0, 1, 1], [], []>} : vector<8x128xbf16>, vector<128x512xbf16>, vector<8x512xf32> -> vector<8x512xf32>
    %575 = arith.addf %571, %574 : vector<8x512xf32>
    %576 = vector.extract_strided_slice %575 {offsets = [0, 0], sizes = [8, 128], strides = [1, 1]} : vector<8x512xf32> to vector<8x128xf32>
    %cst_249 = arith.constant 5.000000e-01 : f32
    %577 = vector.broadcast %cst_249 : f32 to vector<8x128xf32>
    %578 = arith.mulf %577, %576 : vector<8x128xf32>
    %579 = math.tanh %578 : vector<8x128xf32>
    %cst_250 = arith.constant 5.000000e-01 : f32
    %580 = vector.broadcast %cst_250 : f32 to vector<8x128xf32>
    %581 = arith.mulf %580, %579 : vector<8x128xf32>
    %cst_251 = arith.constant 5.000000e-01 : f32
    %582 = vector.broadcast %cst_251 : f32 to vector<8x128xf32>
    %583 = arith.addf %581, %582 : vector<8x128xf32>
    %584 = vector.extract_strided_slice %575 {offsets = [0, 128], sizes = [8, 128], strides = [1, 1]} : vector<8x512xf32> to vector<8x128xf32>
    %cst_252 = arith.constant 5.000000e-01 : f32
    %585 = vector.broadcast %cst_252 : f32 to vector<8x128xf32>
    %586 = arith.mulf %585, %584 : vector<8x128xf32>
    %587 = math.tanh %586 : vector<8x128xf32>
    %cst_253 = arith.constant 5.000000e-01 : f32
    %588 = vector.broadcast %cst_253 : f32 to vector<8x128xf32>
    %589 = arith.mulf %588, %587 : vector<8x128xf32>
    %cst_254 = arith.constant 5.000000e-01 : f32
    %590 = vector.broadcast %cst_254 : f32 to vector<8x128xf32>
    %591 = arith.addf %589, %590 : vector<8x128xf32>
    %592 = vector.extract_strided_slice %575 {offsets = [0, 256], sizes = [8, 128], strides = [1, 1]} : vector<8x512xf32> to vector<8x128xf32>
    %593 = math.tanh %592 : vector<8x128xf32>
    %594 = vector.extract_strided_slice %575 {offsets = [0, 384], sizes = [8, 128], strides = [1, 1]} : vector<8x512xf32> to vector<8x128xf32>
    %cst_255 = arith.constant 5.000000e-01 : f32
    %595 = vector.broadcast %cst_255 : f32 to vector<8x128xf32>
    %596 = arith.mulf %595, %594 : vector<8x128xf32>
    %597 = math.tanh %596 : vector<8x128xf32>
    %cst_256 = arith.constant 5.000000e-01 : f32
    %598 = vector.broadcast %cst_256 : f32 to vector<8x128xf32>
    %599 = arith.mulf %598, %597 : vector<8x128xf32>
    %cst_257 = arith.constant 5.000000e-01 : f32
    %600 = vector.broadcast %cst_257 : f32 to vector<8x128xf32>
    %601 = arith.addf %599, %600 : vector<8x128xf32>
    %602 = arith.mulf %591, %525 : vector<8x128xf32>
    %603 = arith.mulf %583, %593 : vector<8x128xf32>
    %604 = arith.addf %602, %603 : vector<8x128xf32>
    %605 = math.tanh %604 : vector<8x128xf32>
    %606 = arith.mulf %601, %605 : vector<8x128xf32>
    %607 = arith.truncf %606 : vector<8x128xf32> to vector<8x128xbf16>
    %c0_258 = arith.constant 0 : index
    %c0_259 = arith.constant 0 : index
    %608 = vector.load %arg6[%c0_258, %c0_259] : memref<8x256xbf16, #tpu.memory_space<vmem>>, vector<8x128xbf16>
    tpu.vector_store %arg6[%c0_258, %c0_259], %607 {strides = array<i32>} : memref<8x256xbf16, #tpu.memory_space<vmem>>, vector<8x128xbf16>,
    %609 = arith.truncf %567 : vector<8x128xf32> to vector<8x128xbf16>
    %c0_260 = arith.constant 0 : index
    %c128_261 = arith.constant 128 : index
    %610 = vector.load %arg6[%c0_260, %c128_261] : memref<8x256xbf16, #tpu.memory_space<vmem>>, vector<8x128xbf16>
    tpu.vector_store %arg6[%c0_260, %c128_261], %609 {strides = array<i32>} : memref<8x256xbf16, #tpu.memory_space<vmem>>, vector<8x128xbf16>,
    %c0_262 = arith.constant 0 : index
    %c0_263 = arith.constant 0 : index
    %611 = vector.load %arg6[%c0_262, %c0_263] : memref<8x256xbf16, #tpu.memory_space<vmem>>, vector<8x256xbf16>
    %c0_264 = arith.constant 0 : index
    %c0_265 = arith.constant 0 : index
    %c0_266 = arith.constant 0 : index
    %612 = vector.load %arg3[%c0_264, %c0_265, %c0_266] : memref<1x256x512xbf16, #tpu.memory_space<vmem>>, vector<1x256x512xbf16>
    %613 = vector.shape_cast %612 : vector<1x256x512xbf16> to vector<256x512xbf16>
    %cst_267 = arith.constant dense<0.000000e+00> : vector<8x512xf32>
    %614 = tpu.matmul %611, %613, %cst_267 {dimension_numbers = #tpu.dot_dimension_numbers<[1], [0], [0], [1], [0, 0, 1, 1], [], []>} : vector<8x256xbf16>, vector<256x512xbf16>, vector<8x512xf32> -> vector<8x512xf32>
    %615 = arith.addf %614, %6 : vector<8x512xf32>
    %616 = vector.extract_strided_slice %615 {offsets = [0, 0], sizes = [8, 128], strides = [1, 1]} : vector<8x512xf32> to vector<8x128xf32>
    %cst_268 = arith.constant 5.000000e-01 : f32
    %617 = vector.broadcast %cst_268 : f32 to vector<8x128xf32>
    %618 = arith.mulf %617, %616 : vector<8x128xf32>
    %619 = math.tanh %618 : vector<8x128xf32>
    %cst_269 = arith.constant 5.000000e-01 : f32
    %620 = vector.broadcast %cst_269 : f32 to vector<8x128xf32>
    %621 = arith.mulf %620, %619 : vector<8x128xf32>
    %cst_270 = arith.constant 5.000000e-01 : f32
    %622 = vector.broadcast %cst_270 : f32 to vector<8x128xf32>
    %623 = arith.addf %621, %622 : vector<8x128xf32>
    %624 = vector.extract_strided_slice %615 {offsets = [0, 128], sizes = [8, 128], strides = [1, 1]} : vector<8x512xf32> to vector<8x128xf32>
    %cst_271 = arith.constant 5.000000e-01 : f32
    %625 = vector.broadcast %cst_271 : f32 to vector<8x128xf32>
    %626 = arith.mulf %625, %624 : vector<8x128xf32>
    %627 = math.tanh %626 : vector<8x128xf32>
    %cst_272 = arith.constant 5.000000e-01 : f32
    %628 = vector.broadcast %cst_272 : f32 to vector<8x128xf32>
    %629 = arith.mulf %628, %627 : vector<8x128xf32>
    %cst_273 = arith.constant 5.000000e-01 : f32
    %630 = vector.broadcast %cst_273 : f32 to vector<8x128xf32>
    %631 = arith.addf %629, %630 : vector<8x128xf32>
    %632 = vector.extract_strided_slice %615 {offsets = [0, 256], sizes = [8, 128], strides = [1, 1]} : vector<8x512xf32> to vector<8x128xf32>
    %633 = math.tanh %632 : vector<8x128xf32>
    %634 = vector.extract_strided_slice %615 {offsets = [0, 384], sizes = [8, 128], strides = [1, 1]} : vector<8x512xf32> to vector<8x128xf32>
    %cst_274 = arith.constant 5.000000e-01 : f32
    %635 = vector.broadcast %cst_274 : f32 to vector<8x128xf32>
    %636 = arith.mulf %635, %634 : vector<8x128xf32>
    %637 = math.tanh %636 : vector<8x128xf32>
    %cst_275 = arith.constant 5.000000e-01 : f32
    %638 = vector.broadcast %cst_275 : f32 to vector<8x128xf32>
    %639 = arith.mulf %638, %637 : vector<8x128xf32>
    %cst_276 = arith.constant 5.000000e-01 : f32
    %640 = vector.broadcast %cst_276 : f32 to vector<8x128xf32>
    %641 = arith.addf %639, %640 : vector<8x128xf32>
    %642 = arith.mulf %631, %565 : vector<8x128xf32>
    %643 = arith.mulf %623, %633 : vector<8x128xf32>
    %644 = arith.addf %642, %643 : vector<8x128xf32>
    %645 = math.tanh %644 : vector<8x128xf32>
    %646 = arith.mulf %641, %645 : vector<8x128xf32>
    %c8_i32 = arith.constant 8 : i32
    %c0_277 = arith.constant 0 : index
    %c0_278 = arith.constant 0 : index
    %c0_279 = arith.constant 0 : index
    %647 = vector.load %arg7[%c0_277, %c0_278, %c0_279] : memref<2x8x128xf32, #tpu.memory_space<vmem>>, vector<1x8x128xf32>
    %648 = vector.shape_cast %647 : vector<1x8x128xf32> to vector<8x128xf32>
    %649 = vector.shape_cast %606 : vector<8x128xf32> to vector<1x8x128xf32>
    tpu.vector_store %arg7[%c0_277, %c0_278, %c0_279], %649 {strides = array<i32>} : memref<2x8x128xf32, #tpu.memory_space<vmem>>, vector<1x8x128xf32>,
    %c0_280 = arith.constant 0 : index
    %c0_281 = arith.constant 0 : index
    %c0_282 = arith.constant 0 : index
    %650 = vector.load %arg8[%c0_280, %c0_281, %c0_282] : memref<2x8x128xf32, #tpu.memory_space<vmem>>, vector<1x8x128xf32>
    %651 = vector.shape_cast %650 : vector<1x8x128xf32> to vector<8x128xf32>
    %652 = vector.shape_cast %604 : vector<8x128xf32> to vector<1x8x128xf32>
    tpu.vector_store %arg8[%c0_280, %c0_281, %c0_282], %652 {strides = array<i32>} : memref<2x8x128xf32, #tpu.memory_space<vmem>>, vector<1x8x128xf32>,
    %c1_283 = arith.constant 1 : index
    %c0_284 = arith.constant 0 : index
    %c0_285 = arith.constant 0 : index
    %653 = vector.load %arg7[%c1_283, %c0_284, %c0_285] : memref<2x8x128xf32, #tpu.memory_space<vmem>>, vector<1x8x128xf32>
    %654 = vector.shape_cast %653 : vector<1x8x128xf32> to vector<8x128xf32>
    %655 = vector.shape_cast %646 : vector<8x128xf32> to vector<1x8x128xf32>
    tpu.vector_store %arg7[%c1_283, %c0_284, %c0_285], %655 {strides = array<i32>} : memref<2x8x128xf32, #tpu.memory_space<vmem>>, vector<1x8x128xf32>,
    %c1_286 = arith.constant 1 : index
    %c0_287 = arith.constant 0 : index
    %c0_288 = arith.constant 0 : index
    %656 = vector.load %arg8[%c1_286, %c0_287, %c0_288] : memref<2x8x128xf32, #tpu.memory_space<vmem>>, vector<1x8x128xf32>
    %657 = vector.shape_cast %656 : vector<1x8x128xf32> to vector<8x128xf32>
    %658 = vector.shape_cast %644 : vector<8x128xf32> to vector<1x8x128xf32>
    tpu.vector_store %arg8[%c1_286, %c0_287, %c0_288], %658 {strides = array<i32>} : memref<2x8x128xf32, #tpu.memory_space<vmem>>, vector<1x8x128xf32>,
    %c0_289 = arith.constant 0 : index
    %c0_290 = arith.constant 0 : index
    %659 = vector.load %arg5[%c0_289, %c0_290] : memref<8x128xf32, #tpu.memory_space<vmem>>, vector<8x128xf32>
    tpu.vector_store %arg5[%c0_289, %c0_290], %646 {strides = array<i32>} : memref<8x128xf32, #tpu.memory_space<vmem>>, vector<8x128xf32>,
    return
  }
  func.func @transform_0(%arg0: i32) -> (i32, i32, i32) {
    %c0_i32 = arith.constant 0 : i32
    %c0_i32_0 = arith.constant 0 : i32
    %c0_i32_1 = arith.constant 0 : i32
    return %arg0, %c0_i32, %c0_i32_0 : i32, i32, i32
  }
  func.func @transform_1(%arg0: i32) -> (i32, i32) {
    %c0_i32 = arith.constant 0 : i32
    %c0_i32_0 = arith.constant 0 : i32
    %c0_i32_1 = arith.constant 0 : i32
    return %c0_i32, %c0_i32_0 : i32, i32
  }
  func.func @transform_2(%arg0: i32) -> (i32, i32, i32) {
    %c0_i32 = arith.constant 0 : i32
    %c0_i32_0 = arith.constant 0 : i32
    %c0_i32_1 = arith.constant 0 : i32
    %c0_i32_2 = arith.constant 0 : i32
    return %c0_i32, %c0_i32_0, %c0_i32_1 : i32, i32, i32
  }
  func.func @transform_3(%arg0: i32) -> (i32, i32, i32) {
    %c0_i32 = arith.constant 0 : i32
    %c0_i32_0 = arith.constant 0 : i32
    %c0_i32_1 = arith.constant 0 : i32
    %c0_i32_2 = arith.constant 0 : i32
    return %c0_i32, %c0_i32_0, %c0_i32_1 : i32, i32, i32
  }
  func.func @transform_4(%arg0: i32) -> (i32, i32) {
    %c0_i32 = arith.constant 0 : i32
    %c0_i32_0 = arith.constant 0 : i32
    %c0_i32_1 = arith.constant 0 : i32
    return %c0_i32, %c0_i32_0 : i32, i32
  }
}

</mosaic_0001>

<bundles_post_ra>
// kernel: lstm_forward.1
= control target key start
LH: loop header
LB: loop body
LE: loop exit
PB: predicated region body
PF: predicated region fallthrough
CT: control target
= control target key end

     0   :  { %9 = vsyncpa [#allocation6], 0  ;;  %s9863_s0 = inlined_call_operand.hbm [shape: bf16[8,8,512], index: 0, kind: input, shape index: {}]   ;;  %s9864_s1 = inlined_call_operand.hbm [shape: bf16[128,512], index: 1, kind: input, shape index: {}]   ;;  %s9865_s2 = inlined_call_operand.hbm [shape: bf16[1,256,512], index: 2, kind: input, shape index: {}]   ;;  %s9866_s3 = inlined_call_operand.hbm [shape: f32[1,1,512], index: 3, kind: input, shape index: {}]   ;;  %s9867_s4 = inlined_call_operand.hbm [shape: f32[8,128], index: 4, kind: output, shape index: {}]  }
   0x1   :  { %10 = vsyncpa [#allocation9], 0 }
   0x2   :  { %11 = vsyncpa [#allocation12], 0 }
   0x3   :  { %12 = vsyncpa [#allocation7], 0  ;;  %s8273_s15 = smov [#allocation8]   ;;  %s8274_s17 = smov [#allocation5]  }
   0x4   :  { %s30_s16 = sshll.u32 %s8273_s15, 4  ;;  %s18_s18 = sshll.u32 %s8274_s17, 4  ;;  %s31_s16 = int_to_ptr.vmem [resolvable:$true] %s30_s16  ;;  %s8307_s18 = int_to_ptr.vmem [resolvable:$true] %s18_s18 }
   0x5   :  { %s8155_s21 = scalar_lea.hbm %s9864_s1, 4096 }
   0x6   :  { %p8156_p0 = scmp.ne.s32.totalorder %s9864_s1, %s8155_s21  ;;  %p8159_p1 = scmp.lt.u32.totalorder %s8155_s21, %s9864_s1 }
   0x8   :  { %p8161_p2 = pnand %p8159_p1, %p8156_p0 }
   0xa   :  { %8164 = shalt.err (!%p8161_p2)
}
   0xb   :  { %s8165_s26 = scalar_lea.vmem %s31_s16, 4096  ;;  %p8170_p4 = scmp.lt.s32.totalorder %s31_s16, %s31_s16 }
   0xc   :  { %p8166_p3 = scmp.ne.s32.totalorder %s31_s16, %s8165_s26  ;;  %p8171_p5 = scmp.lt.s32.totalorder %s8165_s26, %s8165_s26 }
   0xe   :  { %p8172_p6 = por %p8171_p5, %p8170_p4 }
  0x10   :  { %p8173_p7 = pnand %p8172_p6, %p8166_p3 }
  0x12   :  { %8176 = shalt.err (!%p8173_p7)
}
  0x13   :  { %s8275_s27 = smov 256   ;;  %s8276_s28 = smov 16  }
  0x14   :  { %36 = dma.hbm_to_vmem [thread:$0]  %s9864_s1, 4096, %s31_s16, [#allocation9], %s8275_s27, %s8275_s27, %s8276_s28  }
  0x15   :  { %s8177_s7 = scalar_lea.hbm %s9863_s0, 2048 }
  0x16   :  { %p8178_p8 = scmp.ne.s32.totalorder %s9863_s0, %s8177_s7  ;;  %p8181_p9 = scmp.lt.u32.totalorder %s8177_s7, %s9863_s0 }
  0x18   :  { %p8183_p10 = pnand %p8181_p9, %p8178_p8 }
  0x1a   :  { %8186 = shalt.err (!%p8183_p10)
}
  0x1b   :  { %s8187_s12 = scalar_lea.vmem %s8307_s18, 2048  ;;  %p8192_p12 = scmp.lt.s32.totalorder %s8307_s18, %s8307_s18 }
  0x1c   :  { %p8188_p11 = scmp.ne.s32.totalorder %s8307_s18, %s8187_s12  ;;  %p8193_p13 = scmp.lt.s32.totalorder %s8187_s12, %s8187_s12 }
  0x1e   :  { %p8194_p0 = por %p8193_p13, %p8192_p12 }
  0x20   :  { %p8195_p1 = pnand %p8194_p0, %p8188_p11 }
  0x22   :  { %8198 = shalt.err (!%p8195_p1)
}
  0x23   :  { %24 = dma.hbm_to_vmem [thread:$0]  %s9863_s0, 2048, %s8307_s18, [#allocation6], %s8275_s27, %s8275_s27, %s8276_s28  }
  0x24   :  { %s8277_s14 = smov [#allocation10]   ;;  %s8278_s16 = smov [#allocation11]  }
  0x25   :  { %s42_s15 = sshll.u32 %s8277_s14, 4  ;;  %s55_s17 = sshll.u32 %s8278_s16, 4  ;;  %s43_s15 = int_to_ptr.vmem [resolvable:$true] %s42_s15  ;;  %s56_s17 = int_to_ptr.vmem [resolvable:$true] %s55_s17 }
  0x26   :  { %s8199_s21 = scalar_lea.hbm %s9865_s2, 8192 }
  0x27   :  { %p8200_p2 = scmp.ne.s32.totalorder %s9865_s2, %s8199_s21  ;;  %p8203_p3 = scmp.lt.u32.totalorder %s8199_s21, %s9865_s2 }
  0x29   :  { %p8205_p4 = pnand %p8203_p3, %p8200_p2 }
  0x2b   :  { %8208 = shalt.err (!%p8205_p4)
}
  0x2c   :  { %s8209_s0 = scalar_lea.vmem %s43_s15, 8192  ;;  %p8214_p6 = scmp.lt.s32.totalorder %s43_s15, %s43_s15 }
  0x2d   :  { %p8210_p5 = scmp.ne.s32.totalorder %s43_s15, %s8209_s0  ;;  %p8215_p7 = scmp.lt.s32.totalorder %s8209_s0, %s8209_s0 }
  0x2f   :  { %p8216_p8 = por %p8215_p7, %p8214_p6 }
  0x31   :  { %p8217_p9 = pnand %p8216_p8, %p8210_p5 }
  0x33   :  { %8220 = shalt.err (!%p8217_p9)
}
  0x34   :  { %48 = dma.hbm_to_vmem [thread:$0]  %s9865_s2, 8192, %s43_s15, [#allocation9], %s8275_s27, %s8275_s27, %s8276_s28  }
  0x35   :  { %s8221_s5 = scalar_lea.hbm %s9866_s3, 64 }
  0x36   :  { %p8222_p10 = scmp.ne.s32.totalorder %s9866_s3, %s8221_s5  ;;  %p8225_p11 = scmp.lt.u32.totalorder %s8221_s5, %s9866_s3 }
  0x38   :  { %p8227_p12 = pnand %p8225_p11, %p8222_p10 }
  0x3a   :  { %8230 = shalt.err (!%p8227_p12)
}
  0x3b   :  { %s8231_s10 = scalar_lea.vmem %s56_s17, 64  ;;  %p8236_p0 = scmp.lt.s32.totalorder %s56_s17, %s56_s17 }
  0x3c   :  { %p8232_p13 = scmp.ne.s32.totalorder %s56_s17, %s8231_s10  ;;  %p8237_p1 = scmp.lt.s32.totalorder %s8231_s10, %s8231_s10 }
  0x3e   :  { %p8238_p2 = por %p8237_p1, %p8236_p0 }
  0x40   :  { %p8239_p3 = pnand %p8238_p2, %p8232_p13 }
  0x42   :  { %8242 = shalt.err (!%p8239_p3)
}
  0x43   :  { %58 = dma.hbm_to_vmem [thread:$0]  %s9866_s3, 64, %s56_s17, [#allocation12]  }
  0x44   :  { %8265 = dma.done.wait [#allocation6], 2048  }
  0x45   :  { %8266 = vsyncadd [#allocation6], 4294965248 }
  0x46   :  { %8267 = dma.done.wait [#allocation9], 12288  }
  0x47   :  { %8268 = vsyncadd [#allocation9], 4294955008 }
  0x48   :  { %8269 = dma.done.wait [#allocation12], 64  }
  0x49   :  { %8270 = vsyncadd [#allocation12], 4294967232  ;;  %v9868_v0 = vmov 0   ;;  %v7371_v1 = vld [vmem:[#allocation8 + $0x4] ss:$16 sps:$4 sm:$0xff]   ;;  %v8280_v37 = vmov 0.0|0.0  }
  0x4a   :  { %339 = vmatprep.mubr.bf16.mxu0 %v9868_v0  ;;  %380 = vmatprep.mubr.bf16.mxu1 %v9868_v0  ;;  %v7373_v2 = vld [vmem:[#allocation8] ss:$16 sps:$4 sm:$0xff]   ;;  %v7374_v3 = vld [vmem:[#allocation8 + $0x24] ss:$16 sps:$4 sm:$0xff]   ;;  %v7376_v4 = vld [vmem:[#allocation8 + $0xc] ss:$16 sps:$4 sm:$0xff]  }
  0x4b   :  { %307 = vmatprep.subr.bf16.mxu0 %v7371_v1  ;;  %v7378_v5 = vld [vmem:[#allocation8 + $0x20] ss:$16 sps:$4 sm:$0xff]   ;;  %v7379_v6 = vld [vmem:[#allocation8 + $0x8] ss:$16 sps:$4 sm:$0xff]   ;;  %v7380_v7 = vld [vmem:[#allocation8 + $0x44] ss:$16 sps:$4 sm:$0xff]   ;;  %348 = vmatprep.subr.bf16.mxu1 %v7376_v4 }
  0x4c   :  { %308 = vmatpush1.bf16.msra.mxu0 %v7373_v2  ;;  %v7382_v8 = vld [vmem:[#allocation8 + $0x2c] ss:$16 sps:$4 sm:$0xff]   ;;  %349 = vmatpush1.bf16.msra.mxu1 %v7379_v6  ;;  %v7385_v9 = vld [vmem:[#allocation8 + $0x28] ss:$16 sps:$4 sm:$0xff]   ;;  %v7384_v10 = vld [vmem:[#allocation8 + $0x40] ss:$16 sps:$4 sm:$0xff]  }
  0x4d   :  { %309 = vmatprep.subr.bf16.mxu0 %v7374_v3  ;;  %350 = vmatprep.subr.bf16.mxu1 %v7382_v8  ;;  %v7386_v11 = vld [vmem:[#allocation8 + $0x64] ss:$16 sps:$4 sm:$0xff]   ;;  %v7388_v12 = vld [vmem:[#allocation8 + $0x4c] ss:$16 sps:$4 sm:$0xff]   ;;  %v7391_v13 = vld [vmem:[#allocation8 + $0x48] ss:$16 sps:$4 sm:$0xff]  }
  0x4e   :  { %v7390_v14 = vld [vmem:[#allocation8 + $0x60] ss:$16 sps:$4 sm:$0xff]   ;;  %v7394_v15 = vld [vmem:[#allocation8 + $0x6c] ss:$16 sps:$4 sm:$0xff]   ;;  %v7392_v16 = vld [vmem:[#allocation8 + $0x84] ss:$16 sps:$4 sm:$0xff]  }
  0x4f   :  { %v7396_v17 = vld [vmem:[#allocation8 + $0x80] ss:$16 sps:$4 sm:$0xff]   ;;  %v7397_v18 = vld [vmem:[#allocation8 + $0x68] ss:$16 sps:$4 sm:$0xff]   ;;  %v7400_v19 = vld [vmem:[#allocation8 + $0x8c] ss:$16 sps:$4 sm:$0xff]  }
  0x50   :  { %310 = vmatpush1.bf16.msra.mxu0 %v7378_v5  ;;  %351 = vmatpush1.bf16.msra.mxu1 %v7385_v9  ;;  %v7398_v20 = vld [vmem:[#allocation8 + $0xa4] ss:$16 sps:$4 sm:$0xff]   ;;  %v7403_v21 = vld [vmem:[#allocation8 + $0x88] ss:$16 sps:$4 sm:$0xff]   ;;  %v7402_v22 = vld [vmem:[#allocation8 + $0xa0] ss:$16 sps:$4 sm:$0xff]  }
  0x51   :  { %311 = vmatprep.subr.bf16.mxu0 %v7380_v7  ;;  %352 = vmatprep.subr.bf16.mxu1 %v7388_v12  ;;  %v7406_v23 = vld [vmem:[#allocation8 + $0xac] ss:$16 sps:$4 sm:$0xff]   ;;  %v7404_v24 = vld [vmem:[#allocation8 + $0xc4] ss:$16 sps:$4 sm:$0xff]   ;;  %v7409_v25 = vld [vmem:[#allocation8 + $0xa8] ss:$16 sps:$4 sm:$0xff]  }
  0x52   :  { %v7408_v26 = vld [vmem:[#allocation8 + $0xc0] ss:$16 sps:$4 sm:$0xff]   ;;  %v7412_v27 = vld [vmem:[#allocation8 + $0xcc] ss:$16 sps:$4 sm:$0xff]   ;;  %v7410_v28 = vld [vmem:[#allocation8 + $0xe4] ss:$16 sps:$4 sm:$0xff]  }
  0x53   :  { %v7415_v29 = vld [vmem:[#allocation8 + $0xc8] ss:$16 sps:$4 sm:$0xff]   ;;  %v7414_v30 = vld [vmem:[#allocation8 + $0xe0] ss:$16 sps:$4 sm:$0xff]   ;;  %v7416_v31 = vld [vmem:[#allocation8 + $0xec] ss:$16 sps:$4 sm:$0xff]  }
  0x54   :  { %312 = vmatpush1.bf16.msra.mxu0 %v7384_v10  ;;  %353 = vmatpush1.bf16.msra.mxu1 %v7391_v13  ;;  %v7421_v32 = vld [vmem:[#allocation10 + $0x4] ss:$16 sps:$4 sm:$0xff]   ;;  %v7418_v33 = vld [vmem:[#allocation8 + $0xe8] ss:$16 sps:$4 sm:$0xff]   ;;  %v7419_v34 = vld [vmem:[#allocation10] ss:$16 sps:$4 sm:$0xff]  }
  0x55   :  { %313 = vmatprep.subr.bf16.mxu0 %v7386_v11  ;;  %354 = vmatprep.subr.bf16.mxu1 %v7394_v15  ;;  %v7424_v35 = vld [vmem:[#allocation10 + $0xc] ss:$16 sps:$4 sm:$0xff]   ;;  %v7427_v36 = vld [vmem:[#allocation10 + $0x24] ss:$16 sps:$4 sm:$0xff]   ;;  %v7422_v38 = vld [vmem:[#allocation10 + $0x8] ss:$16 sps:$4 sm:$0xff]  }
  0x56   :  { %v7425_v39 = vld [vmem:[#allocation10 + $0x20] ss:$16 sps:$4 sm:$0xff]   ;;  %v7430_v40 = vld [vmem:[#allocation10 + $0x2c] ss:$16 sps:$4 sm:$0xff]   ;;  %v7433_v41 = vld [vmem:[#allocation10 + $0x44] ss:$16 sps:$4 sm:$0xff]  }
  0x57   :  { %v7428_v42 = vld [vmem:[#allocation10 + $0x28] ss:$16 sps:$4 sm:$0xff]   ;;  %v7431_v43 = vld [vmem:[#allocation10 + $0x40] ss:$16 sps:$4 sm:$0xff]   ;;  %v7436_v44 = vld [vmem:[#allocation10 + $0x4c] ss:$16 sps:$4 sm:$0xff]  }
  0x58   :  { %314 = vmatpush1.bf16.msra.mxu0 %v7390_v14  ;;  %355 = vmatpush1.bf16.msra.mxu1 %v7397_v18  ;;  %v7434_v45 = vld [vmem:[#allocation10 + $0x48] ss:$16 sps:$4 sm:$0xff]   ;;  %v7439_v46 = vld [vmem:[#allocation10 + $0x64] ss:$16 sps:$4 sm:$0xff]   ;;  %v7437_v47 = vld [vmem:[#allocation10 + $0x60] ss:$16 sps:$4 sm:$0xff]  }
  0x59   :  { %315 = vmatprep.subr.bf16.mxu0 %v7392_v16  ;;  %356 = vmatprep.subr.bf16.mxu1 %v7400_v19  ;;  %v7442_v48 = vld [vmem:[#allocation10 + $0x6c] ss:$16 sps:$4 sm:$0xff]   ;;  %v7445_v49 = vld [vmem:[#allocation10 + $0x84] ss:$16 sps:$4 sm:$0xff]   ;;  %v8373_v50 = vld [vmem:[#allocation10 + $0x68] ss:$16 sps:$4 sm:$0xff]  }
  0x5a   :  { %v8375_v51 = vld [vmem:[#allocation10 + $0x80] ss:$16 sps:$4 sm:$0xff]   ;;  %v8377_v52 = vld [vmem:[#allocation10 + $0x8c] ss:$16 sps:$4 sm:$0xff]   ;;  %v8379_v53 = vld [vmem:[#allocation10 + $0xa4] ss:$16 sps:$4 sm:$0xff]  }
  0x5b   :  { %v8381_v54 = vld [vmem:[#allocation10 + $0x88] ss:$16 sps:$4 sm:$0xff]   ;;  %v8383_v55 = vld [vmem:[#allocation10 + $0xa0] ss:$16 sps:$4 sm:$0xff]   ;;  %v8385_v56 = vld [vmem:[#allocation10 + $0xac] ss:$16 sps:$4 sm:$0xff]  }
  0x5c   :  { %316 = vmatpush1.bf16.msra.mxu0 %v7396_v17  ;;  %357 = vmatpush1.bf16.msra.mxu1 %v7403_v21  ;;  %v8388_v57 = vld [vmem:[#allocation10 + $0xc4] ss:$16 sps:$4 sm:$0xff]   ;;  %v8393_v58 = vld [vmem:[#allocation10 + $0xa8] ss:$16 sps:$4 sm:$0xff]   ;;  %v8395_v59 = vld [vmem:[#allocation10 + $0xc0] ss:$16 sps:$4 sm:$0xff]  }
  0x5d   :  { %317 = vmatprep.subr.bf16.mxu0 %v7398_v20  ;;  %358 = vmatprep.subr.bf16.mxu1 %v7406_v23  ;;  %v8397_v60 = vld [vmem:[#allocation10 + $0xcc] ss:$16 sps:$4 sm:$0xff]   ;;  %v8403_v61 = vld [vmem:[#allocation10 + $0xc8] ss:$16 sps:$4 sm:$0xff]   ;;  %v8409_v62 = vld [vmem:[#allocation10 + $0xe4] ss:$16 sps:$4 sm:$0xff]  }
  0x5e   :  { %v8411_v63 = vld [vmem:[#allocation10 + $0xec] ss:$16 sps:$4 sm:$0xff]   ;;  %v8413_v1 = vld [vmem:[#allocation10 + $0xe0] ss:$16 sps:$4 sm:$0xff]   ;;  %v8415_v2 = vld [vmem:[#allocation10 + $0xe8] ss:$16 sps:$4 sm:$0xff]  }
  0x5f   :  { %v8421_v3 = vld [vmem:[#allocation10 + $0x104] ss:$16 sps:$4 sm:$0xff]   ;;  %v8423_v4 = vld [vmem:[#allocation10 + $0x10c] ss:$16 sps:$4 sm:$0xff]   ;;  %v8425_v5 = vld [vmem:[#allocation10 + $0x100] ss:$16 sps:$4 sm:$0xff]  }
  0x60   :  { %318 = vmatpush1.bf16.msra.mxu0 %v7402_v22  ;;  %359 = vmatpush1.bf16.msra.mxu1 %v7409_v25  ;;  %v8427_v6 = vld [vmem:[#allocation10 + $0x108] ss:$16 sps:$4 sm:$0xff]   ;;  %v8433_v7 = vld [vmem:[#allocation10 + $0x124] ss:$16 sps:$4 sm:$0xff]   ;;  %v8435_v8 = vld [vmem:[#allocation10 + $0x12c] ss:$16 sps:$4 sm:$0xff]  }
  0x61   :  { %319 = vmatprep.subr.bf16.mxu0 %v7404_v24  ;;  %360 = vmatprep.subr.bf16.mxu1 %v7412_v27  ;;  %v8437_v9 = vld [vmem:[#allocation10 + $0x120] ss:$16 sps:$4 sm:$0xff]   ;;  %v8439_v10 = vld [vmem:[#allocation10 + $0x128] ss:$16 sps:$4 sm:$0xff]   ;;  %v8445_v11 = vld [vmem:[#allocation10 + $0x144] ss:$16 sps:$4 sm:$0xff]  }
  0x62   :  { %v8447_v12 = vld [vmem:[#allocation10 + $0x14c] ss:$16 sps:$4 sm:$0xff]   ;;  %v8449_v13 = vld [vmem:[#allocation10 + $0x140] ss:$16 sps:$4 sm:$0xff]   ;;  %v8451_v14 = vld [vmem:[#allocation10 + $0x148] ss:$16 sps:$4 sm:$0xff]  }
  0x63   :  { %v8457_v15 = vld [vmem:[#allocation10 + $0x164] ss:$16 sps:$4 sm:$0xff]   ;;  %v8459_v16 = vld [vmem:[#allocation10 + $0x16c] ss:$16 sps:$4 sm:$0xff]   ;;  %v8461_v17 = vld [vmem:[#allocation10 + $0x160] ss:$16 sps:$4 sm:$0xff]  }
  0x64   :  { %320 = vmatpush1.bf16.msra.mxu0 %v7408_v26  ;;  %361 = vmatpush1.bf16.msra.mxu1 %v7415_v29  ;;  %v8463_v18 = vld [vmem:[#allocation10 + $0x168] ss:$16 sps:$4 sm:$0xff]   ;;  %v8469_v19 = vld [vmem:[#allocation10 + $0x184] ss:$16 sps:$4 sm:$0xff]   ;;  %v8471_v20 = vld [vmem:[#allocation10 + $0x18c] ss:$16 sps:$4 sm:$0xff]  }
  0x65   :  { %321 = vmatprep.subr.bf16.mxu0 %v7410_v28  ;;  %362 = vmatprep.subr.bf16.mxu1 %v7416_v31  ;;  %v8473_v21 = vld [vmem:[#allocation10 + $0x180] ss:$16 sps:$4 sm:$0xff]   ;;  %v8475_v22 = vld [vmem:[#allocation10 + $0x188] ss:$16 sps:$4 sm:$0xff]   ;;  %v8481_v23 = vld [vmem:[#allocation10 + $0x1a4] ss:$16 sps:$4 sm:$0xff]  }
  0x66   :  { %v8483_v24 = vld [vmem:[#allocation10 + $0x1ac] ss:$16 sps:$4 sm:$0xff]   ;;  %v8485_v25 = vld [vmem:[#allocation10 + $0x1a0] ss:$16 sps:$4 sm:$0xff]   ;;  %v8487_v26 = vld [vmem:[#allocation10 + $0x1a8] ss:$16 sps:$4 sm:$0xff]  }
  0x67   :  { %v8493_v27 = vld [vmem:[#allocation10 + $0x1c4] ss:$16 sps:$4 sm:$0xff]   ;;  %v8495_v28 = vld [vmem:[#allocation10 + $0x1cc] ss:$16 sps:$4 sm:$0xff]   ;;  %v8497_v29 = vld [vmem:[#allocation10 + $0x1c0] ss:$16 sps:$4 sm:$0xff]  }
  0x68   :  { %322 = vmatpush1.bf16.msra.mxu0 %v7414_v30  ;;  %363 = vmatpush1.bf16.msra.mxu1 %v7418_v33  ;;  %10060 = vst [vmem:[#allocation18_spill] sm:$0xff] %v8497_v29  ;;  %v8499_v30 = vld [vmem:[#allocation10 + $0x1c8] ss:$16 sps:$4 sm:$0xff]   ;;  %v8505_v31 = vld [vmem:[#allocation10 + $0x1e4] ss:$16 sps:$4 sm:$0xff]   ;;  %s8281_s3 = smov [#allocation13]  }
  0x69   :  { %807 = vmatprep.subr.bf16.mxu0 %v7421_v32  ;;  %848 = vmatprep.subr.bf16.mxu1 %v7424_v35  ;;  %10061 = vst [vmem:[#allocation19_spill] sm:$0xff] %v8499_v30  ;;  %10062 = vst [vmem:[#allocation20_spill] sm:$0xff] %v8505_v31  ;;  %v8507_v32 = vld [vmem:[#allocation10 + $0x1ec] ss:$16 sps:$4 sm:$0xff]   ;;  %v8509_v33 = vld [vmem:[#allocation10 + $0x1e0] ss:$16 sps:$4 sm:$0xff]  }
  0x6a   :  { %10063 = vst [vmem:[#allocation21_spill] sm:$0xff] %v8507_v32  ;;  %10064 = vst [vmem:[#allocation22_spill] sm:$0xff] %v8509_v33  ;;  %v8107_v35 = vld [vmem:[#allocation8 + $0x4] ss:$16 sps:$4 sm:$0xff]   ;;  %s6511_s28 = sshll.u32 %s8281_s3, 4  ;;  %s6512_s28 = int_to_ptr.vmem [resolvable:$true] %s6511_s28 }
  0x6b   :  { %340 = vmatmul.mubr.bf16.vlgmr.msra.gmra.mrb[0].mxu0 %v8280_v37  ;;  %381 = vmatmul.mubr.bf16.vlgmr.msra.gmra.mrb[0].mxu1 %v8280_v37  ;;  %s8243_s11 = scalar_lea.vmem %s6512_s28, 128  ;;  %p8248_p5 = scmp.lt.s32.totalorder %s6512_s28, %s6512_s28 }
  0x6c   :  { %808 = vmatpush1.bf16.msra.mxu0 %v7419_v34  ;;  %839 = vmatprep.mubr.bf16.mxu0 %v8280_v37  ;;  %v8511_v34 = vld [vmem:[#allocation10 + $0x1e8] ss:$16 sps:$4 sm:$0xff]   ;;  %p8244_p4 = scmp.ne.s32.totalorder %s6512_s28, %s8243_s11  ;;  %p8249_p6 = scmp.lt.s32.totalorder %s8243_s11, %s8243_s11 }
  0x6d   :  { %809 = vmatprep.subr.bf16.mxu0 %v7427_v36  ;;  %849 = vmatpush1.bf16.msra.mxu1 %v7422_v38  ;;  %10065 = vst [vmem:[#allocation23_spill] sm:$0xff] %v8511_v34  ;;  %v8108_v36 = vld [vmem:[#allocation8 + $0xc] ss:$16 sps:$4 sm:$0xff]  }
  0x6e   :  { %880 = vmatprep.mubr.bf16.mxu1 %v8280_v37  ;;  %850 = vmatprep.subr.bf16.mxu1 %v7430_v40  ;;  %v108_v37 = vld [vmem:[#allocation5] sm:$0xff]  ;;  %p8250_p7 = por %p8249_p6, %p8248_p5 }
  0x6f   :  { %v110_v38 = vunpack.c.l.bf16 %v108_v37  ;;  %v111_v40 = vunpack.c.h.bf16 %v108_v37 }
  0x70   :  { %810 = vmatpush1.bf16.msra.mxu0 %v7425_v39  ;;  %v109_v39 = vld [vmem:[#allocation5 + $0x8] sm:$0xff]  ;;  %p8251_p8 = pnand %p8250_p7, %p8244_p4 }
  0x71   :  { %811 = vmatprep.subr.bf16.mxu0 %v7433_v41  ;;  %851 = vmatpush1.bf16.msra.mxu1 %v7428_v42  ;;  %v112_v42 = vunpack.c.l.bf16 %v109_v39 }
  0x72   :  { %852 = vmatprep.subr.bf16.mxu1 %v7436_v44 }
  0x74   :  { %812 = vmatpush1.bf16.msra.mxu0 %v7431_v43 }
  0x75   :  { %813 = vmatprep.subr.bf16.mxu0 %v7439_v46  ;;  %853 = vmatpush1.bf16.msra.mxu1 %v7434_v45 }
  0x76   :  { %854 = vmatprep.subr.bf16.mxu1 %v7442_v48 }
  0x78   :  { %814 = vmatpush1.bf16.msra.mxu0 %v7437_v47 }
  0x79   :  { %815 = vmatprep.subr.bf16.mxu0 %v7445_v49  ;;  %855 = vmatpush1.bf16.msra.mxu1 %v8373_v50 }
  0x7a   :  { %856 = vmatprep.subr.bf16.mxu1 %v8377_v52 }
  0x7c   :  { %816 = vmatpush1.bf16.msra.mxu0 %v8375_v51 }
  0x7d   :  { %817 = vmatprep.subr.bf16.mxu0 %v8379_v53  ;;  %857 = vmatpush1.bf16.msra.mxu1 %v8381_v54 }
  0x7e   :  { %858 = vmatprep.subr.bf16.mxu1 %v8385_v56 }
  0x80   :  { %818 = vmatpush1.bf16.msra.mxu0 %v8383_v55 }
  0x81   :  { %819 = vmatprep.subr.bf16.mxu0 %v8388_v57  ;;  %859 = vmatpush1.bf16.msra.mxu1 %v8393_v58 }
  0x82   :  { %860 = vmatprep.subr.bf16.mxu1 %v8397_v60 }
  0x84   :  { %820 = vmatpush1.bf16.msra.mxu0 %v8395_v59 }
  0x85   :  { %861 = vmatpush1.bf16.msra.mxu1 %v8403_v61  ;;  %821 = vmatprep.subr.bf16.mxu0 %v8409_v62 }
  0x86   :  { %862 = vmatprep.subr.bf16.mxu1 %v8411_v63 }
  0x88   :  { %822 = vmatpush1.bf16.msra.mxu0 %v8413_v1 }
  0x89   :  { %863 = vmatpush1.bf16.msra.mxu1 %v8415_v2  ;;  %823 = vmatprep.subr.bf16.mxu0 %v8421_v3 }
  0x8a   :  { %864 = vmatprep.subr.bf16.mxu1 %v8423_v4 }
  0x8c   :  { %824 = vmatpush1.bf16.msra.mxu0 %v8425_v5 }
  0x8d   :  { %865 = vmatpush1.bf16.msra.mxu1 %v8427_v6  ;;  %825 = vmatprep.subr.bf16.mxu0 %v8433_v7 }
  0x8e   :  { %866 = vmatprep.subr.bf16.mxu1 %v8435_v8 }
  0x90   :  { %826 = vmatpush1.bf16.msra.mxu0 %v8437_v9 }
  0x91   :  { %867 = vmatpush1.bf16.msra.mxu1 %v8439_v10  ;;  %827 = vmatprep.subr.bf16.mxu0 %v8445_v11 }
  0x92   :  { %868 = vmatprep.subr.bf16.mxu1 %v8447_v12 }
  0x94   :  { %828 = vmatpush1.bf16.msra.mxu0 %v8449_v13 }
  0x95   :  { %869 = vmatpush1.bf16.msra.mxu1 %v8451_v14  ;;  %829 = vmatprep.subr.bf16.mxu0 %v8457_v15 }
  0x96   :  { %870 = vmatprep.subr.bf16.mxu1 %v8459_v16 }
  0x98   :  { %830 = vmatpush1.bf16.msra.mxu0 %v8461_v17 }
  0x99   :  { %871 = vmatpush1.bf16.msra.mxu1 %v8463_v18  ;;  %831 = vmatprep.subr.bf16.mxu0 %v8469_v19 }
  0x9a   :  { %872 = vmatprep.subr.bf16.mxu1 %v8471_v20 }
  0x9c   :  { %832 = vmatpush1.bf16.msra.mxu0 %v8473_v21 }
  0x9d   :  { %873 = vmatpush1.bf16.msra.mxu1 %v8475_v22  ;;  %833 = vmatprep.subr.bf16.mxu0 %v8481_v23 }
  0x9e   :  { %874 = vmatprep.subr.bf16.mxu1 %v8483_v24 }
  0xa0   :  { %834 = vmatpush1.bf16.msra.mxu0 %v8485_v25 }
  0xa1   :  { %875 = vmatpush1.bf16.msra.mxu1 %v8487_v26  ;;  %835 = vmatprep.subr.bf16.mxu0 %v8493_v27 }
  0xa2   :  { %876 = vmatprep.subr.bf16.mxu1 %v8495_v28 }
  0xa4   :  { %836 = vmatpush1.bf16.msra.mxu0 %v8497_v29 }
  0xa5   :  { %877 = vmatpush1.bf16.msra.mxu1 %v8499_v30  ;;  %837 = vmatprep.subr.bf16.mxu0 %v8505_v31 }
  0xa6   :  { %878 = vmatprep.subr.bf16.mxu1 %v8507_v32 }
  0xa8   :  { %838 = vmatpush1.bf16.msra.mxu0 %v8509_v33 }
  0xa9   :  { %879 = vmatpush1.bf16.msra.mxu1 %v8511_v34  ;;  %1106 = vmatprep.subr.bf16.mxu0 %v8107_v35  ;;  %v113_v35 = vunpack.c.h.bf16 %v109_v39 }
  0xaa   :  { %1147 = vmatprep.subr.bf16.mxu1 %v8108_v36 }
 0x13e   :  { %v341_v41 = vpop.f32.mrb[0].mxu0  ;;  %v382_v49 = vpop.f32.mrb[0].mxu1 }
 0x13f   :  { %v389_v43 = vadd.f32 %v341_v41, %v110_v38  ;;  %v343_v44 = vpop.f32.mrb[1].mxu0  ;;  %v391_v33 = vadd.f32 %v382_v49, %v112_v42  ;;  %v384_v34 = vpop.f32.mrb[1].mxu1  ;;  %v10066_v49 = vmov 0  }
 0x140   :  { %v390_v45 = vadd.f32 %v343_v44, %v111_v40  ;;  %v345_v46 = vpop.f32.mrb[2].mxu0  ;;  %v386_v32 = vpop.f32.mrb[2].mxu1  ;;  %v392_v31 = vadd.f32 %v384_v34, %v113_v35  ;;  %v8113_v35 = vld [vmem:[#allocation8 + $0x20] ss:$16 sps:$4 sm:$0xff]  }
 0x141   :  { %v393_v47 = vmul.f32 0.5, %v389_v43  ;;  %v346_v48 = vpop.f32.mrb[3].mxu0  ;;  %v387_v36 = vpop.f32.mrb[3].mxu1 }
 0x142   :  { %v397_v0 = vmul.f32 0.5, %v390_v45  ;;  %v402_v37 = vmul.f32 0.5, %v392_v31  ;;  %v8112_v48 = vld [vmem:[#allocation8 + $0x2c] ss:$16 sps:$4 sm:$0xff]   ;;  %v8114_v36 = vld [vmem:[#allocation8 + $0x28] ss:$16 sps:$4 sm:$0xff]  }
 0x143   :  { %7947 = vtanh.f32 %v393_v47  ;;  %v8111_v47 = vld [vmem:[#allocation8 + $0x24] ss:$16 sps:$4 sm:$0xff]  }
 0x144   :  { %7949 = vtanh.f32 %v397_v0 }
 0x145   :  { %7951 = vtanh.f32 %v391_v33 }
 0x146   :  { %7953 = vtanh.f32 %v402_v37  ;;  %v8115_v37 = vld [vmem:[#allocation8 + $0x44] ss:$16 sps:$4 sm:$0xff]  }
 0x14d   :  { %v7948_v30 = vpop.eup %7947 }
 0x14e   :  { %v7950_v29 = vpop.eup %7949  ;;  %v395_v38 = vmul.f32 0.5, %v7948_v30  ;;  %v8110_v30 = vld [vmem:[#allocation8 + $0x8] ss:$16 sps:$4 sm:$0xff]  }
 0x14f   :  { %v7952_v41 = vpop.eup %7951  ;;  %v399_v40 = vmul.f32 0.5, %v7950_v29  ;;  %v8109_v29 = vld [vmem:[#allocation8] ss:$16 sps:$4 sm:$0xff]  }
 0x150   :  { %v396_v43 = vadd.f32 0.5, %v395_v38  ;;  %v7954_v32 = vpop.eup %7953  ;;  %v8116_v38 = vld [vmem:[#allocation8 + $0x4c] ss:$16 sps:$4 sm:$0xff]  }
 0x151   :  { %v400_v44 = vadd.f32 0.5, %v399_v40  ;;  %v404_v0 = vmul.f32 0.5, %v7954_v32  ;;  %v8118_v40 = vld [vmem:[#allocation8 + $0x48] ss:$16 sps:$4 sm:$0xff]   ;;  %v8123_v32 = vld [vmem:[#allocation8 + $0x84] ss:$16 sps:$4 sm:$0xff]  }
 0x152   :  { %v407_v46 = vmul.f32 %v7952_v41, %v396_v43  ;;  %v8117_v41 = vld [vmem:[#allocation8 + $0x40] ss:$16 sps:$4 sm:$0xff]   ;;  %v8119_v43 = vld [vmem:[#allocation8 + $0x64] ss:$16 sps:$4 sm:$0xff]  }
 0x153   :  { %v406_v45 = vmul.f32 0.0, %v400_v44  ;;  %v405_v39 = vadd.f32 0.5, %v404_v0  ;;  %v8120_v44 = vld [vmem:[#allocation8 + $0x6c] ss:$16 sps:$4 sm:$0xff]  }
 0x154   :  { %v8124_v0 = vld [vmem:[#allocation8 + $0x8c] ss:$16 sps:$4 sm:$0xff]  }
 0x155   :  { %v8517_v42 = vadd.f32 %v407_v46, %v406_v45  ;;  %v8121_v46 = vld [vmem:[#allocation8 + $0x60] ss:$16 sps:$4 sm:$0xff]   ;;  %v8122_v45 = vld [vmem:[#allocation8 + $0x68] ss:$16 sps:$4 sm:$0xff]  }
 0x157   :  { %7955 = vtanh.f32 %v8517_v42 }
 0x161   :  { %v7956_v33 = vpop.eup %7955 }
 0x162   :  { %v410_v34 = vmul.f32 %v7956_v33, %v405_v39  ;;  %v8125_v39 = vld [vmem:[#allocation8 + $0x80] ss:$16 sps:$4 sm:$0xff]   ;;  %v8126_v33 = vld [vmem:[#allocation8 + $0x88] ss:$16 sps:$4 sm:$0xff]  }
 0x164   :  { %v8520_v31 = vpack.c.bf16 %v410_v34, %v410_v34  ;;  %v8127_v34 = vld [vmem:[#allocation8 + $0xa4] ss:$16 sps:$4 sm:$0xff]  }
 0x166   :  { %840 = vmatmul.mubr.bf16.vlgmr.msra.gmra.mrb[4].mxu0 %v8520_v31  ;;  %881 = vmatmul.mubr.bf16.vlgmr.msra.gmra.mrb[4].mxu1 %v8520_v31 }
 0x167   :  { %1107 = vmatpush1.bf16.msra.mxu0 %v8109_v29  ;;  %1148 = vmatpush1.bf16.msra.mxu1 %v8110_v30  ;;  %v8128_v29 = vld [vmem:[#allocation8 + $0xac] ss:$16 sps:$4 sm:$0xff]   ;;  %v8129_v30 = vld [vmem:[#allocation8 + $0xa0] ss:$16 sps:$4 sm:$0xff]  }
 0x168   :  { %1108 = vmatprep.subr.bf16.mxu0 %v8111_v47  ;;  %1149 = vmatprep.subr.bf16.mxu1 %v8112_v48  ;;  %v8130_v47 = vld [vmem:[#allocation8 + $0xa8] ss:$16 sps:$4 sm:$0xff]   ;;  %v8131_v48 = vld [vmem:[#allocation8 + $0xc4] ss:$16 sps:$4 sm:$0xff]  }
 0x169   :  { %1138 = vmatprep.mubr.bf16.mxu0 %v10066_v49  ;;  %1179 = vmatprep.mubr.bf16.mxu1 %v10066_v49 }
 0x16b   :  { %1109 = vmatpush1.bf16.msra.mxu0 %v8113_v35  ;;  %1150 = vmatpush1.bf16.msra.mxu1 %v8114_v36  ;;  %v8132_v35 = vld [vmem:[#allocation8 + $0xcc] ss:$16 sps:$4 sm:$0xff]   ;;  %v8133_v36 = vld [vmem:[#allocation8 + $0xc0] ss:$16 sps:$4 sm:$0xff]  }
 0x16c   :  { %1110 = vmatprep.subr.bf16.mxu0 %v8115_v37  ;;  %1151 = vmatprep.subr.bf16.mxu1 %v8116_v38  ;;  %v8134_v37 = vld [vmem:[#allocation8 + $0xc8] ss:$16 sps:$4 sm:$0xff]   ;;  %v8135_v38 = vld [vmem:[#allocation8 + $0xe4] ss:$16 sps:$4 sm:$0xff]  }
 0x16f   :  { %1111 = vmatpush1.bf16.msra.mxu0 %v8117_v41  ;;  %1152 = vmatpush1.bf16.msra.mxu1 %v8118_v40  ;;  %v8136_v41 = vld [vmem:[#allocation8 + $0xec] ss:$16 sps:$4 sm:$0xff]   ;;  %v8137_v40 = vld [vmem:[#allocation8 + $0xe0] ss:$16 sps:$4 sm:$0xff]  }
 0x170   :  { %1112 = vmatprep.subr.bf16.mxu0 %v8119_v43  ;;  %1153 = vmatprep.subr.bf16.mxu1 %v8120_v44  ;;  %v8138_v43 = vld [vmem:[#allocation8 + $0xe8] ss:$16 sps:$4 sm:$0xff]   ;;  %v8139_v44 = vld [vmem:[#allocation10 + $0x4] ss:$16 sps:$4 sm:$0xff]  }
 0x173   :  { %1113 = vmatpush1.bf16.msra.mxu0 %v8121_v46  ;;  %1154 = vmatpush1.bf16.msra.mxu1 %v8122_v45  ;;  %v8140_v46 = vld [vmem:[#allocation10 + $0xc] ss:$16 sps:$4 sm:$0xff]   ;;  %v8141_v45 = vld [vmem:[#allocation10] ss:$16 sps:$4 sm:$0xff]  }
 0x174   :  { %1114 = vmatprep.subr.bf16.mxu0 %v8123_v32  ;;  %1155 = vmatprep.subr.bf16.mxu1 %v8124_v0  ;;  %v8142_v32 = vld [vmem:[#allocation10 + $0x8] ss:$16 sps:$4 sm:$0xff]   ;;  %v8143_v0 = vld [vmem:[#allocation10 + $0x24] ss:$16 sps:$4 sm:$0xff]  }
 0x177   :  { %1115 = vmatpush1.bf16.msra.mxu0 %v8125_v39  ;;  %1156 = vmatpush1.bf16.msra.mxu1 %v8126_v33  ;;  %v8144_v39 = vld [vmem:[#allocation10 + $0x2c] ss:$16 sps:$4 sm:$0xff]   ;;  %v8145_v33 = vld [vmem:[#allocation10 + $0x20] ss:$16 sps:$4 sm:$0xff]  }
 0x178   :  { %1116 = vmatprep.subr.bf16.mxu0 %v8127_v34  ;;  %1157 = vmatprep.subr.bf16.mxu1 %v8128_v29  ;;  %v8146_v34 = vld [vmem:[#allocation10 + $0x28] ss:$16 sps:$4 sm:$0xff]   ;;  %v8147_v29 = vld [vmem:[#allocation10 + $0x44] ss:$16 sps:$4 sm:$0xff]  }
 0x17b   :  { %1117 = vmatpush1.bf16.msra.mxu0 %v8129_v30  ;;  %1158 = vmatpush1.bf16.msra.mxu1 %v8130_v47  ;;  %v8148_v30 = vld [vmem:[#allocation10 + $0x4c] ss:$16 sps:$4 sm:$0xff]   ;;  %v8149_v47 = vld [vmem:[#allocation10 + $0x40] ss:$16 sps:$4 sm:$0xff]  }
 0x17c   :  { %1118 = vmatprep.subr.bf16.mxu0 %v8131_v48  ;;  %1159 = vmatprep.subr.bf16.mxu1 %v8132_v35  ;;  %v8150_v48 = vld [vmem:[#allocation10 + $0x48] ss:$16 sps:$4 sm:$0xff]   ;;  %v8152_v35 = vld [vmem:[#allocation10 + $0x6c] ss:$16 sps:$4 sm:$0xff]  }
 0x17f   :  { %1119 = vmatpush1.bf16.msra.mxu0 %v8133_v36  ;;  %1160 = vmatpush1.bf16.msra.mxu1 %v8134_v37  ;;  %v8153_v36 = vld [vmem:[#allocation10 + $0x60] ss:$16 sps:$4 sm:$0xff]   ;;  %v8154_v37 = vld [vmem:[#allocation10 + $0x84] ss:$16 sps:$4 sm:$0xff]  }
 0x180   :  { %1120 = vmatprep.subr.bf16.mxu0 %v8135_v38  ;;  %1161 = vmatprep.subr.bf16.mxu1 %v8136_v41 }
 0x183   :  { %1121 = vmatpush1.bf16.msra.mxu0 %v8137_v40  ;;  %1162 = vmatpush1.bf16.msra.mxu1 %v8138_v43  ;;  %v908_v40 = vld [vmem:[#allocation5 + $0x10] sm:$0xff] }
 0x184   :  { %1606 = vmatprep.subr.bf16.mxu0 %v8139_v44  ;;  %1647 = vmatprep.subr.bf16.mxu1 %v8140_v46  ;;  %v910_v44 = vunpack.c.l.bf16 %v908_v40 }
 0x186   :  { %1139 = vmatmul.mubr.bf16.vlgmr.msra.gmra.mrb[8].mxu0 %v8520_v31  ;;  %1180 = vmatmul.mubr.bf16.vlgmr.msra.gmra.mrb[8].mxu1 %v8520_v31  ;;  %v8151_v31 = vld [vmem:[#allocation10 + $0x64] ss:$16 sps:$4 sm:$0xff]  }
 0x187   :  { %1607 = vmatpush1.bf16.msra.mxu0 %v8141_v45  ;;  %1648 = vmatpush1.bf16.msra.mxu1 %v8142_v32  ;;  %v909_v45 = vld [vmem:[#allocation5 + $0x18] sm:$0xff]  ;;  %v911_v32 = vunpack.c.h.bf16 %v908_v40 }
 0x188   :  { %1608 = vmatprep.subr.bf16.mxu0 %v8143_v0  ;;  %1649 = vmatprep.subr.bf16.mxu1 %v8144_v39  ;;  %v8643_v40 = vld [vmem:[#allocation8 + $0x68] ss:$16 sps:$4 sm:$0xff]  }
 0x18b   :  { %1609 = vmatpush1.bf16.msra.mxu0 %v8145_v33  ;;  %1650 = vmatpush1.bf16.msra.mxu1 %v8146_v34  ;;  %v912_v34 = vunpack.c.l.bf16 %v909_v45 }
 0x18c   :  { %1610 = vmatprep.subr.bf16.mxu0 %v8147_v29  ;;  %1651 = vmatprep.subr.bf16.mxu1 %v8148_v30 }
 0x18f   :  { %1611 = vmatpush1.bf16.msra.mxu0 %v8149_v47  ;;  %1652 = vmatpush1.bf16.msra.mxu1 %v8150_v48 }
 0x190   :  { %1612 = vmatprep.subr.bf16.mxu0 %v8151_v31  ;;  %1653 = vmatprep.subr.bf16.mxu1 %v8152_v35 }
 0x193   :  { %1613 = vmatpush1.bf16.msra.mxu0 %v8153_v36  ;;  %1654 = vmatpush1.bf16.msra.mxu1 %v8373_v50  ;;  %v10067_v50 = vld [vmem:[#allocation18_spill] sm:$0xff] }
 0x194   :  { %1614 = vmatprep.subr.bf16.mxu0 %v8154_v37  ;;  %1655 = vmatprep.subr.bf16.mxu1 %v8377_v52  ;;  %v10069_v52 = vld [vmem:[#allocation20_spill] sm:$0xff] }
 0x197   :  { %1615 = vmatpush1.bf16.msra.mxu0 %v8375_v51  ;;  %1656 = vmatpush1.bf16.msra.mxu1 %v8381_v54  ;;  %v10068_v51 = vld [vmem:[#allocation19_spill] sm:$0xff]  ;;  %v10071_v54 = vld [vmem:[#allocation22_spill] sm:$0xff] }
 0x198   :  { %1616 = vmatprep.subr.bf16.mxu0 %v8379_v53  ;;  %1657 = vmatprep.subr.bf16.mxu1 %v8385_v56  ;;  %v10070_v53 = vld [vmem:[#allocation21_spill] sm:$0xff] }
 0x199   :  { %v8576_v56 = vld [vmem:[#allocation8 + $0x4] ss:$16 sps:$4 sm:$0xff]  }
 0x19b   :  { %1617 = vmatpush1.bf16.msra.mxu0 %v8383_v55  ;;  %1658 = vmatpush1.bf16.msra.mxu1 %v8393_v58  ;;  %v10072_v55 = vld [vmem:[#allocation23_spill] sm:$0xff]  ;;  %v82_v58 = vlaneseq }
 0x19c   :  { %1618 = vmatprep.subr.bf16.mxu0 %v8388_v57  ;;  %1659 = vmatprep.subr.bf16.mxu1 %v8397_v60  ;;  %v8578_v57 = vld [vmem:[#allocation8 + $0xc] ss:$16 sps:$4 sm:$0xff]  }
 0x19f   :  { %1619 = vmatpush1.bf16.msra.mxu0 %v8395_v59  ;;  %1660 = vmatpush1.bf16.msra.mxu1 %v8403_v61  ;;  %v83_v59 = vshrl.u32 %v82_v58, 7  ;;  %v80_v61 = vld [vmem:[#allocation11] sm:$0xf] }
 0x1a0   :  { %1620 = vmatprep.subr.bf16.mxu0 %v8409_v62  ;;  %1661 = vmatprep.subr.bf16.mxu1 %v8411_v63 }
 0x1a1   :  { %v84_v60 = vsub.s32 0, %v83_v59  ;;  %v88_v62 = vsub.s32 1, %v83_v59 }
 0x1a3   :  { %1621 = vmatpush1.bf16.msra.mxu0 %v8413_v1  ;;  %1662 = vmatpush1.bf16.msra.mxu1 %v8415_v2  ;;  %v8582_v63 = vrot.slane %v80_v61, %v84_v60  ;;  %v92_v1 = vsub.s32 2, %v83_v59  ;;  %v8584_v2 = vrot.slane %v80_v61, %v88_v62 }
 0x1a4   :  { %1622 = vmatprep.subr.bf16.mxu0 %v8421_v3  ;;  %1663 = vmatprep.subr.bf16.mxu1 %v8423_v4 }
 0x1a5   :  { %10073 = vst [vmem:[#allocation18_spill] sm:$0xff] %v8582_v63  ;;  %10074 = vst [vmem:[#allocation19_spill] sm:$0xff] %v8584_v2 }
 0x1a7   :  { %1623 = vmatpush1.bf16.msra.mxu0 %v8425_v5  ;;  %1664 = vmatpush1.bf16.msra.mxu1 %v8427_v6  ;;  %v8587_v6 = vrot.slane %v80_v61, %v92_v1 }
 0x1a8   :  { %1624 = vmatprep.subr.bf16.mxu0 %v8433_v7  ;;  %1665 = vmatprep.subr.bf16.mxu1 %v8435_v8  ;;  %v96_v8 = vsub.s32 3, %v83_v59 }
 0x1a9   :  { %10075 = vst [vmem:[#allocation20_spill] sm:$0xff] %v8587_v6 }
 0x1ab   :  { %1625 = vmatpush1.bf16.msra.mxu0 %v8437_v9  ;;  %1666 = vmatpush1.bf16.msra.mxu1 %v8439_v10 }
 0x1ac   :  { %1626 = vmatprep.subr.bf16.mxu0 %v8445_v11  ;;  %1667 = vmatprep.subr.bf16.mxu1 %v8447_v12 }
 0x1af   :  { %1627 = vmatpush1.bf16.msra.mxu0 %v8449_v13  ;;  %1668 = vmatpush1.bf16.msra.mxu1 %v8451_v14 }
 0x1b0   :  { %1628 = vmatprep.subr.bf16.mxu0 %v8457_v15  ;;  %1669 = vmatprep.subr.bf16.mxu1 %v8459_v16 }
 0x1b3   :  { %1629 = vmatpush1.bf16.msra.mxu0 %v8461_v17  ;;  %1670 = vmatpush1.bf16.msra.mxu1 %v8463_v18  ;;  %v8591_v18 = vrot.slane %v80_v61, %v96_v8 }
 0x1b4   :  { %1630 = vmatprep.subr.bf16.mxu0 %v8469_v19  ;;  %1671 = vmatprep.subr.bf16.mxu1 %v8471_v20 }
 0x1b5   :  { %10076 = vst [vmem:[#allocation21_spill] sm:$0xff] %v8591_v18 }
 0x1b7   :  { %1631 = vmatpush1.bf16.msra.mxu0 %v8473_v21  ;;  %1672 = vmatpush1.bf16.msra.mxu1 %v8475_v22 }
 0x1b8   :  { %1632 = vmatprep.subr.bf16.mxu0 %v8481_v23  ;;  %1673 = vmatprep.subr.bf16.mxu1 %v8483_v24 }
 0x1bb   :  { %1633 = vmatpush1.bf16.msra.mxu0 %v8485_v25  ;;  %1674 = vmatpush1.bf16.msra.mxu1 %v8487_v26 }
 0x1bc   :  { %1634 = vmatprep.subr.bf16.mxu0 %v8493_v27  ;;  %1675 = vmatprep.subr.bf16.mxu1 %v8495_v28 }
 0x1bf   :  { %1635 = vmatpush1.bf16.msra.mxu0 %v10067_v50  ;;  %1676 = vmatpush1.bf16.msra.mxu1 %v10068_v51 }
 0x1c0   :  { %1636 = vmatprep.subr.bf16.mxu0 %v10069_v52  ;;  %1677 = vmatprep.subr.bf16.mxu1 %v10070_v53 }
 0x1c3   :  { %1637 = vmatpush1.bf16.msra.mxu0 %v10071_v54  ;;  %1678 = vmatpush1.bf16.msra.mxu1 %v10072_v55  ;;  %v913_v55 = vunpack.c.h.bf16 %v909_v45  ;;  %v8655_v45 = vld [vmem:[#allocation8 + $0x88] ss:$16 sps:$4 sm:$0xff]  }
 0x1c4   :  { %1905 = vmatprep.subr.bf16.mxu0 %v8576_v56  ;;  %1946 = vmatprep.subr.bf16.mxu1 %v8578_v57 }
 0x239   :  { %v841_v3 = vpop.f32.mrb[4].mxu0  ;;  %v882_v4 = vpop.f32.mrb[4].mxu1 }
 0x23a   :  { %v842_v5 = vadd.f32 %v841_v3, %v8582_v63  ;;  %v843_v7 = vpop.f32.mrb[5].mxu0  ;;  %v884_v9 = vpop.f32.mrb[5].mxu1  ;;  %v883_v17 = vadd.f32 %v882_v4, %v8587_v6 }
 0x23b   :  { %v844_v10 = vadd.f32 %v843_v7, %v8584_v2  ;;  %v845_v11 = vpop.f32.mrb[6].mxu0  ;;  %v886_v12 = vpop.f32.mrb[6].mxu1  ;;  %v885_v19 = vadd.f32 %v884_v9, %v8591_v18 }
 0x23c   :  { %v889_v13 = vmul.f32 0.5, %v842_v5  ;;  %v846_v14 = vpop.f32.mrb[7].mxu0  ;;  %v887_v15 = vpop.f32.mrb[7].mxu1 }
 0x23d   :  { %v893_v16 = vmul.f32 0.5, %v844_v10  ;;  %v898_v20 = vmul.f32 0.5, %v885_v19 }
 0x23e   :  { %7957 = vtanh.f32 %v889_v13 }
 0x23f   :  { %7959 = vtanh.f32 %v893_v16  ;;  %v8601_v16 = vld [vmem:[#allocation8] ss:$16 sps:$4 sm:$0xff]  }
 0x240   :  { %7961 = vtanh.f32 %v883_v17  ;;  %v8603_v17 = vld [vmem:[#allocation8 + $0x8] ss:$16 sps:$4 sm:$0xff]  }
 0x241   :  { %7963 = vtanh.f32 %v898_v20  ;;  %v8607_v20 = vld [vmem:[#allocation8 + $0x24] ss:$16 sps:$4 sm:$0xff]  }
 0x248   :  { %v7958_v21 = vpop.eup %7957 }
 0x249   :  { %v7960_v22 = vpop.eup %7959  ;;  %v891_v23 = vmul.f32 0.5, %v7958_v21  ;;  %v8609_v21 = vld [vmem:[#allocation8 + $0x2c] ss:$16 sps:$4 sm:$0xff]  }
 0x24a   :  { %v895_v24 = vmul.f32 0.5, %v7960_v22  ;;  %v7962_v26 = vpop.eup %7961  ;;  %v8617_v22 = vld [vmem:[#allocation8 + $0x28] ss:$16 sps:$4 sm:$0xff]  }
 0x24b   :  { %v892_v25 = vadd.f32 0.5, %v891_v23  ;;  %v7964_v43 = vpop.eup %7963  ;;  %v8621_v23 = vld [vmem:[#allocation8 + $0x44] ss:$16 sps:$4 sm:$0xff]  }
 0x24c   :  { %v896_v27 = vadd.f32 0.5, %v895_v24  ;;  %v900_v46 = vmul.f32 0.5, %v7964_v43  ;;  %v8623_v24 = vld [vmem:[#allocation8 + $0x4c] ss:$16 sps:$4 sm:$0xff]   ;;  %v8647_v43 = vld [vmem:[#allocation8 + $0x84] ss:$16 sps:$4 sm:$0xff]  }
 0x24d   :  { %v903_v28 = vmul.f32 %v7962_v26, %v892_v25  ;;  %v8629_v25 = vld [vmem:[#allocation8 + $0x40] ss:$16 sps:$4 sm:$0xff]   ;;  %v8631_v26 = vld [vmem:[#allocation8 + $0x48] ss:$16 sps:$4 sm:$0xff]  }
 0x24e   :  { %v902_v38 = vmul.f32 0.0, %v896_v27  ;;  %v901_v47 = vadd.f32 0.5, %v900_v46  ;;  %v8635_v27 = vld [vmem:[#allocation8 + $0x64] ss:$16 sps:$4 sm:$0xff]   ;;  %v8653_v46 = vld [vmem:[#allocation8 + $0x80] ss:$16 sps:$4 sm:$0xff]  }
 0x250   :  { %v8594_v41 = vadd.f32 %v903_v28, %v902_v38  ;;  %v8637_v28 = vld [vmem:[#allocation8 + $0x6c] ss:$16 sps:$4 sm:$0xff]   ;;  %v8641_v38 = vld [vmem:[#allocation8 + $0x60] ss:$16 sps:$4 sm:$0xff]  }
 0x252   :  { %7965 = vtanh.f32 %v8594_v41 }
 0x259   :  { %v1140_v0 = vpop.f32.mrb[8].mxu0  ;;  %v1181_v39 = vpop.f32.mrb[8].mxu1 }
 0x25a   :  { %v1188_v33 = vadd.f32 %v1140_v0, %v910_v44  ;;  %v1142_v29 = vpop.f32.mrb[9].mxu0  ;;  %v1183_v30 = vpop.f32.mrb[9].mxu1  ;;  %v1190_v54 = vadd.f32 %v1181_v39, %v912_v34  ;;  %v8649_v44 = vld [vmem:[#allocation8 + $0x8c] ss:$16 sps:$4 sm:$0xff]   ;;  %v8665_v39 = vld [vmem:[#allocation8 + $0xa0] ss:$16 sps:$4 sm:$0xff]  }
 0x25b   :  { %v1189_v48 = vadd.f32 %v1142_v29, %v911_v32  ;;  %v1144_v31 = vpop.f32.mrb[10].mxu0  ;;  %v1185_v35 = vpop.f32.mrb[10].mxu1  ;;  %v1191_v59 = vadd.f32 %v1183_v30, %v913_v55  ;;  %v8659_v32 = vld [vmem:[#allocation8 + $0xa4] ss:$16 sps:$4 sm:$0xff]   ;;  %v8661_v0 = vld [vmem:[#allocation8 + $0xac] ss:$16 sps:$4 sm:$0xff]  }
 0x25c   :  { %v7966_v36 = vpop.eup %7965  ;;  %v1192_v37 = vmul.f32 0.5, %v1188_v33  ;;  %v1145_v50 = vpop.f32.mrb[11].mxu0  ;;  %v8667_v33 = vld [vmem:[#allocation8 + $0xa8] ss:$16 sps:$4 sm:$0xff]   ;;  %v8671_v34 = vld [vmem:[#allocation8 + $0xc4] ss:$16 sps:$4 sm:$0xff]  }
 0x25d   :  { %v1186_v51 = vpop.f32.mrb[11].mxu1  ;;  %v1196_v52 = vmul.f32 0.5, %v1189_v48  ;;  %v906_v53 = vmul.f32 %v7966_v36, %v901_v47  ;;  %v1201_v60 = vmul.f32 0.5, %v1191_v59  ;;  %v8673_v29 = vld [vmem:[#allocation8 + $0xcc] ss:$16 sps:$4 sm:$0xff]  }
 0x25e   :  { %7967 = vtanh.f32 %v1192_v37  ;;  %v8677_v30 = vld [vmem:[#allocation8 + $0xc0] ss:$16 sps:$4 sm:$0xff]   ;;  %v8679_v47 = vld [vmem:[#allocation8 + $0xc8] ss:$16 sps:$4 sm:$0xff]   ;;  %v8683_v48 = vld [vmem:[#allocation8 + $0xe4] ss:$16 sps:$4 sm:$0xff]  }
 0x25f   :  { %7969 = vtanh.f32 %v1196_v52  ;;  %v7349_v58 = vpack.c.bf16 %v906_v53, %v906_v53  ;;  %v8685_v31 = vld [vmem:[#allocation8 + $0xec] ss:$16 sps:$4 sm:$0xff]   ;;  %v8689_v35 = vld [vmem:[#allocation8 + $0xe0] ss:$16 sps:$4 sm:$0xff]   ;;  %v8691_v36 = vld [vmem:[#allocation8 + $0xe8] ss:$16 sps:$4 sm:$0xff]  }
 0x260   :  { %7971 = vtanh.f32 %v1190_v54  ;;  %v8699_v37 = vld [vmem:[#allocation10 + $0x4] ss:$16 sps:$4 sm:$0xff]   ;;  %v8701_v50 = vld [vmem:[#allocation10 + $0xc] ss:$16 sps:$4 sm:$0xff]   ;;  %v8703_v51 = vld [vmem:[#allocation10] ss:$16 sps:$4 sm:$0xff]  }
 0x261   :  { %1638 = vmatprep.mubr.bf16.mxu0 %v7349_v58  ;;  %1679 = vmatprep.mubr.bf16.mxu1 %v7349_v58  ;;  %7973 = vtanh.f32 %v1201_v60  ;;  %v8705_v52 = vld [vmem:[#allocation10 + $0x8] ss:$16 sps:$4 sm:$0xff]   ;;  %v8711_v53 = vld [vmem:[#allocation10 + $0x24] ss:$16 sps:$4 sm:$0xff]   ;;  %v8713_v54 = vld [vmem:[#allocation10 + $0x2c] ss:$16 sps:$4 sm:$0xff]  }
 0x262   :  { %v8715_v55 = vld [vmem:[#allocation10 + $0x20] ss:$16 sps:$4 sm:$0xff]   ;;  %v8717_v58 = vld [vmem:[#allocation10 + $0x28] ss:$16 sps:$4 sm:$0xff]   ;;  %v8723_v59 = vld [vmem:[#allocation10 + $0x44] ss:$16 sps:$4 sm:$0xff]  }
 0x263   :  { %v8725_v60 = vld [vmem:[#allocation10 + $0x4c] ss:$16 sps:$4 sm:$0xff]  }
 0x264   :  { %10077 = vst [vmem:[#allocation22_spill] sm:$0xff] %v8725_v60 }
 0x268   :  { %v7968_v61 = vpop.eup %7967 }
 0x269   :  { %v7970_v62 = vpop.eup %7969  ;;  %v1194_v1 = vmul.f32 0.5, %v7968_v61  ;;  %v8727_v61 = vld [vmem:[#allocation10 + $0x40] ss:$16 sps:$4 sm:$0xff]  }
 0x26a   :  { %v1198_v3 = vmul.f32 0.5, %v7970_v62  ;;  %v7972_v5 = vpop.eup %7971  ;;  %10078 = vst [vmem:[#allocation23_spill] sm:$0xff] %v8727_v61  ;;  %v8729_v62 = vld [vmem:[#allocation10 + $0x48] ss:$16 sps:$4 sm:$0xff]  }
 0x26b   :  { %v1195_v4 = vadd.f32 0.5, %v1194_v1  ;;  %v7974_v11 = vpop.eup %7973  ;;  %10079 = vst [vmem:[#allocation24_spill] sm:$0xff] %v8729_v62  ;;  %v8735_v1 = vld [vmem:[#allocation10 + $0x64] ss:$16 sps:$4 sm:$0xff]  }
 0x26c   :  { %v1199_v7 = vadd.f32 0.5, %v1198_v3  ;;  %v1203_v12 = vmul.f32 0.5, %v7974_v11  ;;  %10080 = vst [vmem:[#allocation25_spill] sm:$0xff] %v8735_v1  ;;  %v8737_v3 = vld [vmem:[#allocation10 + $0x6c] ss:$16 sps:$4 sm:$0xff]  }
 0x26d   :  { %v1206_v8 = vmul.f32 %v7972_v5, %v1195_v4  ;;  %10081 = vst [vmem:[#allocation26_spill] sm:$0xff] %v8737_v3  ;;  %v8739_v4 = vld [vmem:[#allocation10 + $0x60] ss:$16 sps:$4 sm:$0xff]   ;;  %v8741_v5 = vld [vmem:[#allocation10 + $0x68] ss:$16 sps:$4 sm:$0xff]  }
 0x26e   :  { %v1205_v9 = vmul.f32 %v1199_v7, %v8517_v42  ;;  %v1204_v13 = vadd.f32 0.5, %v1203_v12  ;;  %v8615_v42 = vld [vmem:[#allocation8 + $0x20] ss:$16 sps:$4 sm:$0xff]   ;;  %10082 = vst [vmem:[#allocation27_spill] sm:$0xff] %v8739_v4  ;;  %10083 = vst [vmem:[#allocation28_spill] sm:$0xff] %v8741_v5 }
 0x26f   :  { %v8747_v7 = vld [vmem:[#allocation10 + $0x84] ss:$16 sps:$4 sm:$0xff]   ;;  %v8753_v11 = vld [vmem:[#allocation10 + $0x88] ss:$16 sps:$4 sm:$0xff]   ;;  %v8759_v12 = vld [vmem:[#allocation10 + $0xa0] ss:$16 sps:$4 sm:$0xff]  }
 0x270   :  { %v8598_v10 = vadd.f32 %v1206_v8, %v1205_v9  ;;  %10084 = vst [vmem:[#allocation29_spill] sm:$0xff] %v8747_v7  ;;  %v8749_v8 = vld [vmem:[#allocation10 + $0x8c] ss:$16 sps:$4 sm:$0xff]   ;;  %v8751_v9 = vld [vmem:[#allocation10 + $0x80] ss:$16 sps:$4 sm:$0xff]   ;;  %10087 = vst [vmem:[#allocation32_spill] sm:$0xff] %v8753_v11 }
 0x271   :  { %10085 = vst [vmem:[#allocation30_spill] sm:$0xff] %v8749_v8  ;;  %10086 = vst [vmem:[#allocation31_spill] sm:$0xff] %v8751_v9 }
 0x272   :  { %7975 = vtanh.f32 %v8598_v10  ;;  %10088 = vst [vmem:[#allocation33_spill] sm:$0xff] %v8759_v12 }
 0x27c   :  { %v7976_v14 = vpop.eup %7975 }
 0x27d   :  { %v1209_v15 = vmul.f32 %v7976_v14, %v1204_v13  ;;  %v8761_v13 = vld [vmem:[#allocation10 + $0xa4] ss:$16 sps:$4 sm:$0xff]   ;;  %v8763_v14 = vld [vmem:[#allocation10 + $0xa8] ss:$16 sps:$4 sm:$0xff]  }
 0x27e   :  { %10089 = vst [vmem:[#allocation34_spill] sm:$0xff] %v8761_v13  ;;  %10090 = vst [vmem:[#allocation35_spill] sm:$0xff] %v8763_v14 }
 0x27f   :  { %v8605_v19 = vpack.c.bf16 %v1209_v15, %v1209_v15  ;;  %v8765_v15 = vld [vmem:[#allocation10 + $0xac] ss:$16 sps:$4 sm:$0xff]  }
 0x280   :  { %10091 = vst [vmem:[#allocation36_spill] sm:$0xff] %v8765_v15 }
 0x281   :  { %1639 = vmatmul.mubr.bf16.vlgmr.msra.gmra.mrb[12].mxu0 %v8605_v19  ;;  %1680 = vmatmul.mubr.bf16.vlgmr.msra.gmra.mrb[12].mxu1 %v8605_v19 }
 0x282   :  { %1906 = vmatpush1.bf16.msra.mxu0 %v8601_v16  ;;  %1947 = vmatpush1.bf16.msra.mxu1 %v8603_v17 }
 0x283   :  { %1907 = vmatprep.subr.bf16.mxu0 %v8607_v20  ;;  %1948 = vmatprep.subr.bf16.mxu1 %v8609_v21 }
 0x284   :  { %1937 = vmatprep.mubr.bf16.mxu0 %v10066_v49  ;;  %1978 = vmatprep.mubr.bf16.mxu1 %v10066_v49 }
 0x286   :  { %1908 = vmatpush1.bf16.msra.mxu0 %v8615_v42  ;;  %1949 = vmatpush1.bf16.msra.mxu1 %v8617_v22 }
 0x287   :  { %1909 = vmatprep.subr.bf16.mxu0 %v8621_v23  ;;  %1950 = vmatprep.subr.bf16.mxu1 %v8623_v24 }
 0x28a   :  { %1910 = vmatpush1.bf16.msra.mxu0 %v8629_v25  ;;  %1951 = vmatpush1.bf16.msra.mxu1 %v8631_v26 }
 0x28b   :  { %1911 = vmatprep.subr.bf16.mxu0 %v8635_v27  ;;  %1952 = vmatprep.subr.bf16.mxu1 %v8637_v28 }
 0x28e   :  { %1912 = vmatpush1.bf16.msra.mxu0 %v8641_v38  ;;  %1953 = vmatpush1.bf16.msra.mxu1 %v8643_v40 }
 0x28f   :  { %1913 = vmatprep.subr.bf16.mxu0 %v8647_v43  ;;  %1954 = vmatprep.subr.bf16.mxu1 %v8649_v44 }
 0x292   :  { %1914 = vmatpush1.bf16.msra.mxu0 %v8653_v46  ;;  %1955 = vmatpush1.bf16.msra.mxu1 %v8655_v45 }
 0x293   :  { %1915 = vmatprep.subr.bf16.mxu0 %v8659_v32  ;;  %1956 = vmatprep.subr.bf16.mxu1 %v8661_v0 }
 0x296   :  { %1916 = vmatpush1.bf16.msra.mxu0 %v8665_v39  ;;  %1957 = vmatpush1.bf16.msra.mxu1 %v8667_v33 }
 0x297   :  { %1917 = vmatprep.subr.bf16.mxu0 %v8671_v34  ;;  %1958 = vmatprep.subr.bf16.mxu1 %v8673_v29 }
 0x29a   :  { %1918 = vmatpush1.bf16.msra.mxu0 %v8677_v30  ;;  %1959 = vmatpush1.bf16.msra.mxu1 %v8679_v47 }
 0x29b   :  { %1919 = vmatprep.subr.bf16.mxu0 %v8683_v48  ;;  %1960 = vmatprep.subr.bf16.mxu1 %v8685_v31 }
 0x29e   :  { %1920 = vmatpush1.bf16.msra.mxu0 %v8689_v35  ;;  %1961 = vmatpush1.bf16.msra.mxu1 %v8691_v36 }
 0x29f   :  { %2405 = vmatprep.subr.bf16.mxu0 %v8699_v37  ;;  %2446 = vmatprep.subr.bf16.mxu1 %v8701_v50 }
 0x2a1   :  { %1938 = vmatmul.mubr.bf16.vlgmr.msra.gmra.mrb[16].mxu0 %v8605_v19  ;;  %1979 = vmatmul.mubr.bf16.vlgmr.msra.gmra.mrb[16].mxu1 %v8605_v19  ;;  %v8767_v19 = vld [vmem:[#allocation10 + $0xc4] ss:$16 sps:$4 sm:$0xff]  }
 0x2a2   :  { %2406 = vmatpush1.bf16.msra.mxu0 %v8703_v51  ;;  %2447 = vmatpush1.bf16.msra.mxu1 %v8705_v52  ;;  %10092 = vst [vmem:[#allocation37_spill] sm:$0xff] %v8767_v19 }
 0x2a3   :  { %2407 = vmatprep.subr.bf16.mxu0 %v8711_v53  ;;  %2448 = vmatprep.subr.bf16.mxu1 %v8713_v54 }
 0x2a6   :  { %2408 = vmatpush1.bf16.msra.mxu0 %v8715_v55  ;;  %2449 = vmatpush1.bf16.msra.mxu1 %v8717_v58 }
 0x2a7   :  { %2409 = vmatprep.subr.bf16.mxu0 %v8723_v59  ;;  %2450 = vmatprep.subr.bf16.mxu1 %v8725_v60 }
 0x2aa   :  { %2410 = vmatpush1.bf16.msra.mxu0 %v8727_v61  ;;  %2451 = vmatpush1.bf16.msra.mxu1 %v8729_v62 }
 0x2ab   :  { %2411 = vmatprep.subr.bf16.mxu0 %v8735_v1  ;;  %2452 = vmatprep.subr.bf16.mxu1 %v8737_v3 }
 0x2ae   :  { %2412 = vmatpush1.bf16.msra.mxu0 %v8739_v4  ;;  %2453 = vmatpush1.bf16.msra.mxu1 %v8741_v5  ;;  %v8770_v5 = vld [vmem:[#allocation10 + $0xcc] ss:$16 sps:$4 sm:$0xff]  }
 0x2af   :  { %2413 = vmatprep.subr.bf16.mxu0 %v8747_v7  ;;  %2454 = vmatprep.subr.bf16.mxu1 %v8749_v8  ;;  %10093 = vst [vmem:[#allocation38_spill] sm:$0xff] %v8770_v5  ;;  %v8785_v8 = vld [vmem:[#allocation10 + $0xec] ss:$16 sps:$4 sm:$0xff]  }
 0x2b0   :  { %10097 = vst [vmem:[#allocation42_spill] sm:$0xff] %v8785_v8 }
 0x2b2   :  { %2414 = vmatpush1.bf16.msra.mxu0 %v8751_v9  ;;  %2455 = vmatpush1.bf16.msra.mxu1 %v8753_v11  ;;  %v8774_v9 = vld [vmem:[#allocation10 + $0xc0] ss:$16 sps:$4 sm:$0xff]   ;;  %v8778_v11 = vld [vmem:[#allocation10 + $0xc8] ss:$16 sps:$4 sm:$0xff]  }
 0x2b3   :  { %2415 = vmatprep.subr.bf16.mxu0 %v8761_v13  ;;  %2456 = vmatprep.subr.bf16.mxu1 %v8765_v15  ;;  %10094 = vst [vmem:[#allocation39_spill] sm:$0xff] %v8774_v9  ;;  %10095 = vst [vmem:[#allocation40_spill] sm:$0xff] %v8778_v11  ;;  %v8783_v13 = vld [vmem:[#allocation10 + $0xe4] ss:$16 sps:$4 sm:$0xff]   ;;  %v8787_v15 = vld [vmem:[#allocation10 + $0xe0] ss:$16 sps:$4 sm:$0xff]  }
 0x2b4   :  { %10096 = vst [vmem:[#allocation41_spill] sm:$0xff] %v8783_v13  ;;  %10098 = vst [vmem:[#allocation43_spill] sm:$0xff] %v8787_v15 }
 0x2b6   :  { %2416 = vmatpush1.bf16.msra.mxu0 %v8759_v12  ;;  %2457 = vmatpush1.bf16.msra.mxu1 %v8763_v14  ;;  %v8789_v12 = vld [vmem:[#allocation10 + $0xe8] ss:$16 sps:$4 sm:$0xff]  }
 0x2b7   :  { %2417 = vmatprep.subr.bf16.mxu0 %v8767_v19  ;;  %2458 = vmatprep.subr.bf16.mxu1 %v8770_v5  ;;  %10099 = vst [vmem:[#allocation44_spill] sm:$0xff] %v8789_v12  ;;  %v8795_v5 = vld [vmem:[#allocation10 + $0x104] ss:$16 sps:$4 sm:$0xff]   ;;  %v8801_v19 = vld [vmem:[#allocation10 + $0x108] ss:$16 sps:$4 sm:$0xff]  }
 0x2b8   :  { %10100 = vst [vmem:[#allocation45_spill] sm:$0xff] %v8795_v5  ;;  %10103 = vst [vmem:[#allocation48_spill] sm:$0xff] %v8801_v19 }
 0x2ba   :  { %2418 = vmatpush1.bf16.msra.mxu0 %v8774_v9  ;;  %2459 = vmatpush1.bf16.msra.mxu1 %v8778_v11  ;;  %v8797_v9 = vld [vmem:[#allocation10 + $0x10c] ss:$16 sps:$4 sm:$0xff]   ;;  %v8799_v11 = vld [vmem:[#allocation10 + $0x100] ss:$16 sps:$4 sm:$0xff]  }
 0x2bb   :  { %2419 = vmatprep.subr.bf16.mxu0 %v8783_v13  ;;  %2460 = vmatprep.subr.bf16.mxu1 %v8785_v8  ;;  %10101 = vst [vmem:[#allocation46_spill] sm:$0xff] %v8797_v9  ;;  %10102 = vst [vmem:[#allocation47_spill] sm:$0xff] %v8799_v11  ;;  %v8807_v8 = vld [vmem:[#allocation10 + $0x124] ss:$16 sps:$4 sm:$0xff]   ;;  %v8813_v13 = vld [vmem:[#allocation10 + $0x128] ss:$16 sps:$4 sm:$0xff]  }
 0x2bc   :  { %10104 = vst [vmem:[#allocation49_spill] sm:$0xff] %v8807_v8  ;;  %10107 = vst [vmem:[#allocation52_spill] sm:$0xff] %v8813_v13 }
 0x2be   :  { %2420 = vmatpush1.bf16.msra.mxu0 %v8787_v15  ;;  %2461 = vmatpush1.bf16.msra.mxu1 %v8789_v12  ;;  %v8809_v15 = vld [vmem:[#allocation10 + $0x12c] ss:$16 sps:$4 sm:$0xff]   ;;  %v8811_v12 = vld [vmem:[#allocation10 + $0x120] ss:$16 sps:$4 sm:$0xff]  }
 0x2bf   :  { %2421 = vmatprep.subr.bf16.mxu0 %v8795_v5  ;;  %2462 = vmatprep.subr.bf16.mxu1 %v8797_v9  ;;  %10105 = vst [vmem:[#allocation50_spill] sm:$0xff] %v8809_v15  ;;  %10106 = vst [vmem:[#allocation51_spill] sm:$0xff] %v8811_v12  ;;  %v8819_v9 = vld [vmem:[#allocation10 + $0x144] ss:$16 sps:$4 sm:$0xff]   ;;  %v8825_v5 = vld [vmem:[#allocation10 + $0x148] ss:$16 sps:$4 sm:$0xff]  }
 0x2c0   :  { %10108 = vst [vmem:[#allocation53_spill] sm:$0xff] %v8819_v9  ;;  %10111 = vst [vmem:[#allocation56_spill] sm:$0xff] %v8825_v5 }
 0x2c2   :  { %2422 = vmatpush1.bf16.msra.mxu0 %v8799_v11  ;;  %2463 = vmatpush1.bf16.msra.mxu1 %v8801_v19  ;;  %v8821_v11 = vld [vmem:[#allocation10 + $0x14c] ss:$16 sps:$4 sm:$0xff]   ;;  %v8823_v19 = vld [vmem:[#allocation10 + $0x140] ss:$16 sps:$4 sm:$0xff]  }
 0x2c3   :  { %2423 = vmatprep.subr.bf16.mxu0 %v8807_v8  ;;  %2464 = vmatprep.subr.bf16.mxu1 %v8809_v15  ;;  %10109 = vst [vmem:[#allocation54_spill] sm:$0xff] %v8821_v11  ;;  %10110 = vst [vmem:[#allocation55_spill] sm:$0xff] %v8823_v19  ;;  %v8831_v15 = vld [vmem:[#allocation10 + $0x164] ss:$16 sps:$4 sm:$0xff]   ;;  %v8837_v8 = vld [vmem:[#allocation10 + $0x168] ss:$16 sps:$4 sm:$0xff]  }
 0x2c4   :  { %10112 = vst [vmem:[#allocation57_spill] sm:$0xff] %v8831_v15  ;;  %10115 = vst [vmem:[#allocation60_spill] sm:$0xff] %v8837_v8 }
 0x2c6   :  { %2424 = vmatpush1.bf16.msra.mxu0 %v8811_v12  ;;  %2465 = vmatpush1.bf16.msra.mxu1 %v8813_v13  ;;  %v8833_v12 = vld [vmem:[#allocation10 + $0x16c] ss:$16 sps:$4 sm:$0xff]   ;;  %v8835_v13 = vld [vmem:[#allocation10 + $0x160] ss:$16 sps:$4 sm:$0xff]  }
 0x2c7   :  { %2425 = vmatprep.subr.bf16.mxu0 %v8819_v9  ;;  %2466 = vmatprep.subr.bf16.mxu1 %v8821_v11  ;;  %10113 = vst [vmem:[#allocation58_spill] sm:$0xff] %v8833_v12  ;;  %10114 = vst [vmem:[#allocation59_spill] sm:$0xff] %v8835_v13  ;;  %v8843_v11 = vld [vmem:[#allocation10 + $0x184] ss:$16 sps:$4 sm:$0xff]   ;;  %v8849_v9 = vld [vmem:[#allocation10 + $0x188] ss:$16 sps:$4 sm:$0xff]  }
 0x2c8   :  { %10116 = vst [vmem:[#allocation61_spill] sm:$0xff] %v8843_v11  ;;  %10119 = vst [vmem:[#allocation64_spill] sm:$0xff] %v8849_v9 }
 0x2ca   :  { %2426 = vmatpush1.bf16.msra.mxu0 %v8823_v19  ;;  %2467 = vmatpush1.bf16.msra.mxu1 %v8825_v5  ;;  %v8845_v19 = vld [vmem:[#allocation10 + $0x18c] ss:$16 sps:$4 sm:$0xff]   ;;  %v8847_v5 = vld [vmem:[#allocation10 + $0x180] ss:$16 sps:$4 sm:$0xff]  }
 0x2cb   :  { %2427 = vmatprep.subr.bf16.mxu0 %v8831_v15  ;;  %2468 = vmatprep.subr.bf16.mxu1 %v8833_v12  ;;  %10117 = vst [vmem:[#allocation62_spill] sm:$0xff] %v8845_v19  ;;  %10118 = vst [vmem:[#allocation63_spill] sm:$0xff] %v8847_v5  ;;  %v8855_v12 = vld [vmem:[#allocation10 + $0x1a4] ss:$16 sps:$4 sm:$0xff]   ;;  %v8861_v15 = vld [vmem:[#allocation10 + $0x1a8] ss:$16 sps:$4 sm:$0xff]  }
 0x2cc   :  { %10120 = vst [vmem:[#allocation65_spill] sm:$0xff] %v8855_v12  ;;  %10123 = vst [vmem:[#allocation68_spill] sm:$0xff] %v8861_v15 }
 0x2ce   :  { %2428 = vmatpush1.bf16.msra.mxu0 %v8835_v13  ;;  %2469 = vmatpush1.bf16.msra.mxu1 %v8837_v8  ;;  %v8857_v13 = vld [vmem:[#allocation10 + $0x1ac] ss:$16 sps:$4 sm:$0xff]   ;;  %v8859_v8 = vld [vmem:[#allocation10 + $0x1a0] ss:$16 sps:$4 sm:$0xff]  }
 0x2cf   :  { %2429 = vmatprep.subr.bf16.mxu0 %v8843_v11  ;;  %2470 = vmatprep.subr.bf16.mxu1 %v8845_v19  ;;  %10121 = vst [vmem:[#allocation66_spill] sm:$0xff] %v8857_v13  ;;  %10122 = vst [vmem:[#allocation67_spill] sm:$0xff] %v8859_v8  ;;  %v8867_v19 = vld [vmem:[#allocation10 + $0x1c4] ss:$16 sps:$4 sm:$0xff]   ;;  %v8873_v11 = vld [vmem:[#allocation10 + $0x1c8] ss:$16 sps:$4 sm:$0xff]  }
 0x2d0   :  { %10124 = vst [vmem:[#allocation69_spill] sm:$0xff] %v8867_v19  ;;  %10127 = vst [vmem:[#allocation72_spill] sm:$0xff] %v8873_v11 }
 0x2d2   :  { %2430 = vmatpush1.bf16.msra.mxu0 %v8847_v5  ;;  %2471 = vmatpush1.bf16.msra.mxu1 %v8849_v9  ;;  %v8869_v5 = vld [vmem:[#allocation10 + $0x1cc] ss:$16 sps:$4 sm:$0xff]   ;;  %v8871_v9 = vld [vmem:[#allocation10 + $0x1c0] ss:$16 sps:$4 sm:$0xff]  }
 0x2d3   :  { %2431 = vmatprep.subr.bf16.mxu0 %v8855_v12  ;;  %2472 = vmatprep.subr.bf16.mxu1 %v8857_v13  ;;  %10125 = vst [vmem:[#allocation70_spill] sm:$0xff] %v8869_v5  ;;  %10126 = vst [vmem:[#allocation71_spill] sm:$0xff] %v8871_v9  ;;  %v8879_v13 = vld [vmem:[#allocation10 + $0x1e4] ss:$16 sps:$4 sm:$0xff]   ;;  %v8885_v12 = vld [vmem:[#allocation10 + $0x1e8] ss:$16 sps:$4 sm:$0xff]  }
 0x2d4   :  { %10128 = vst [vmem:[#allocation73_spill] sm:$0xff] %v8879_v13  ;;  %10131 = vst [vmem:[#allocation76_spill] sm:$0xff] %v8885_v12 }
 0x2d6   :  { %2432 = vmatpush1.bf16.msra.mxu0 %v8859_v8  ;;  %2473 = vmatpush1.bf16.msra.mxu1 %v8861_v15  ;;  %v8881_v8 = vld [vmem:[#allocation10 + $0x1ec] ss:$16 sps:$4 sm:$0xff]   ;;  %v8883_v15 = vld [vmem:[#allocation10 + $0x1e0] ss:$16 sps:$4 sm:$0xff]  }
 0x2d7   :  { %2433 = vmatprep.subr.bf16.mxu0 %v8867_v19  ;;  %2474 = vmatprep.subr.bf16.mxu1 %v8869_v5  ;;  %10129 = vst [vmem:[#allocation74_spill] sm:$0xff] %v8881_v8  ;;  %10130 = vst [vmem:[#allocation75_spill] sm:$0xff] %v8883_v15 }
 0x2da   :  { %2434 = vmatpush1.bf16.msra.mxu0 %v8871_v9  ;;  %2475 = vmatpush1.bf16.msra.mxu1 %v8873_v11 }
 0x2db   :  { %2435 = vmatprep.subr.bf16.mxu0 %v8879_v13  ;;  %2476 = vmatprep.subr.bf16.mxu1 %v8881_v8 }
 0x2de   :  { %2436 = vmatpush1.bf16.msra.mxu0 %v8883_v15  ;;  %2477 = vmatpush1.bf16.msra.mxu1 %v8885_v12 }
 0x2df   :  { %2704 = vmatprep.subr.bf16.mxu0 %v8576_v56  ;;  %2745 = vmatprep.subr.bf16.mxu1 %v8578_v57 }
 0x354   :  { %v1640_v11 = vpop.f32.mrb[12].mxu0  ;;  %v1681_v9 = vpop.f32.mrb[12].mxu1 }
 0x355   :  { %v1641_v5 = vadd.f32 %v1640_v11, %v8582_v63  ;;  %v1642_v19 = vpop.f32.mrb[13].mxu0  ;;  %v1683_v14 = vpop.f32.mrb[13].mxu1  ;;  %v1682_v12 = vadd.f32 %v1681_v9, %v8587_v6 }
 0x356   :  { %v1643_v7 = vadd.f32 %v1642_v19, %v8584_v2  ;;  %v1644_v4 = vpop.f32.mrb[14].mxu0  ;;  %v1685_v13 = vpop.f32.mrb[14].mxu1  ;;  %v1684_v56 = vadd.f32 %v1683_v14, %v8591_v18  ;;  %v1708_v14 = vld [vmem:[#allocation5 + $0x28] sm:$0xff] }
 0x357   :  { %v1688_v3 = vmul.f32 0.5, %v1641_v5  ;;  %v1645_v8 = vpop.f32.mrb[15].mxu0  ;;  %v1686_v1 = vpop.f32.mrb[15].mxu1  ;;  %v1712_v60 = vunpack.c.h.bf16 %v1708_v14 }
 0x358   :  { %v1692_v15 = vmul.f32 0.5, %v1643_v7  ;;  %v1697_v57 = vmul.f32 0.5, %v1684_v56 }
 0x359   :  { %7977 = vtanh.f32 %v1688_v3  ;;  %v1707_v3 = vld [vmem:[#allocation5 + $0x20] sm:$0xff] }
 0x35a   :  { %7979 = vtanh.f32 %v1692_v15  ;;  %v1709_v9 = vunpack.c.l.bf16 %v1707_v3  ;;  %v1710_v15 = vunpack.c.h.bf16 %v1707_v3 }
 0x35b   :  { %7981 = vtanh.f32 %v1682_v12 }
 0x35c   :  { %7983 = vtanh.f32 %v1697_v57  ;;  %v1711_v57 = vunpack.c.l.bf16 %v1708_v14 }
 0x363   :  { %v7978_v62 = vpop.eup %7977 }
 0x364   :  { %v7980_v11 = vpop.eup %7979  ;;  %v1690_v63 = vmul.f32 0.5, %v7978_v62 }
 0x365   :  { %v1694_v61 = vmul.f32 0.5, %v7980_v11  ;;  %v7982_v4 = vpop.eup %7981 }
 0x366   :  { %v1691_v19 = vadd.f32 0.5, %v1690_v63  ;;  %v7984_v8 = vpop.eup %7983 }
 0x367   :  { %v1695_v13 = vadd.f32 0.5, %v1694_v61  ;;  %v1699_v12 = vmul.f32 0.5, %v7984_v8 }
 0x368   :  { %v1702_v5 = vmul.f32 %v7982_v4, %v1691_v19 }
 0x369   :  { %v1701_v1 = vmul.f32 %v1695_v13, %v8594_v41  ;;  %v1700_v61 = vadd.f32 0.5, %v1699_v12 }
 0x36b   :  { %v8898_v7 = vadd.f32 %v1702_v5, %v1701_v1 }
 0x36d   :  { %10132 = vst [vmem:[#allocation77_spill] sm:$0xff] %v8898_v7  ;;  %7985 = vtanh.f32 %v8898_v7 }
 0x374   :  { %v1939_v56 = vpop.f32.mrb[16].mxu0  ;;  %v1980_v62 = vpop.f32.mrb[16].mxu1 }
 0x375   :  { %v1987_v11 = vadd.f32 %v1939_v56, %v1709_v9  ;;  %v1941_v63 = vpop.f32.mrb[17].mxu0  ;;  %v1982_v18 = vpop.f32.mrb[17].mxu1  ;;  %v1989_v8 = vadd.f32 %v1980_v62, %v1711_v57 }
 0x376   :  { %v1988_v19 = vadd.f32 %v1941_v63, %v1710_v15  ;;  %v1943_v4 = vpop.f32.mrb[18].mxu0  ;;  %v1984_v41 = vpop.f32.mrb[18].mxu1  ;;  %v1990_v9 = vadd.f32 %v1982_v18, %v1712_v60 }
 0x377   :  { %v7986_v13 = vpop.eup %7985  ;;  %v1991_v5 = vmul.f32 0.5, %v1987_v11  ;;  %v1944_v1 = vpop.f32.mrb[19].mxu0 }
 0x378   :  { %v1985_v7 = vpop.f32.mrb[19].mxu1  ;;  %v1995_v6 = vmul.f32 0.5, %v1988_v19  ;;  %v1705_v2 = vmul.f32 %v7986_v13, %v1700_v61  ;;  %v2000_v56 = vmul.f32 0.5, %v1990_v9  ;;  %v10173_v13 = vld [vmem:[#allocation62_spill] sm:$0xff]  ;;  %v10175_v1 = vld [vmem:[#allocation64_spill] sm:$0xff]  ;;  %v10178_v9 = vld [vmem:[#allocation67_spill] sm:$0xff] }
 0x379   :  { %7987 = vtanh.f32 %v1991_v5  ;;  %v10174_v5 = vld [vmem:[#allocation63_spill] sm:$0xff] }
 0x37a   :  { %7989 = vtanh.f32 %v1995_v6  ;;  %v7351_v3 = vpack.c.bf16 %v1705_v2, %v1705_v2 }
 0x37b   :  { %7991 = vtanh.f32 %v1989_v8  ;;  %v10176_v8 = vld [vmem:[#allocation65_spill] sm:$0xff] }
 0x37c   :  { %2437 = vmatprep.mubr.bf16.mxu0 %v7351_v3  ;;  %2478 = vmatprep.mubr.bf16.mxu1 %v7351_v3  ;;  %7993 = vtanh.f32 %v2000_v56  ;;  %v10177_v3 = vld [vmem:[#allocation66_spill] sm:$0xff]  ;;  %v10179_v56 = vld [vmem:[#allocation68_spill] sm:$0xff] }
 0x383   :  { %v7988_v12 = vpop.eup %7987 }
 0x384   :  { %v7990_v15 = vpop.eup %7989  ;;  %v1993_v63 = vmul.f32 0.5, %v7988_v12  ;;  %v10180_v12 = vld [vmem:[#allocation69_spill] sm:$0xff] }
 0x385   :  { %v1997_v4 = vmul.f32 0.5, %v7990_v15  ;;  %v7992_v41 = vpop.eup %7991  ;;  %v10181_v15 = vld [vmem:[#allocation70_spill] sm:$0xff] }
 0x386   :  { %v1994_v11 = vadd.f32 0.5, %v1993_v63  ;;  %v7994_v2 = vpop.eup %7993  ;;  %v10182_v63 = vld [vmem:[#allocation71_spill] sm:$0xff] }
 0x387   :  { %v1998_v7 = vadd.f32 0.5, %v1997_v4  ;;  %v2002_v6 = vmul.f32 0.5, %v7994_v2  ;;  %v10183_v4 = vld [vmem:[#allocation72_spill] sm:$0xff] }
 0x388   :  { %v2005_v19 = vmul.f32 %v7992_v41, %v1994_v11  ;;  %v10184_v11 = vld [vmem:[#allocation73_spill] sm:$0xff]  ;;  %v10185_v41 = vld [vmem:[#allocation74_spill] sm:$0xff] }
 0x389   :  { %v2004_v61 = vmul.f32 %v1998_v7, %v8598_v10  ;;  %v2003_v14 = vadd.f32 0.5, %v2002_v6  ;;  %v10133_v10 = vld [vmem:[#allocation22_spill] sm:$0xff]  ;;  %v10186_v7 = vld [vmem:[#allocation75_spill] sm:$0xff] }
 0x38a   :  { %v9003_v2 = vld [vmem:[#allocation8 + $0xc] ss:$16 sps:$4 sm:$0xff]  }
 0x38b   :  { %v8902_v62 = vadd.f32 %v2005_v19, %v2004_v61  ;;  %v10187_v19 = vld [vmem:[#allocation76_spill] sm:$0xff]  ;;  %v9001_v61 = vld [vmem:[#allocation8 + $0x4] ss:$16 sps:$4 sm:$0xff]  }
 0x38d   :  { %7995 = vtanh.f32 %v8902_v62 }
 0x397   :  { %v7996_v18 = vpop.eup %7995 }
 0x398   :  { %v2008_v60 = vmul.f32 %v7996_v18, %v2003_v14  ;;  %v10188_v18 = vld [vmem:[#allocation18_spill] sm:$0xff] }
 0x39a   :  { %v2009_v57 = vpack.c.bf16 %v2008_v60, %v2008_v60 }
 0x39c   :  { %2438 = vmatmul.mubr.bf16.vlgmr.msra.gmra.mrb[20].mxu0 %v2009_v57  ;;  %2479 = vmatmul.mubr.bf16.vlgmr.msra.gmra.mrb[20].mxu1 %v2009_v57 }
 0x39d   :  { %2705 = vmatpush1.bf16.msra.mxu0 %v8601_v16  ;;  %2746 = vmatpush1.bf16.msra.mxu1 %v8603_v17  ;;  %v10134_v16 = vld [vmem:[#allocation23_spill] sm:$0xff]  ;;  %v10135_v17 = vld [vmem:[#allocation24_spill] sm:$0xff] }
 0x39e   :  { %2706 = vmatprep.subr.bf16.mxu0 %v8607_v20  ;;  %2747 = vmatprep.subr.bf16.mxu1 %v8609_v21  ;;  %v10136_v20 = vld [vmem:[#allocation25_spill] sm:$0xff]  ;;  %v10137_v21 = vld [vmem:[#allocation26_spill] sm:$0xff] }
 0x39f   :  { %2736 = vmatprep.mubr.bf16.mxu0 %v10066_v49  ;;  %2777 = vmatprep.mubr.bf16.mxu1 %v10066_v49 }
 0x3a1   :  { %2707 = vmatpush1.bf16.msra.mxu0 %v8615_v42  ;;  %2748 = vmatpush1.bf16.msra.mxu1 %v8617_v22  ;;  %v10138_v42 = vld [vmem:[#allocation27_spill] sm:$0xff]  ;;  %v10139_v22 = vld [vmem:[#allocation28_spill] sm:$0xff] }
 0x3a2   :  { %2708 = vmatprep.subr.bf16.mxu0 %v8621_v23  ;;  %2749 = vmatprep.subr.bf16.mxu1 %v8623_v24  ;;  %v10140_v23 = vld [vmem:[#allocation29_spill] sm:$0xff]  ;;  %v10141_v24 = vld [vmem:[#allocation30_spill] sm:$0xff] }
 0x3a5   :  { %2709 = vmatpush1.bf16.msra.mxu0 %v8629_v25  ;;  %2750 = vmatpush1.bf16.msra.mxu1 %v8631_v26  ;;  %v10142_v25 = vld [vmem:[#allocation31_spill] sm:$0xff]  ;;  %v10143_v26 = vld [vmem:[#allocation32_spill] sm:$0xff] }
 0x3a6   :  { %2710 = vmatprep.subr.bf16.mxu0 %v8635_v27  ;;  %2751 = vmatprep.subr.bf16.mxu1 %v8637_v28  ;;  %v10144_v27 = vld [vmem:[#allocation34_spill] sm:$0xff]  ;;  %v10145_v28 = vld [vmem:[#allocation36_spill] sm:$0xff] }
 0x3a9   :  { %2711 = vmatpush1.bf16.msra.mxu0 %v8641_v38  ;;  %2752 = vmatpush1.bf16.msra.mxu1 %v8643_v40  ;;  %v10146_v38 = vld [vmem:[#allocation33_spill] sm:$0xff]  ;;  %v10147_v40 = vld [vmem:[#allocation35_spill] sm:$0xff] }
 0x3aa   :  { %2712 = vmatprep.subr.bf16.mxu0 %v8647_v43  ;;  %2753 = vmatprep.subr.bf16.mxu1 %v8649_v44  ;;  %v10148_v43 = vld [vmem:[#allocation37_spill] sm:$0xff]  ;;  %v10149_v44 = vld [vmem:[#allocation38_spill] sm:$0xff] }
 0x3ad   :  { %2713 = vmatpush1.bf16.msra.mxu0 %v8653_v46  ;;  %2754 = vmatpush1.bf16.msra.mxu1 %v8655_v45  ;;  %v10150_v46 = vld [vmem:[#allocation39_spill] sm:$0xff]  ;;  %v10151_v45 = vld [vmem:[#allocation40_spill] sm:$0xff] }
 0x3ae   :  { %2714 = vmatprep.subr.bf16.mxu0 %v8659_v32  ;;  %2755 = vmatprep.subr.bf16.mxu1 %v8661_v0  ;;  %v10152_v32 = vld [vmem:[#allocation41_spill] sm:$0xff]  ;;  %v10153_v0 = vld [vmem:[#allocation42_spill] sm:$0xff] }
 0x3b1   :  { %2715 = vmatpush1.bf16.msra.mxu0 %v8665_v39  ;;  %2756 = vmatpush1.bf16.msra.mxu1 %v8667_v33  ;;  %v10154_v39 = vld [vmem:[#allocation43_spill] sm:$0xff]  ;;  %v10155_v33 = vld [vmem:[#allocation44_spill] sm:$0xff] }
 0x3b2   :  { %2716 = vmatprep.subr.bf16.mxu0 %v8671_v34  ;;  %2757 = vmatprep.subr.bf16.mxu1 %v8673_v29  ;;  %v10156_v34 = vld [vmem:[#allocation45_spill] sm:$0xff]  ;;  %v10157_v29 = vld [vmem:[#allocation46_spill] sm:$0xff] }
 0x3b5   :  { %2717 = vmatpush1.bf16.msra.mxu0 %v8677_v30  ;;  %2758 = vmatpush1.bf16.msra.mxu1 %v8679_v47  ;;  %v10158_v30 = vld [vmem:[#allocation47_spill] sm:$0xff]  ;;  %v10159_v47 = vld [vmem:[#allocation48_spill] sm:$0xff] }
 0x3b6   :  { %2718 = vmatprep.subr.bf16.mxu0 %v8683_v48  ;;  %2759 = vmatprep.subr.bf16.mxu1 %v8685_v31  ;;  %v10160_v48 = vld [vmem:[#allocation49_spill] sm:$0xff]  ;;  %v10161_v31 = vld [vmem:[#allocation50_spill] sm:$0xff] }
 0x3b9   :  { %2719 = vmatpush1.bf16.msra.mxu0 %v8689_v35  ;;  %2760 = vmatpush1.bf16.msra.mxu1 %v8691_v36  ;;  %v10162_v35 = vld [vmem:[#allocation51_spill] sm:$0xff]  ;;  %v10163_v36 = vld [vmem:[#allocation52_spill] sm:$0xff] }
 0x3ba   :  { %3204 = vmatprep.subr.bf16.mxu0 %v8699_v37  ;;  %3245 = vmatprep.subr.bf16.mxu1 %v8701_v50  ;;  %v10164_v37 = vld [vmem:[#allocation53_spill] sm:$0xff]  ;;  %v10165_v50 = vld [vmem:[#allocation54_spill] sm:$0xff] }
 0x3bc   :  { %2737 = vmatmul.mubr.bf16.vlgmr.msra.gmra.mrb[24].mxu0 %v2009_v57  ;;  %2778 = vmatmul.mubr.bf16.vlgmr.msra.gmra.mrb[24].mxu1 %v2009_v57 }
 0x3bd   :  { %3205 = vmatpush1.bf16.msra.mxu0 %v8703_v51  ;;  %3246 = vmatpush1.bf16.msra.mxu1 %v8705_v52  ;;  %v10166_v51 = vld [vmem:[#allocation55_spill] sm:$0xff]  ;;  %v10167_v52 = vld [vmem:[#allocation56_spill] sm:$0xff] }
 0x3be   :  { %3206 = vmatprep.subr.bf16.mxu0 %v8711_v53  ;;  %3247 = vmatprep.subr.bf16.mxu1 %v8713_v54  ;;  %v10168_v53 = vld [vmem:[#allocation57_spill] sm:$0xff]  ;;  %v10169_v54 = vld [vmem:[#allocation58_spill] sm:$0xff] }
 0x3c1   :  { %3207 = vmatpush1.bf16.msra.mxu0 %v8715_v55  ;;  %3248 = vmatpush1.bf16.msra.mxu1 %v8717_v58  ;;  %v10170_v55 = vld [vmem:[#allocation59_spill] sm:$0xff]  ;;  %v10171_v58 = vld [vmem:[#allocation60_spill] sm:$0xff] }
 0x3c2   :  { %3208 = vmatprep.subr.bf16.mxu0 %v8723_v59  ;;  %3249 = vmatprep.subr.bf16.mxu1 %v10133_v10  ;;  %v10172_v59 = vld [vmem:[#allocation61_spill] sm:$0xff] }
 0x3c5   :  { %3209 = vmatpush1.bf16.msra.mxu0 %v10134_v16  ;;  %3250 = vmatpush1.bf16.msra.mxu1 %v10135_v17  ;;  %v10189_v16 = vld [vmem:[#allocation19_spill] sm:$0xff] }
 0x3c6   :  { %3210 = vmatprep.subr.bf16.mxu0 %v10136_v20  ;;  %3251 = vmatprep.subr.bf16.mxu1 %v10137_v21 }
 0x3c9   :  { %3211 = vmatpush1.bf16.msra.mxu0 %v10138_v42  ;;  %3252 = vmatpush1.bf16.msra.mxu1 %v10139_v22 }
 0x3ca   :  { %3212 = vmatprep.subr.bf16.mxu0 %v10140_v23  ;;  %3253 = vmatprep.subr.bf16.mxu1 %v10141_v24 }
 0x3cd   :  { %3213 = vmatpush1.bf16.msra.mxu0 %v10142_v25  ;;  %3254 = vmatpush1.bf16.msra.mxu1 %v10143_v26  ;;  %v10190_v25 = vld [vmem:[#allocation20_spill] sm:$0xff] }
 0x3ce   :  { %3214 = vmatprep.subr.bf16.mxu0 %v10144_v27  ;;  %3255 = vmatprep.subr.bf16.mxu1 %v10145_v28  ;;  %v10191_v27 = vld [vmem:[#allocation21_spill] sm:$0xff] }
 0x3d1   :  { %3215 = vmatpush1.bf16.msra.mxu0 %v10146_v38  ;;  %3256 = vmatpush1.bf16.msra.mxu1 %v10147_v40 }
 0x3d2   :  { %3216 = vmatprep.subr.bf16.mxu0 %v10148_v43  ;;  %3257 = vmatprep.subr.bf16.mxu1 %v10149_v44 }
 0x3d5   :  { %3217 = vmatpush1.bf16.msra.mxu0 %v10150_v46  ;;  %3258 = vmatpush1.bf16.msra.mxu1 %v10151_v45 }
 0x3d6   :  { %3218 = vmatprep.subr.bf16.mxu0 %v10152_v32  ;;  %3259 = vmatprep.subr.bf16.mxu1 %v10153_v0 }
 0x3d9   :  { %3219 = vmatpush1.bf16.msra.mxu0 %v10154_v39  ;;  %3260 = vmatpush1.bf16.msra.mxu1 %v10155_v33  ;;  %v10192_v33 = vld [vmem:[#allocation77_spill] sm:$0xff] }
 0x3da   :  { %3220 = vmatprep.subr.bf16.mxu0 %v10156_v34  ;;  %3261 = vmatprep.subr.bf16.mxu1 %v10157_v29 }
 0x3dd   :  { %3221 = vmatpush1.bf16.msra.mxu0 %v10158_v30  ;;  %3262 = vmatpush1.bf16.msra.mxu1 %v10159_v47  ;;  %v2506_v30 = vld [vmem:[#allocation5 + $0x30] sm:$0xff] }
 0x3de   :  { %3222 = vmatprep.subr.bf16.mxu0 %v10160_v48  ;;  %3263 = vmatprep.subr.bf16.mxu1 %v10161_v31  ;;  %v2508_v48 = vunpack.c.l.bf16 %v2506_v30 }
 0x3e1   :  { %3223 = vmatpush1.bf16.msra.mxu0 %v10162_v35  ;;  %3264 = vmatpush1.bf16.msra.mxu1 %v10163_v36  ;;  %v2507_v35 = vld [vmem:[#allocation5 + $0x38] sm:$0xff]  ;;  %v2509_v36 = vunpack.c.h.bf16 %v2506_v30 }
 0x3e2   :  { %3224 = vmatprep.subr.bf16.mxu0 %v10164_v37  ;;  %3265 = vmatprep.subr.bf16.mxu1 %v10165_v50  ;;  %v9061_v30 = vld [vmem:[#allocation8 + $0x68] ss:$16 sps:$4 sm:$0xff]  }
 0x3e5   :  { %3225 = vmatpush1.bf16.msra.mxu0 %v10166_v51  ;;  %3266 = vmatpush1.bf16.msra.mxu1 %v10167_v52  ;;  %v2510_v52 = vunpack.c.l.bf16 %v2507_v35 }
 0x3e6   :  { %3226 = vmatprep.subr.bf16.mxu0 %v10168_v53  ;;  %3267 = vmatprep.subr.bf16.mxu1 %v10169_v54 }
 0x3e9   :  { %3227 = vmatpush1.bf16.msra.mxu0 %v10170_v55  ;;  %3268 = vmatpush1.bf16.msra.mxu1 %v10171_v58 }
 0x3ea   :  { %3228 = vmatprep.subr.bf16.mxu0 %v10172_v59  ;;  %3269 = vmatprep.subr.bf16.mxu1 %v10173_v13 }
 0x3ed   :  { %3229 = vmatpush1.bf16.msra.mxu0 %v10174_v5  ;;  %3270 = vmatpush1.bf16.msra.mxu1 %v10175_v1 }
 0x3ee   :  { %3230 = vmatprep.subr.bf16.mxu0 %v10176_v8  ;;  %3271 = vmatprep.subr.bf16.mxu1 %v10177_v3 }
 0x3f1   :  { %3231 = vmatpush1.bf16.msra.mxu0 %v10178_v9  ;;  %3272 = vmatpush1.bf16.msra.mxu1 %v10179_v56 }
 0x3f2   :  { %3232 = vmatprep.subr.bf16.mxu0 %v10180_v12  ;;  %3273 = vmatprep.subr.bf16.mxu1 %v10181_v15  ;;  %v2511_v15 = vunpack.c.h.bf16 %v2507_v35  ;;  %v9073_v35 = vld [vmem:[#allocation8 + $0x88] ss:$16 sps:$4 sm:$0xff]  }
 0x3f5   :  { %3233 = vmatpush1.bf16.msra.mxu0 %v10182_v63  ;;  %3274 = vmatpush1.bf16.msra.mxu1 %v10183_v4 }
 0x3f6   :  { %3234 = vmatprep.subr.bf16.mxu0 %v10184_v11  ;;  %3275 = vmatprep.subr.bf16.mxu1 %v10185_v41 }
 0x3f9   :  { %3235 = vmatpush1.bf16.msra.mxu0 %v10186_v7  ;;  %3276 = vmatpush1.bf16.msra.mxu1 %v10187_v19 }
 0x3fa   :  { %3503 = vmatprep.subr.bf16.mxu0 %v9001_v61  ;;  %3544 = vmatprep.subr.bf16.mxu1 %v9003_v2 }
 0x46f   :  { %v2439_v6 = vpop.f32.mrb[20].mxu0  ;;  %v2480_v14 = vpop.f32.mrb[20].mxu1 }
 0x470   :  { %v2440_v60 = vadd.f32 %v2439_v6, %v10188_v18  ;;  %v2441_v57 = vpop.f32.mrb[21].mxu0  ;;  %v2482_v10 = vpop.f32.mrb[21].mxu1  ;;  %v2481_v26 = vadd.f32 %v2480_v14, %v10190_v25 }
 0x471   :  { %v2442_v17 = vadd.f32 %v2441_v57, %v10189_v16  ;;  %v2443_v20 = vpop.f32.mrb[22].mxu0  ;;  %v2484_v21 = vpop.f32.mrb[22].mxu1  ;;  %v2483_v28 = vadd.f32 %v2482_v10, %v10191_v27 }
 0x472   :  { %v2487_v42 = vmul.f32 0.5, %v2440_v60  ;;  %v2444_v22 = vpop.f32.mrb[23].mxu0  ;;  %v2485_v23 = vpop.f32.mrb[23].mxu1 }
 0x473   :  { %v2491_v24 = vmul.f32 0.5, %v2442_v17  ;;  %v2496_v38 = vmul.f32 0.5, %v2483_v28  ;;  %v9021_v28 = vld [vmem:[#allocation8 + $0x8] ss:$16 sps:$4 sm:$0xff]  }
 0x474   :  { %7997 = vtanh.f32 %v2487_v42 }
 0x475   :  { %7999 = vtanh.f32 %v2491_v24 }
 0x476   :  { %8001 = vtanh.f32 %v2481_v26  ;;  %v9019_v26 = vld [vmem:[#allocation8] ss:$16 sps:$4 sm:$0xff]  }
 0x477   :  { %8003 = vtanh.f32 %v2496_v38 }
 0x47e   :  { %v7998_v40 = vpop.eup %7997 }
 0x47f   :  { %v8000_v43 = vpop.eup %7999  ;;  %v2489_v44 = vmul.f32 0.5, %v7998_v40  ;;  %v9025_v40 = vld [vmem:[#allocation8 + $0x24] ss:$16 sps:$4 sm:$0xff]  }
 0x480   :  { %v2493_v46 = vmul.f32 0.5, %v8000_v43  ;;  %v8002_v32 = vpop.eup %8001  ;;  %v9027_v43 = vld [vmem:[#allocation8 + $0x2c] ss:$16 sps:$4 sm:$0xff]  }
 0x481   :  { %v2490_v45 = vadd.f32 0.5, %v2489_v44  ;;  %v8004_v47 = vpop.eup %8003  ;;  %v9035_v44 = vld [vmem:[#allocation8 + $0x28] ss:$16 sps:$4 sm:$0xff]  }
 0x482   :  { %v2494_v0 = vadd.f32 0.5, %v2493_v46  ;;  %v2498_v31 = vmul.f32 0.5, %v8004_v47  ;;  %v9039_v46 = vld [vmem:[#allocation8 + $0x44] ss:$16 sps:$4 sm:$0xff]  }
 0x483   :  { %v2501_v39 = vmul.f32 %v8002_v32, %v2490_v45  ;;  %v9041_v45 = vld [vmem:[#allocation8 + $0x4c] ss:$16 sps:$4 sm:$0xff]   ;;  %v9047_v32 = vld [vmem:[#allocation8 + $0x40] ss:$16 sps:$4 sm:$0xff]   ;;  %v9065_v47 = vld [vmem:[#allocation8 + $0x84] ss:$16 sps:$4 sm:$0xff]  }
 0x484   :  { %v2500_v34 = vmul.f32 %v2494_v0, %v10192_v33  ;;  %v2499_v55 = vadd.f32 0.5, %v2498_v31  ;;  %v9049_v0 = vld [vmem:[#allocation8 + $0x48] ss:$16 sps:$4 sm:$0xff]   ;;  %v9055_v33 = vld [vmem:[#allocation8 + $0x6c] ss:$16 sps:$4 sm:$0xff]  }
 0x485   :  { %v9071_v31 = vld [vmem:[#allocation8 + $0x80] ss:$16 sps:$4 sm:$0xff]  }
 0x486   :  { %v9012_v29 = vadd.f32 %v2501_v39, %v2500_v34  ;;  %v9053_v39 = vld [vmem:[#allocation8 + $0x64] ss:$16 sps:$4 sm:$0xff]   ;;  %v9059_v34 = vld [vmem:[#allocation8 + $0x60] ss:$16 sps:$4 sm:$0xff]  }
 0x488   :  { %8005 = vtanh.f32 %v9012_v29 }
 0x48f   :  { %v2738_v37 = vpop.f32.mrb[24].mxu0  ;;  %v2779_v50 = vpop.f32.mrb[24].mxu1 }
 0x490   :  { %v2786_v51 = vadd.f32 %v2738_v37, %v2508_v48  ;;  %v2740_v53 = vpop.f32.mrb[25].mxu0  ;;  %v2781_v54 = vpop.f32.mrb[25].mxu1  ;;  %v2788_v12 = vadd.f32 %v2779_v50, %v2510_v52  ;;  %v9067_v48 = vld [vmem:[#allocation8 + $0x8c] ss:$16 sps:$4 sm:$0xff]   ;;  %v9083_v50 = vld [vmem:[#allocation8 + $0xa0] ss:$16 sps:$4 sm:$0xff]  }
 0x491   :  { %v2787_v58 = vadd.f32 %v2740_v53, %v2509_v36  ;;  %v2742_v59 = vpop.f32.mrb[26].mxu0  ;;  %v2783_v13 = vpop.f32.mrb[26].mxu1  ;;  %v2789_v4 = vadd.f32 %v2781_v54, %v2511_v15  ;;  %v9077_v36 = vld [vmem:[#allocation8 + $0xa4] ss:$16 sps:$4 sm:$0xff]   ;;  %v9079_v37 = vld [vmem:[#allocation8 + $0xac] ss:$16 sps:$4 sm:$0xff]  }
 0x492   :  { %v8006_v5 = vpop.eup %8005  ;;  %v2790_v1 = vmul.f32 0.5, %v2786_v51  ;;  %v2743_v8 = vpop.f32.mrb[27].mxu0  ;;  %v9085_v51 = vld [vmem:[#allocation8 + $0xa8] ss:$16 sps:$4 sm:$0xff]   ;;  %v9089_v52 = vld [vmem:[#allocation8 + $0xc4] ss:$16 sps:$4 sm:$0xff]  }
 0x493   :  { %v2784_v3 = vpop.f32.mrb[27].mxu1  ;;  %v2794_v9 = vmul.f32 0.5, %v2787_v58  ;;  %v2504_v56 = vmul.f32 %v8006_v5, %v2499_v55  ;;  %v2799_v11 = vmul.f32 0.5, %v2789_v4  ;;  %v9091_v53 = vld [vmem:[#allocation8 + $0xcc] ss:$16 sps:$4 sm:$0xff]  }
 0x494   :  { %8007 = vtanh.f32 %v2790_v1  ;;  %v9095_v54 = vld [vmem:[#allocation8 + $0xc0] ss:$16 sps:$4 sm:$0xff]   ;;  %v9097_v55 = vld [vmem:[#allocation8 + $0xc8] ss:$16 sps:$4 sm:$0xff]   ;;  %v9101_v58 = vld [vmem:[#allocation8 + $0xe4] ss:$16 sps:$4 sm:$0xff]  }
 0x495   :  { %8009 = vtanh.f32 %v2794_v9  ;;  %v7353_v63 = vpack.c.bf16 %v2504_v56, %v2504_v56  ;;  %v9103_v59 = vld [vmem:[#allocation8 + $0xec] ss:$16 sps:$4 sm:$0xff]   ;;  %v9107_v13 = vld [vmem:[#allocation8 + $0xe0] ss:$16 sps:$4 sm:$0xff]   ;;  %v9109_v5 = vld [vmem:[#allocation8 + $0xe8] ss:$16 sps:$4 sm:$0xff]  }
 0x496   :  { %8011 = vtanh.f32 %v2788_v12  ;;  %v9117_v1 = vld [vmem:[#allocation10 + $0x4] ss:$16 sps:$4 sm:$0xff]   ;;  %v9119_v8 = vld [vmem:[#allocation10 + $0xc] ss:$16 sps:$4 sm:$0xff]   ;;  %v9121_v3 = vld [vmem:[#allocation10] ss:$16 sps:$4 sm:$0xff]  }
 0x497   :  { %3236 = vmatprep.mubr.bf16.mxu0 %v7353_v63  ;;  %3277 = vmatprep.mubr.bf16.mxu1 %v7353_v63  ;;  %8013 = vtanh.f32 %v2799_v11  ;;  %v9123_v9 = vld [vmem:[#allocation10 + $0x8] ss:$16 sps:$4 sm:$0xff]   ;;  %v9129_v56 = vld [vmem:[#allocation10 + $0x24] ss:$16 sps:$4 sm:$0xff]   ;;  %v9131_v12 = vld [vmem:[#allocation10 + $0x2c] ss:$16 sps:$4 sm:$0xff]  }
 0x498   :  { %v9133_v15 = vld [vmem:[#allocation10 + $0x20] ss:$16 sps:$4 sm:$0xff]   ;;  %v9135_v63 = vld [vmem:[#allocation10 + $0x28] ss:$16 sps:$4 sm:$0xff]   ;;  %v9141_v4 = vld [vmem:[#allocation10 + $0x44] ss:$16 sps:$4 sm:$0xff]  }
 0x499   :  { %v9143_v11 = vld [vmem:[#allocation10 + $0x4c] ss:$16 sps:$4 sm:$0xff]  }
 0x49a   :  { %10193 = vst [vmem:[#allocation22_spill] sm:$0xff] %v9143_v11 }
 0x49e   :  { %v8008_v41 = vpop.eup %8007 }
 0x49f   :  { %v8010_v7 = vpop.eup %8009  ;;  %v2792_v19 = vmul.f32 0.5, %v8008_v41  ;;  %v9145_v41 = vld [vmem:[#allocation10 + $0x40] ss:$16 sps:$4 sm:$0xff]  }
 0x4a0   :  { %v2796_v6 = vmul.f32 0.5, %v8010_v7  ;;  %v8012_v60 = vpop.eup %8011  ;;  %10194 = vst [vmem:[#allocation23_spill] sm:$0xff] %v9145_v41  ;;  %v9147_v7 = vld [vmem:[#allocation10 + $0x48] ss:$16 sps:$4 sm:$0xff]  }
 0x4a1   :  { %v2793_v14 = vadd.f32 0.5, %v2792_v19  ;;  %v8014_v21 = vpop.eup %8013  ;;  %10195 = vst [vmem:[#allocation24_spill] sm:$0xff] %v9147_v7  ;;  %v9153_v19 = vld [vmem:[#allocation10 + $0x64] ss:$16 sps:$4 sm:$0xff]  }
 0x4a2   :  { %v2797_v57 = vadd.f32 0.5, %v2796_v6  ;;  %v2801_v42 = vmul.f32 0.5, %v8014_v21  ;;  %10196 = vst [vmem:[#allocation25_spill] sm:$0xff] %v9153_v19  ;;  %v9155_v6 = vld [vmem:[#allocation10 + $0x6c] ss:$16 sps:$4 sm:$0xff]  }
 0x4a3   :  { %v2804_v10 = vmul.f32 %v8012_v60, %v2793_v14  ;;  %10197 = vst [vmem:[#allocation26_spill] sm:$0xff] %v9155_v6  ;;  %v9157_v14 = vld [vmem:[#allocation10 + $0x60] ss:$16 sps:$4 sm:$0xff]   ;;  %v9159_v60 = vld [vmem:[#allocation10 + $0x68] ss:$16 sps:$4 sm:$0xff]  }
 0x4a4   :  { %v2803_v17 = vmul.f32 %v2797_v57, %v8902_v62  ;;  %v2802_v22 = vadd.f32 0.5, %v2801_v42  ;;  %v9033_v62 = vld [vmem:[#allocation8 + $0x20] ss:$16 sps:$4 sm:$0xff]   ;;  %10198 = vst [vmem:[#allocation27_spill] sm:$0xff] %v9157_v14  ;;  %10199 = vst [vmem:[#allocation28_spill] sm:$0xff] %v9159_v60 }
 0x4a5   :  { %v9165_v57 = vld [vmem:[#allocation10 + $0x84] ss:$16 sps:$4 sm:$0xff]   ;;  %v9171_v21 = vld [vmem:[#allocation10 + $0x88] ss:$16 sps:$4 sm:$0xff]   ;;  %v9177_v42 = vld [vmem:[#allocation10 + $0xa0] ss:$16 sps:$4 sm:$0xff]  }
 0x4a6   :  { %v9016_v20 = vadd.f32 %v2804_v10, %v2803_v17  ;;  %10200 = vst [vmem:[#allocation29_spill] sm:$0xff] %v9165_v57  ;;  %v9167_v10 = vld [vmem:[#allocation10 + $0x8c] ss:$16 sps:$4 sm:$0xff]   ;;  %v9169_v17 = vld [vmem:[#allocation10 + $0x80] ss:$16 sps:$4 sm:$0xff]   ;;  %10203 = vst [vmem:[#allocation32_spill] sm:$0xff] %v9171_v21 }
 0x4a7   :  { %10201 = vst [vmem:[#allocation30_spill] sm:$0xff] %v9167_v10  ;;  %10202 = vst [vmem:[#allocation31_spill] sm:$0xff] %v9169_v17 }
 0x4a8   :  { %8015 = vtanh.f32 %v9016_v20  ;;  %10204 = vst [vmem:[#allocation34_spill] sm:$0xff] %v9177_v42 }
 0x4b2   :  { %v8016_v23 = vpop.eup %8015 }
 0x4b3   :  { %v2807_v24 = vmul.f32 %v8016_v23, %v2802_v22  ;;  %v9179_v22 = vld [vmem:[#allocation10 + $0xa4] ss:$16 sps:$4 sm:$0xff]   ;;  %v9181_v23 = vld [vmem:[#allocation10 + $0xa8] ss:$16 sps:$4 sm:$0xff]  }
 0x4b4   :  { %10205 = vst [vmem:[#allocation36_spill] sm:$0xff] %v9179_v22  ;;  %10206 = vst [vmem:[#allocation33_spill] sm:$0xff] %v9181_v23 }
 0x4b5   :  { %v9023_v38 = vpack.c.bf16 %v2807_v24, %v2807_v24  ;;  %v9183_v24 = vld [vmem:[#allocation10 + $0xac] ss:$16 sps:$4 sm:$0xff]  }
 0x4b6   :  { %10207 = vst [vmem:[#allocation35_spill] sm:$0xff] %v9183_v24 }
 0x4b7   :  { %3237 = vmatmul.mubr.bf16.vlgmr.msra.gmra.mrb[28].mxu0 %v9023_v38  ;;  %3278 = vmatmul.mubr.bf16.vlgmr.msra.gmra.mrb[28].mxu1 %v9023_v38 }
 0x4b8   :  { %3504 = vmatpush1.bf16.msra.mxu0 %v9019_v26  ;;  %3545 = vmatpush1.bf16.msra.mxu1 %v9021_v28 }
 0x4b9   :  { %3505 = vmatprep.subr.bf16.mxu0 %v9025_v40  ;;  %3546 = vmatprep.subr.bf16.mxu1 %v9027_v43 }
 0x4ba   :  { %3535 = vmatprep.mubr.bf16.mxu0 %v10066_v49  ;;  %3576 = vmatprep.mubr.bf16.mxu1 %v10066_v49 }
 0x4bc   :  { %3506 = vmatpush1.bf16.msra.mxu0 %v9033_v62  ;;  %3547 = vmatpush1.bf16.msra.mxu1 %v9035_v44 }
 0x4bd   :  { %3507 = vmatprep.subr.bf16.mxu0 %v9039_v46  ;;  %3548 = vmatprep.subr.bf16.mxu1 %v9041_v45 }
 0x4c0   :  { %3508 = vmatpush1.bf16.msra.mxu0 %v9047_v32  ;;  %3549 = vmatpush1.bf16.msra.mxu1 %v9049_v0 }
 0x4c1   :  { %3509 = vmatprep.subr.bf16.mxu0 %v9053_v39  ;;  %3550 = vmatprep.subr.bf16.mxu1 %v9055_v33 }
 0x4c4   :  { %3510 = vmatpush1.bf16.msra.mxu0 %v9059_v34  ;;  %3551 = vmatpush1.bf16.msra.mxu1 %v9061_v30 }
 0x4c5   :  { %3511 = vmatprep.subr.bf16.mxu0 %v9065_v47  ;;  %3552 = vmatprep.subr.bf16.mxu1 %v9067_v48 }
 0x4c8   :  { %3512 = vmatpush1.bf16.msra.mxu0 %v9071_v31  ;;  %3553 = vmatpush1.bf16.msra.mxu1 %v9073_v35 }
 0x4c9   :  { %3513 = vmatprep.subr.bf16.mxu0 %v9077_v36  ;;  %3554 = vmatprep.subr.bf16.mxu1 %v9079_v37 }
 0x4cc   :  { %3514 = vmatpush1.bf16.msra.mxu0 %v9083_v50  ;;  %3555 = vmatpush1.bf16.msra.mxu1 %v9085_v51 }
 0x4cd   :  { %3515 = vmatprep.subr.bf16.mxu0 %v9089_v52  ;;  %3556 = vmatprep.subr.bf16.mxu1 %v9091_v53 }
 0x4d0   :  { %3516 = vmatpush1.bf16.msra.mxu0 %v9095_v54  ;;  %3557 = vmatpush1.bf16.msra.mxu1 %v9097_v55 }
 0x4d1   :  { %3517 = vmatprep.subr.bf16.mxu0 %v9101_v58  ;;  %3558 = vmatprep.subr.bf16.mxu1 %v9103_v59 }
 0x4d4   :  { %3518 = vmatpush1.bf16.msra.mxu0 %v9107_v13  ;;  %3559 = vmatpush1.bf16.msra.mxu1 %v9109_v5 }
 0x4d5   :  { %4003 = vmatprep.subr.bf16.mxu0 %v9117_v1  ;;  %4044 = vmatprep.subr.bf16.mxu1 %v9119_v8 }
 0x4d7   :  { %3536 = vmatmul.mubr.bf16.vlgmr.msra.gmra.mrb[32].mxu0 %v9023_v38  ;;  %3577 = vmatmul.mubr.bf16.vlgmr.msra.gmra.mrb[32].mxu1 %v9023_v38  ;;  %v9185_v38 = vld [vmem:[#allocation10 + $0xc4] ss:$16 sps:$4 sm:$0xff]  }
 0x4d8   :  { %4004 = vmatpush1.bf16.msra.mxu0 %v9121_v3  ;;  %4045 = vmatpush1.bf16.msra.mxu1 %v9123_v9  ;;  %10208 = vst [vmem:[#allocation37_spill] sm:$0xff] %v9185_v38 }
 0x4d9   :  { %4005 = vmatprep.subr.bf16.mxu0 %v9129_v56  ;;  %4046 = vmatprep.subr.bf16.mxu1 %v9131_v12 }
 0x4dc   :  { %4006 = vmatpush1.bf16.msra.mxu0 %v9133_v15  ;;  %4047 = vmatpush1.bf16.msra.mxu1 %v9135_v63 }
 0x4dd   :  { %4007 = vmatprep.subr.bf16.mxu0 %v9141_v4  ;;  %4048 = vmatprep.subr.bf16.mxu1 %v9143_v11 }
 0x4e0   :  { %4008 = vmatpush1.bf16.msra.mxu0 %v9145_v41  ;;  %4049 = vmatpush1.bf16.msra.mxu1 %v9147_v7 }
 0x4e1   :  { %4009 = vmatprep.subr.bf16.mxu0 %v9153_v19  ;;  %4050 = vmatprep.subr.bf16.mxu1 %v9155_v6 }
 0x4e4   :  { %4010 = vmatpush1.bf16.msra.mxu0 %v9157_v14  ;;  %4051 = vmatpush1.bf16.msra.mxu1 %v9159_v60  ;;  %v9188_v60 = vld [vmem:[#allocation10 + $0xcc] ss:$16 sps:$4 sm:$0xff]  }
 0x4e5   :  { %4011 = vmatprep.subr.bf16.mxu0 %v9165_v57  ;;  %4052 = vmatprep.subr.bf16.mxu1 %v9167_v10  ;;  %10209 = vst [vmem:[#allocation38_spill] sm:$0xff] %v9188_v60  ;;  %v9203_v10 = vld [vmem:[#allocation10 + $0xec] ss:$16 sps:$4 sm:$0xff]  }
 0x4e6   :  { %10213 = vst [vmem:[#allocation42_spill] sm:$0xff] %v9203_v10 }
 0x4e8   :  { %4012 = vmatpush1.bf16.msra.mxu0 %v9169_v17  ;;  %4053 = vmatpush1.bf16.msra.mxu1 %v9171_v21  ;;  %v9192_v17 = vld [vmem:[#allocation10 + $0xc0] ss:$16 sps:$4 sm:$0xff]   ;;  %v9196_v21 = vld [vmem:[#allocation10 + $0xc8] ss:$16 sps:$4 sm:$0xff]  }
 0x4e9   :  { %4013 = vmatprep.subr.bf16.mxu0 %v9179_v22  ;;  %4054 = vmatprep.subr.bf16.mxu1 %v9183_v24  ;;  %10210 = vst [vmem:[#allocation39_spill] sm:$0xff] %v9192_v17  ;;  %10211 = vst [vmem:[#allocation40_spill] sm:$0xff] %v9196_v21  ;;  %v9201_v22 = vld [vmem:[#allocation10 + $0xe4] ss:$16 sps:$4 sm:$0xff]   ;;  %v9205_v24 = vld [vmem:[#allocation10 + $0xe0] ss:$16 sps:$4 sm:$0xff]  }
 0x4ea   :  { %10212 = vst [vmem:[#allocation41_spill] sm:$0xff] %v9201_v22  ;;  %10214 = vst [vmem:[#allocation43_spill] sm:$0xff] %v9205_v24 }
 0x4ec   :  { %4014 = vmatpush1.bf16.msra.mxu0 %v9177_v42  ;;  %4055 = vmatpush1.bf16.msra.mxu1 %v9181_v23  ;;  %v9207_v42 = vld [vmem:[#allocation10 + $0xe8] ss:$16 sps:$4 sm:$0xff]  }
 0x4ed   :  { %4015 = vmatprep.subr.bf16.mxu0 %v9185_v38  ;;  %4056 = vmatprep.subr.bf16.mxu1 %v9188_v60  ;;  %10215 = vst [vmem:[#allocation44_spill] sm:$0xff] %v9207_v42  ;;  %v9213_v60 = vld [vmem:[#allocation10 + $0x104] ss:$16 sps:$4 sm:$0xff]   ;;  %v9219_v38 = vld [vmem:[#allocation10 + $0x108] ss:$16 sps:$4 sm:$0xff]  }
 0x4ee   :  { %10216 = vst [vmem:[#allocation45_spill] sm:$0xff] %v9213_v60  ;;  %10219 = vst [vmem:[#allocation48_spill] sm:$0xff] %v9219_v38 }
 0x4f0   :  { %4016 = vmatpush1.bf16.msra.mxu0 %v9192_v17  ;;  %4057 = vmatpush1.bf16.msra.mxu1 %v9196_v21  ;;  %v9215_v17 = vld [vmem:[#allocation10 + $0x10c] ss:$16 sps:$4 sm:$0xff]   ;;  %v9217_v21 = vld [vmem:[#allocation10 + $0x100] ss:$16 sps:$4 sm:$0xff]  }
 0x4f1   :  { %4017 = vmatprep.subr.bf16.mxu0 %v9201_v22  ;;  %4058 = vmatprep.subr.bf16.mxu1 %v9203_v10  ;;  %10217 = vst [vmem:[#allocation46_spill] sm:$0xff] %v9215_v17  ;;  %10218 = vst [vmem:[#allocation47_spill] sm:$0xff] %v9217_v21  ;;  %v9225_v10 = vld [vmem:[#allocation10 + $0x124] ss:$16 sps:$4 sm:$0xff]   ;;  %v9231_v22 = vld [vmem:[#allocation10 + $0x128] ss:$16 sps:$4 sm:$0xff]  }
 0x4f2   :  { %10220 = vst [vmem:[#allocation49_spill] sm:$0xff] %v9225_v10  ;;  %10223 = vst [vmem:[#allocation52_spill] sm:$0xff] %v9231_v22 }
 0x4f4   :  { %4018 = vmatpush1.bf16.msra.mxu0 %v9205_v24  ;;  %4059 = vmatpush1.bf16.msra.mxu1 %v9207_v42  ;;  %v9227_v24 = vld [vmem:[#allocation10 + $0x12c] ss:$16 sps:$4 sm:$0xff]   ;;  %v9229_v42 = vld [vmem:[#allocation10 + $0x120] ss:$16 sps:$4 sm:$0xff]  }
 0x4f5   :  { %4019 = vmatprep.subr.bf16.mxu0 %v9213_v60  ;;  %4060 = vmatprep.subr.bf16.mxu1 %v9215_v17  ;;  %10221 = vst [vmem:[#allocation50_spill] sm:$0xff] %v9227_v24  ;;  %10222 = vst [vmem:[#allocation51_spill] sm:$0xff] %v9229_v42  ;;  %v9237_v17 = vld [vmem:[#allocation10 + $0x144] ss:$16 sps:$4 sm:$0xff]   ;;  %v9243_v60 = vld [vmem:[#allocation10 + $0x148] ss:$16 sps:$4 sm:$0xff]  }
 0x4f6   :  { %10224 = vst [vmem:[#allocation53_spill] sm:$0xff] %v9237_v17  ;;  %10227 = vst [vmem:[#allocation56_spill] sm:$0xff] %v9243_v60 }
 0x4f8   :  { %4020 = vmatpush1.bf16.msra.mxu0 %v9217_v21  ;;  %4061 = vmatpush1.bf16.msra.mxu1 %v9219_v38  ;;  %v9239_v21 = vld [vmem:[#allocation10 + $0x14c] ss:$16 sps:$4 sm:$0xff]   ;;  %v9241_v38 = vld [vmem:[#allocation10 + $0x140] ss:$16 sps:$4 sm:$0xff]  }
 0x4f9   :  { %4021 = vmatprep.subr.bf16.mxu0 %v9225_v10  ;;  %4062 = vmatprep.subr.bf16.mxu1 %v9227_v24  ;;  %10225 = vst [vmem:[#allocation54_spill] sm:$0xff] %v9239_v21  ;;  %10226 = vst [vmem:[#allocation55_spill] sm:$0xff] %v9241_v38  ;;  %v9249_v24 = vld [vmem:[#allocation10 + $0x164] ss:$16 sps:$4 sm:$0xff]   ;;  %v9255_v10 = vld [vmem:[#allocation10 + $0x168] ss:$16 sps:$4 sm:$0xff]  }
 0x4fa   :  { %10228 = vst [vmem:[#allocation57_spill] sm:$0xff] %v9249_v24  ;;  %10231 = vst [vmem:[#allocation60_spill] sm:$0xff] %v9255_v10 }
 0x4fc   :  { %4022 = vmatpush1.bf16.msra.mxu0 %v9229_v42  ;;  %4063 = vmatpush1.bf16.msra.mxu1 %v9231_v22  ;;  %v9251_v42 = vld [vmem:[#allocation10 + $0x16c] ss:$16 sps:$4 sm:$0xff]   ;;  %v9253_v22 = vld [vmem:[#allocation10 + $0x160] ss:$16 sps:$4 sm:$0xff]  }
 0x4fd   :  { %4023 = vmatprep.subr.bf16.mxu0 %v9237_v17  ;;  %4064 = vmatprep.subr.bf16.mxu1 %v9239_v21  ;;  %10229 = vst [vmem:[#allocation58_spill] sm:$0xff] %v9251_v42  ;;  %10230 = vst [vmem:[#allocation59_spill] sm:$0xff] %v9253_v22  ;;  %v9261_v21 = vld [vmem:[#allocation10 + $0x184] ss:$16 sps:$4 sm:$0xff]   ;;  %v9267_v17 = vld [vmem:[#allocation10 + $0x188] ss:$16 sps:$4 sm:$0xff]  }
 0x4fe   :  { %10232 = vst [vmem:[#allocation61_spill] sm:$0xff] %v9261_v21  ;;  %10235 = vst [vmem:[#allocation64_spill] sm:$0xff] %v9267_v17 }
 0x500   :  { %4024 = vmatpush1.bf16.msra.mxu0 %v9241_v38  ;;  %4065 = vmatpush1.bf16.msra.mxu1 %v9243_v60  ;;  %v9263_v38 = vld [vmem:[#allocation10 + $0x18c] ss:$16 sps:$4 sm:$0xff]   ;;  %v9265_v60 = vld [vmem:[#allocation10 + $0x180] ss:$16 sps:$4 sm:$0xff]  }
 0x501   :  { %4025 = vmatprep.subr.bf16.mxu0 %v9249_v24  ;;  %4066 = vmatprep.subr.bf16.mxu1 %v9251_v42  ;;  %10233 = vst [vmem:[#allocation62_spill] sm:$0xff] %v9263_v38  ;;  %10234 = vst [vmem:[#allocation63_spill] sm:$0xff] %v9265_v60  ;;  %v9273_v42 = vld [vmem:[#allocation10 + $0x1a4] ss:$16 sps:$4 sm:$0xff]   ;;  %v9279_v24 = vld [vmem:[#allocation10 + $0x1a8] ss:$16 sps:$4 sm:$0xff]  }
 0x502   :  { %10236 = vst [vmem:[#allocation65_spill] sm:$0xff] %v9273_v42  ;;  %10239 = vst [vmem:[#allocation68_spill] sm:$0xff] %v9279_v24 }
 0x504   :  { %4026 = vmatpush1.bf16.msra.mxu0 %v9253_v22  ;;  %4067 = vmatpush1.bf16.msra.mxu1 %v9255_v10  ;;  %v9275_v22 = vld [vmem:[#allocation10 + $0x1ac] ss:$16 sps:$4 sm:$0xff]   ;;  %v9277_v10 = vld [vmem:[#allocation10 + $0x1a0] ss:$16 sps:$4 sm:$0xff]  }
 0x505   :  { %4027 = vmatprep.subr.bf16.mxu0 %v9261_v21  ;;  %4068 = vmatprep.subr.bf16.mxu1 %v9263_v38  ;;  %10237 = vst [vmem:[#allocation66_spill] sm:$0xff] %v9275_v22  ;;  %10238 = vst [vmem:[#allocation67_spill] sm:$0xff] %v9277_v10  ;;  %v9285_v38 = vld [vmem:[#allocation10 + $0x1c4] ss:$16 sps:$4 sm:$0xff]   ;;  %v9291_v21 = vld [vmem:[#allocation10 + $0x1c8] ss:$16 sps:$4 sm:$0xff]  }
 0x506   :  { %10240 = vst [vmem:[#allocation69_spill] sm:$0xff] %v9285_v38  ;;  %10243 = vst [vmem:[#allocation72_spill] sm:$0xff] %v9291_v21 }
 0x508   :  { %4028 = vmatpush1.bf16.msra.mxu0 %v9265_v60  ;;  %4069 = vmatpush1.bf16.msra.mxu1 %v9267_v17  ;;  %v9287_v60 = vld [vmem:[#allocation10 + $0x1cc] ss:$16 sps:$4 sm:$0xff]   ;;  %v9289_v17 = vld [vmem:[#allocation10 + $0x1c0] ss:$16 sps:$4 sm:$0xff]  }
 0x509   :  { %4029 = vmatprep.subr.bf16.mxu0 %v9273_v42  ;;  %4070 = vmatprep.subr.bf16.mxu1 %v9275_v22  ;;  %10241 = vst [vmem:[#allocation70_spill] sm:$0xff] %v9287_v60  ;;  %10242 = vst [vmem:[#allocation71_spill] sm:$0xff] %v9289_v17  ;;  %v9297_v22 = vld [vmem:[#allocation10 + $0x1e4] ss:$16 sps:$4 sm:$0xff]   ;;  %v9303_v42 = vld [vmem:[#allocation10 + $0x1e8] ss:$16 sps:$4 sm:$0xff]  }
 0x50a   :  { %10244 = vst [vmem:[#allocation73_spill] sm:$0xff] %v9297_v22  ;;  %10247 = vst [vmem:[#allocation76_spill] sm:$0xff] %v9303_v42 }
 0x50c   :  { %4030 = vmatpush1.bf16.msra.mxu0 %v9277_v10  ;;  %4071 = vmatpush1.bf16.msra.mxu1 %v9279_v24  ;;  %v9299_v10 = vld [vmem:[#allocation10 + $0x1ec] ss:$16 sps:$4 sm:$0xff]   ;;  %v9301_v24 = vld [vmem:[#allocation10 + $0x1e0] ss:$16 sps:$4 sm:$0xff]  }
 0x50d   :  { %4031 = vmatprep.subr.bf16.mxu0 %v9285_v38  ;;  %4072 = vmatprep.subr.bf16.mxu1 %v9287_v60  ;;  %10245 = vst [vmem:[#allocation74_spill] sm:$0xff] %v9299_v10  ;;  %10246 = vst [vmem:[#allocation75_spill] sm:$0xff] %v9301_v24 }
 0x510   :  { %4032 = vmatpush1.bf16.msra.mxu0 %v9289_v17  ;;  %4073 = vmatpush1.bf16.msra.mxu1 %v9291_v21 }
 0x511   :  { %4033 = vmatprep.subr.bf16.mxu0 %v9297_v22  ;;  %4074 = vmatprep.subr.bf16.mxu1 %v9299_v10 }
 0x514   :  { %4034 = vmatpush1.bf16.msra.mxu0 %v9301_v24  ;;  %4075 = vmatpush1.bf16.msra.mxu1 %v9303_v42 }
 0x515   :  { %4302 = vmatprep.subr.bf16.mxu0 %v9001_v61  ;;  %4343 = vmatprep.subr.bf16.mxu1 %v9003_v2 }
 0x58a   :  { %v3238_v21 = vpop.f32.mrb[28].mxu0  ;;  %v3279_v17 = vpop.f32.mrb[28].mxu1 }
 0x58b   :  { %v3239_v60 = vadd.f32 %v3238_v21, %v10188_v18  ;;  %v3240_v38 = vpop.f32.mrb[29].mxu0  ;;  %v3281_v23 = vpop.f32.mrb[29].mxu1  ;;  %v3280_v42 = vadd.f32 %v3279_v17, %v10190_v25 }
 0x58c   :  { %v3241_v57 = vadd.f32 %v3240_v38, %v10189_v16  ;;  %v3242_v14 = vpop.f32.mrb[30].mxu0  ;;  %v3283_v22 = vpop.f32.mrb[30].mxu1  ;;  %v3282_v61 = vadd.f32 %v3281_v23, %v10191_v27  ;;  %v3306_v23 = vld [vmem:[#allocation5 + $0x48] sm:$0xff] }
 0x58d   :  { %v3286_v6 = vmul.f32 0.5, %v3239_v60  ;;  %v3243_v10 = vpop.f32.mrb[31].mxu0  ;;  %v3284_v19 = vpop.f32.mrb[31].mxu1  ;;  %v3310_v11 = vunpack.c.h.bf16 %v3306_v23 }
 0x58e   :  { %v3290_v24 = vmul.f32 0.5, %v3241_v57  ;;  %v3295_v2 = vmul.f32 0.5, %v3282_v61 }
 0x58f   :  { %8017 = vtanh.f32 %v3286_v6  ;;  %v3305_v6 = vld [vmem:[#allocation5 + $0x40] sm:$0xff] }
 0x590   :  { %8019 = vtanh.f32 %v3290_v24  ;;  %v3307_v17 = vunpack.c.l.bf16 %v3305_v6  ;;  %v3308_v24 = vunpack.c.h.bf16 %v3305_v6 }
 0x591   :  { %8021 = vtanh.f32 %v3280_v42 }
 0x592   :  { %8023 = vtanh.f32 %v3295_v2  ;;  %v3309_v2 = vunpack.c.l.bf16 %v3306_v23 }
 0x599   :  { %v8018_v7 = vpop.eup %8017 }
 0x59a   :  { %v8020_v21 = vpop.eup %8019  ;;  %v3288_v18 = vmul.f32 0.5, %v8018_v7 }
 0x59b   :  { %v3292_v41 = vmul.f32 0.5, %v8020_v21  ;;  %v8022_v14 = vpop.eup %8021 }
 0x59c   :  { %v3289_v38 = vadd.f32 0.5, %v3288_v18  ;;  %v8024_v10 = vpop.eup %8023 }
 0x59d   :  { %v3293_v22 = vadd.f32 0.5, %v3292_v41  ;;  %v3297_v42 = vmul.f32 0.5, %v8024_v10 }
 0x59e   :  { %v3300_v60 = vmul.f32 %v8022_v14, %v3289_v38 }
 0x59f   :  { %v3299_v19 = vmul.f32 %v3293_v22, %v9012_v29  ;;  %v3298_v41 = vadd.f32 0.5, %v3297_v42 }
 0x5a1   :  { %v9316_v57 = vadd.f32 %v3300_v60, %v3299_v19 }
 0x5a3   :  { %10248 = vst [vmem:[#allocation77_spill] sm:$0xff] %v9316_v57  ;;  %8025 = vtanh.f32 %v9316_v57 }
 0x5aa   :  { %v3537_v61 = vpop.f32.mrb[32].mxu0  ;;  %v3578_v7 = vpop.f32.mrb[32].mxu1 }
 0x5ab   :  { %v3585_v21 = vadd.f32 %v3537_v61, %v3307_v17  ;;  %v3539_v18 = vpop.f32.mrb[33].mxu0  ;;  %v3580_v27 = vpop.f32.mrb[33].mxu1  ;;  %v3587_v10 = vadd.f32 %v3578_v7, %v3309_v2 }
 0x5ac   :  { %v3586_v38 = vadd.f32 %v3539_v18, %v3308_v24  ;;  %v3541_v14 = vpop.f32.mrb[34].mxu0  ;;  %v3582_v29 = vpop.f32.mrb[34].mxu1  ;;  %v3588_v17 = vadd.f32 %v3580_v27, %v3310_v11 }
 0x5ad   :  { %v8026_v22 = vpop.eup %8025  ;;  %v3589_v60 = vmul.f32 0.5, %v3585_v21  ;;  %v3542_v19 = vpop.f32.mrb[35].mxu0 }
 0x5ae   :  { %v3583_v57 = vpop.f32.mrb[35].mxu1  ;;  %v3593_v25 = vmul.f32 0.5, %v3586_v38  ;;  %v3303_v16 = vmul.f32 %v8026_v22, %v3298_v41  ;;  %v3598_v61 = vmul.f32 0.5, %v3588_v17  ;;  %v10289_v22 = vld [vmem:[#allocation62_spill] sm:$0xff]  ;;  %v10291_v19 = vld [vmem:[#allocation64_spill] sm:$0xff]  ;;  %v10294_v17 = vld [vmem:[#allocation67_spill] sm:$0xff] }
 0x5af   :  { %8027 = vtanh.f32 %v3589_v60  ;;  %v10290_v60 = vld [vmem:[#allocation63_spill] sm:$0xff] }
 0x5b0   :  { %8029 = vtanh.f32 %v3593_v25  ;;  %v7355_v6 = vpack.c.bf16 %v3303_v16, %v3303_v16 }
 0x5b1   :  { %8031 = vtanh.f32 %v3587_v10  ;;  %v10292_v10 = vld [vmem:[#allocation65_spill] sm:$0xff] }
 0x5b2   :  { %4035 = vmatprep.mubr.bf16.mxu0 %v7355_v6  ;;  %4076 = vmatprep.mubr.bf16.mxu1 %v7355_v6  ;;  %8033 = vtanh.f32 %v3598_v61  ;;  %v10293_v6 = vld [vmem:[#allocation66_spill] sm:$0xff]  ;;  %v10295_v61 = vld [vmem:[#allocation68_spill] sm:$0xff] }
 0x5b9   :  { %v8028_v42 = vpop.eup %8027 }
 0x5ba   :  { %v8030_v24 = vpop.eup %8029  ;;  %v3591_v18 = vmul.f32 0.5, %v8028_v42  ;;  %v10296_v42 = vld [vmem:[#allocation69_spill] sm:$0xff] }
 0x5bb   :  { %v3595_v14 = vmul.f32 0.5, %v8030_v24  ;;  %v8032_v29 = vpop.eup %8031  ;;  %v10297_v24 = vld [vmem:[#allocation70_spill] sm:$0xff] }
 0x5bc   :  { %v3592_v21 = vadd.f32 0.5, %v3591_v18  ;;  %v8034_v16 = vpop.eup %8033  ;;  %v10298_v18 = vld [vmem:[#allocation71_spill] sm:$0xff] }
 0x5bd   :  { %v3596_v57 = vadd.f32 0.5, %v3595_v14  ;;  %v3600_v25 = vmul.f32 0.5, %v8034_v16  ;;  %v10299_v14 = vld [vmem:[#allocation72_spill] sm:$0xff] }
 0x5be   :  { %v3603_v38 = vmul.f32 %v8032_v29, %v3592_v21  ;;  %v10300_v21 = vld [vmem:[#allocation73_spill] sm:$0xff]  ;;  %v10301_v29 = vld [vmem:[#allocation74_spill] sm:$0xff] }
 0x5bf   :  { %v3602_v41 = vmul.f32 %v3596_v57, %v9016_v20  ;;  %v3601_v23 = vadd.f32 0.5, %v3600_v25  ;;  %v10249_v20 = vld [vmem:[#allocation22_spill] sm:$0xff]  ;;  %v10302_v57 = vld [vmem:[#allocation75_spill] sm:$0xff] }
 0x5c0   :  { %v9421_v16 = vld [vmem:[#allocation8 + $0xc] ss:$16 sps:$4 sm:$0xff]  }
 0x5c1   :  { %v9320_v7 = vadd.f32 %v3603_v38, %v3602_v41  ;;  %v10303_v38 = vld [vmem:[#allocation76_spill] sm:$0xff]  ;;  %v9419_v41 = vld [vmem:[#allocation8 + $0x4] ss:$16 sps:$4 sm:$0xff]  }
 0x5c3   :  { %8035 = vtanh.f32 %v9320_v7 }
 0x5cd   :  { %v8036_v27 = vpop.eup %8035 }
 0x5ce   :  { %v3606_v11 = vmul.f32 %v8036_v27, %v3601_v23  ;;  %v10304_v27 = vld [vmem:[#allocation18_spill] sm:$0xff] }
 0x5d0   :  { %v3607_v2 = vpack.c.bf16 %v3606_v11, %v3606_v11 }
 0x5d2   :  { %4036 = vmatmul.mubr.bf16.vlgmr.msra.gmra.mrb[36].mxu0 %v3607_v2  ;;  %4077 = vmatmul.mubr.bf16.vlgmr.msra.gmra.mrb[36].mxu1 %v3607_v2 }
 0x5d3   :  { %4303 = vmatpush1.bf16.msra.mxu0 %v9019_v26  ;;  %4344 = vmatpush1.bf16.msra.mxu1 %v9021_v28  ;;  %v10250_v26 = vld [vmem:[#allocation23_spill] sm:$0xff]  ;;  %v10251_v28 = vld [vmem:[#allocation24_spill] sm:$0xff] }
 0x5d4   :  { %4304 = vmatprep.subr.bf16.mxu0 %v9025_v40  ;;  %4345 = vmatprep.subr.bf16.mxu1 %v9027_v43  ;;  %v10252_v40 = vld [vmem:[#allocation25_spill] sm:$0xff]  ;;  %v10253_v43 = vld [vmem:[#allocation26_spill] sm:$0xff] }
 0x5d5   :  { %4334 = vmatprep.mubr.bf16.mxu0 %v10066_v49  ;;  %4375 = vmatprep.mubr.bf16.mxu1 %v10066_v49 }
 0x5d7   :  { %4305 = vmatpush1.bf16.msra.mxu0 %v9033_v62  ;;  %4346 = vmatpush1.bf16.msra.mxu1 %v9035_v44  ;;  %v10254_v62 = vld [vmem:[#allocation27_spill] sm:$0xff]  ;;  %v10255_v44 = vld [vmem:[#allocation28_spill] sm:$0xff] }
 0x5d8   :  { %4306 = vmatprep.subr.bf16.mxu0 %v9039_v46  ;;  %4347 = vmatprep.subr.bf16.mxu1 %v9041_v45  ;;  %v10256_v46 = vld [vmem:[#allocation29_spill] sm:$0xff]  ;;  %v10257_v45 = vld [vmem:[#allocation30_spill] sm:$0xff] }
 0x5db   :  { %4307 = vmatpush1.bf16.msra.mxu0 %v9047_v32  ;;  %4348 = vmatpush1.bf16.msra.mxu1 %v9049_v0  ;;  %v10258_v32 = vld [vmem:[#allocation31_spill] sm:$0xff]  ;;  %v10259_v0 = vld [vmem:[#allocation32_spill] sm:$0xff] }
 0x5dc   :  { %4308 = vmatprep.subr.bf16.mxu0 %v9053_v39  ;;  %4349 = vmatprep.subr.bf16.mxu1 %v9055_v33  ;;  %v10260_v39 = vld [vmem:[#allocation36_spill] sm:$0xff]  ;;  %v10261_v33 = vld [vmem:[#allocation35_spill] sm:$0xff] }
 0x5df   :  { %4309 = vmatpush1.bf16.msra.mxu0 %v9059_v34  ;;  %4350 = vmatpush1.bf16.msra.mxu1 %v9061_v30  ;;  %v10262_v34 = vld [vmem:[#allocation34_spill] sm:$0xff]  ;;  %v10263_v30 = vld [vmem:[#allocation33_spill] sm:$0xff] }
 0x5e0   :  { %4310 = vmatprep.subr.bf16.mxu0 %v9065_v47  ;;  %4351 = vmatprep.subr.bf16.mxu1 %v9067_v48  ;;  %v10264_v47 = vld [vmem:[#allocation37_spill] sm:$0xff]  ;;  %v10265_v48 = vld [vmem:[#allocation38_spill] sm:$0xff] }
 0x5e3   :  { %4311 = vmatpush1.bf16.msra.mxu0 %v9071_v31  ;;  %4352 = vmatpush1.bf16.msra.mxu1 %v9073_v35  ;;  %v10266_v31 = vld [vmem:[#allocation39_spill] sm:$0xff]  ;;  %v10267_v35 = vld [vmem:[#allocation40_spill] sm:$0xff] }
 0x5e4   :  { %4312 = vmatprep.subr.bf16.mxu0 %v9077_v36  ;;  %4353 = vmatprep.subr.bf16.mxu1 %v9079_v37  ;;  %v10268_v36 = vld [vmem:[#allocation41_spill] sm:$0xff]  ;;  %v10269_v37 = vld [vmem:[#allocation42_spill] sm:$0xff] }
 0x5e7   :  { %4313 = vmatpush1.bf16.msra.mxu0 %v9083_v50  ;;  %4354 = vmatpush1.bf16.msra.mxu1 %v9085_v51  ;;  %v10270_v50 = vld [vmem:[#allocation43_spill] sm:$0xff]  ;;  %v10271_v51 = vld [vmem:[#allocation44_spill] sm:$0xff] }
 0x5e8   :  { %4314 = vmatprep.subr.bf16.mxu0 %v9089_v52  ;;  %4355 = vmatprep.subr.bf16.mxu1 %v9091_v53  ;;  %v10272_v52 = vld [vmem:[#allocation45_spill] sm:$0xff]  ;;  %v10273_v53 = vld [vmem:[#allocation46_spill] sm:$0xff] }
 0x5eb   :  { %4315 = vmatpush1.bf16.msra.mxu0 %v9095_v54  ;;  %4356 = vmatpush1.bf16.msra.mxu1 %v9097_v55  ;;  %v10274_v54 = vld [vmem:[#allocation47_spill] sm:$0xff]  ;;  %v10275_v55 = vld [vmem:[#allocation48_spill] sm:$0xff] }
 0x5ec   :  { %4316 = vmatprep.subr.bf16.mxu0 %v9101_v58  ;;  %4357 = vmatprep.subr.bf16.mxu1 %v9103_v59  ;;  %v10276_v58 = vld [vmem:[#allocation49_spill] sm:$0xff]  ;;  %v10277_v59 = vld [vmem:[#allocation50_spill] sm:$0xff] }
 0x5ef   :  { %4317 = vmatpush1.bf16.msra.mxu0 %v9107_v13  ;;  %4358 = vmatpush1.bf16.msra.mxu1 %v9109_v5  ;;  %v10278_v13 = vld [vmem:[#allocation51_spill] sm:$0xff]  ;;  %v10279_v5 = vld [vmem:[#allocation52_spill] sm:$0xff] }
 0x5f0   :  { %4802 = vmatprep.subr.bf16.mxu0 %v9117_v1  ;;  %4843 = vmatprep.subr.bf16.mxu1 %v9119_v8  ;;  %v10280_v1 = vld [vmem:[#allocation53_spill] sm:$0xff]  ;;  %v10281_v8 = vld [vmem:[#allocation54_spill] sm:$0xff] }
 0x5f2   :  { %4335 = vmatmul.mubr.bf16.vlgmr.msra.gmra.mrb[40].mxu0 %v3607_v2  ;;  %4376 = vmatmul.mubr.bf16.vlgmr.msra.gmra.mrb[40].mxu1 %v3607_v2 }
 0x5f3   :  { %4803 = vmatpush1.bf16.msra.mxu0 %v9121_v3  ;;  %4844 = vmatpush1.bf16.msra.mxu1 %v9123_v9  ;;  %v10282_v3 = vld [vmem:[#allocation55_spill] sm:$0xff]  ;;  %v10283_v9 = vld [vmem:[#allocation56_spill] sm:$0xff] }
 0x5f4   :  { %4804 = vmatprep.subr.bf16.mxu0 %v9129_v56  ;;  %4845 = vmatprep.subr.bf16.mxu1 %v9131_v12  ;;  %v10284_v56 = vld [vmem:[#allocation57_spill] sm:$0xff]  ;;  %v10285_v12 = vld [vmem:[#allocation58_spill] sm:$0xff] }
 0x5f7   :  { %4805 = vmatpush1.bf16.msra.mxu0 %v9133_v15  ;;  %4846 = vmatpush1.bf16.msra.mxu1 %v9135_v63  ;;  %v10286_v15 = vld [vmem:[#allocation59_spill] sm:$0xff]  ;;  %v10287_v63 = vld [vmem:[#allocation60_spill] sm:$0xff] }
 0x5f8   :  { %4806 = vmatprep.subr.bf16.mxu0 %v9141_v4  ;;  %4847 = vmatprep.subr.bf16.mxu1 %v10249_v20  ;;  %v10288_v4 = vld [vmem:[#allocation61_spill] sm:$0xff] }
 0x5fb   :  { %4807 = vmatpush1.bf16.msra.mxu0 %v10250_v26  ;;  %4848 = vmatpush1.bf16.msra.mxu1 %v10251_v28  ;;  %v10305_v26 = vld [vmem:[#allocation19_spill] sm:$0xff] }
 0x5fc   :  { %4808 = vmatprep.subr.bf16.mxu0 %v10252_v40  ;;  %4849 = vmatprep.subr.bf16.mxu1 %v10253_v43 }
 0x5ff   :  { %4809 = vmatpush1.bf16.msra.mxu0 %v10254_v62  ;;  %4850 = vmatpush1.bf16.msra.mxu1 %v10255_v44 }
 0x600   :  { %4810 = vmatprep.subr.bf16.mxu0 %v10256_v46  ;;  %4851 = vmatprep.subr.bf16.mxu1 %v10257_v45 }
 0x603   :  { %4811 = vmatpush1.bf16.msra.mxu0 %v10258_v32  ;;  %4852 = vmatpush1.bf16.msra.mxu1 %v10259_v0  ;;  %v10306_v32 = vld [vmem:[#allocation20_spill] sm:$0xff] }
 0x604   :  { %4812 = vmatprep.subr.bf16.mxu0 %v10260_v39  ;;  %4853 = vmatprep.subr.bf16.mxu1 %v10261_v33  ;;  %v10307_v39 = vld [vmem:[#allocation21_spill] sm:$0xff] }
 0x607   :  { %4813 = vmatpush1.bf16.msra.mxu0 %v10262_v34  ;;  %4854 = vmatpush1.bf16.msra.mxu1 %v10263_v30 }
 0x608   :  { %4814 = vmatprep.subr.bf16.mxu0 %v10264_v47  ;;  %4855 = vmatprep.subr.bf16.mxu1 %v10265_v48 }
 0x60b   :  { %4815 = vmatpush1.bf16.msra.mxu0 %v10266_v31  ;;  %4856 = vmatpush1.bf16.msra.mxu1 %v10267_v35 }
 0x60c   :  { %4816 = vmatprep.subr.bf16.mxu0 %v10268_v36  ;;  %4857 = vmatprep.subr.bf16.mxu1 %v10269_v37 }
 0x60f   :  { %4817 = vmatpush1.bf16.msra.mxu0 %v10270_v50  ;;  %4858 = vmatpush1.bf16.msra.mxu1 %v10271_v51  ;;  %v10308_v51 = vld [vmem:[#allocation77_spill] sm:$0xff] }
 0x610   :  { %4818 = vmatprep.subr.bf16.mxu0 %v10272_v52  ;;  %4859 = vmatprep.subr.bf16.mxu1 %v10273_v53 }
 0x613   :  { %4819 = vmatpush1.bf16.msra.mxu0 %v10274_v54  ;;  %4860 = vmatpush1.bf16.msra.mxu1 %v10275_v55  ;;  %v4104_v54 = vld [vmem:[#allocation5 + $0x50] sm:$0xff] }
 0x614   :  { %4820 = vmatprep.subr.bf16.mxu0 %v10276_v58  ;;  %4861 = vmatprep.subr.bf16.mxu1 %v10277_v59  ;;  %v4106_v58 = vunpack.c.l.bf16 %v4104_v54 }
 0x617   :  { %4821 = vmatpush1.bf16.msra.mxu0 %v10278_v13  ;;  %4862 = vmatpush1.bf16.msra.mxu1 %v10279_v5  ;;  %v4105_v13 = vld [vmem:[#allocation5 + $0x58] sm:$0xff]  ;;  %v4107_v5 = vunpack.c.h.bf16 %v4104_v54 }
 0x618   :  { %4822 = vmatprep.subr.bf16.mxu0 %v10280_v1  ;;  %4863 = vmatprep.subr.bf16.mxu1 %v10281_v8  ;;  %v9479_v54 = vld [vmem:[#allocation8 + $0x68] ss:$16 sps:$4 sm:$0xff]  }
 0x61b   :  { %4823 = vmatpush1.bf16.msra.mxu0 %v10282_v3  ;;  %4864 = vmatpush1.bf16.msra.mxu1 %v10283_v9  ;;  %v4108_v9 = vunpack.c.l.bf16 %v4105_v13 }
 0x61c   :  { %4824 = vmatprep.subr.bf16.mxu0 %v10284_v56  ;;  %4865 = vmatprep.subr.bf16.mxu1 %v10285_v12 }
 0x61f   :  { %4825 = vmatpush1.bf16.msra.mxu0 %v10286_v15  ;;  %4866 = vmatpush1.bf16.msra.mxu1 %v10287_v63 }
 0x620   :  { %4826 = vmatprep.subr.bf16.mxu0 %v10288_v4  ;;  %4867 = vmatprep.subr.bf16.mxu1 %v10289_v22 }
 0x623   :  { %4827 = vmatpush1.bf16.msra.mxu0 %v10290_v60  ;;  %4868 = vmatpush1.bf16.msra.mxu1 %v10291_v19 }
 0x624   :  { %4828 = vmatprep.subr.bf16.mxu0 %v10292_v10  ;;  %4869 = vmatprep.subr.bf16.mxu1 %v10293_v6 }
 0x627   :  { %4829 = vmatpush1.bf16.msra.mxu0 %v10294_v17  ;;  %4870 = vmatpush1.bf16.msra.mxu1 %v10295_v61 }
 0x628   :  { %4830 = vmatprep.subr.bf16.mxu0 %v10296_v42  ;;  %4871 = vmatprep.subr.bf16.mxu1 %v10297_v24  ;;  %v4109_v24 = vunpack.c.h.bf16 %v4105_v13  ;;  %v9491_v13 = vld [vmem:[#allocation8 + $0x88] ss:$16 sps:$4 sm:$0xff]  }
 0x62b   :  { %4831 = vmatpush1.bf16.msra.mxu0 %v10298_v18  ;;  %4872 = vmatpush1.bf16.msra.mxu1 %v10299_v14 }
 0x62c   :  { %4832 = vmatprep.subr.bf16.mxu0 %v10300_v21  ;;  %4873 = vmatprep.subr.bf16.mxu1 %v10301_v29 }
 0x62f   :  { %4833 = vmatpush1.bf16.msra.mxu0 %v10302_v57  ;;  %4874 = vmatpush1.bf16.msra.mxu1 %v10303_v38 }
 0x630   :  { %5101 = vmatprep.subr.bf16.mxu0 %v9419_v41  ;;  %5142 = vmatprep.subr.bf16.mxu1 %v9421_v16 }
 0x6a5   :  { %v4037_v25 = vpop.f32.mrb[36].mxu0  ;;  %v4078_v23 = vpop.f32.mrb[36].mxu1 }
 0x6a6   :  { %v4038_v11 = vadd.f32 %v4037_v25, %v10304_v27  ;;  %v4039_v2 = vpop.f32.mrb[37].mxu0  ;;  %v4080_v20 = vpop.f32.mrb[37].mxu1  ;;  %v4079_v0 = vadd.f32 %v4078_v23, %v10306_v32 }
 0x6a7   :  { %v4040_v28 = vadd.f32 %v4039_v2, %v10305_v26  ;;  %v4041_v40 = vpop.f32.mrb[38].mxu0  ;;  %v4082_v43 = vpop.f32.mrb[38].mxu1  ;;  %v4081_v33 = vadd.f32 %v4080_v20, %v10307_v39 }
 0x6a8   :  { %v4085_v62 = vmul.f32 0.5, %v4038_v11  ;;  %v4042_v44 = vpop.f32.mrb[39].mxu0  ;;  %v4083_v46 = vpop.f32.mrb[39].mxu1 }
 0x6a9   :  { %v4089_v45 = vmul.f32 0.5, %v4040_v28  ;;  %v4094_v34 = vmul.f32 0.5, %v4081_v33  ;;  %v9439_v33 = vld [vmem:[#allocation8 + $0x8] ss:$16 sps:$4 sm:$0xff]  }
 0x6aa   :  { %8037 = vtanh.f32 %v4085_v62 }
 0x6ab   :  { %8039 = vtanh.f32 %v4089_v45 }
 0x6ac   :  { %8041 = vtanh.f32 %v4079_v0  ;;  %v9437_v0 = vld [vmem:[#allocation8] ss:$16 sps:$4 sm:$0xff]  }
 0x6ad   :  { %8043 = vtanh.f32 %v4094_v34 }
 0x6b4   :  { %v8038_v30 = vpop.eup %8037 }
 0x6b5   :  { %v8040_v47 = vpop.eup %8039  ;;  %v4087_v48 = vmul.f32 0.5, %v8038_v30  ;;  %v9443_v30 = vld [vmem:[#allocation8 + $0x24] ss:$16 sps:$4 sm:$0xff]  }
 0x6b6   :  { %v4091_v31 = vmul.f32 0.5, %v8040_v47  ;;  %v8042_v36 = vpop.eup %8041  ;;  %v9445_v47 = vld [vmem:[#allocation8 + $0x2c] ss:$16 sps:$4 sm:$0xff]  }
 0x6b7   :  { %v4088_v35 = vadd.f32 0.5, %v4087_v48  ;;  %v8044_v55 = vpop.eup %8043  ;;  %v9453_v48 = vld [vmem:[#allocation8 + $0x28] ss:$16 sps:$4 sm:$0xff]  }
 0x6b8   :  { %v4092_v37 = vadd.f32 0.5, %v4091_v31  ;;  %v4096_v59 = vmul.f32 0.5, %v8044_v55  ;;  %v9457_v31 = vld [vmem:[#allocation8 + $0x44] ss:$16 sps:$4 sm:$0xff]  }
 0x6b9   :  { %v4099_v50 = vmul.f32 %v8042_v36, %v4088_v35  ;;  %v9459_v35 = vld [vmem:[#allocation8 + $0x4c] ss:$16 sps:$4 sm:$0xff]   ;;  %v9465_v36 = vld [vmem:[#allocation8 + $0x40] ss:$16 sps:$4 sm:$0xff]   ;;  %v9483_v55 = vld [vmem:[#allocation8 + $0x84] ss:$16 sps:$4 sm:$0xff]  }
 0x6ba   :  { %v4098_v52 = vmul.f32 %v4092_v37, %v10308_v51  ;;  %v4097_v15 = vadd.f32 0.5, %v4096_v59  ;;  %v9467_v37 = vld [vmem:[#allocation8 + $0x48] ss:$16 sps:$4 sm:$0xff]   ;;  %v9473_v51 = vld [vmem:[#allocation8 + $0x6c] ss:$16 sps:$4 sm:$0xff]  }
 0x6bb   :  { %v9489_v59 = vld [vmem:[#allocation8 + $0x80] ss:$16 sps:$4 sm:$0xff]  }
 0x6bc   :  { %v9430_v53 = vadd.f32 %v4099_v50, %v4098_v52  ;;  %v9471_v50 = vld [vmem:[#allocation8 + $0x64] ss:$16 sps:$4 sm:$0xff]   ;;  %v9477_v52 = vld [vmem:[#allocation8 + $0x60] ss:$16 sps:$4 sm:$0xff]  }
 0x6be   :  { %8045 = vtanh.f32 %v9430_v53 }
 0x6c5   :  { %v4336_v1 = vpop.f32.mrb[40].mxu0  ;;  %v4377_v8 = vpop.f32.mrb[40].mxu1 }
 0x6c6   :  { %v4384_v3 = vadd.f32 %v4336_v1, %v4106_v58  ;;  %v4338_v56 = vpop.f32.mrb[41].mxu0  ;;  %v4379_v12 = vpop.f32.mrb[41].mxu1  ;;  %v4386_v42 = vadd.f32 %v4377_v8, %v4108_v9  ;;  %v9485_v58 = vld [vmem:[#allocation8 + $0x8c] ss:$16 sps:$4 sm:$0xff]   ;;  %v9501_v8 = vld [vmem:[#allocation8 + $0xa0] ss:$16 sps:$4 sm:$0xff]  }
 0x6c7   :  { %v4385_v63 = vadd.f32 %v4338_v56, %v4107_v5  ;;  %v4340_v4 = vpop.f32.mrb[42].mxu0  ;;  %v4381_v22 = vpop.f32.mrb[42].mxu1  ;;  %v4387_v14 = vadd.f32 %v4379_v12, %v4109_v24  ;;  %v9495_v5 = vld [vmem:[#allocation8 + $0xa4] ss:$16 sps:$4 sm:$0xff]   ;;  %v9497_v1 = vld [vmem:[#allocation8 + $0xac] ss:$16 sps:$4 sm:$0xff]  }
 0x6c8   :  { %v8046_v60 = vpop.eup %8045  ;;  %v4388_v19 = vmul.f32 0.5, %v4384_v3  ;;  %v4341_v10 = vpop.f32.mrb[43].mxu0  ;;  %v9503_v3 = vld [vmem:[#allocation8 + $0xa8] ss:$16 sps:$4 sm:$0xff]   ;;  %v9507_v9 = vld [vmem:[#allocation8 + $0xc4] ss:$16 sps:$4 sm:$0xff]  }
 0x6c9   :  { %v4382_v6 = vpop.f32.mrb[43].mxu1  ;;  %v4392_v17 = vmul.f32 0.5, %v4385_v63  ;;  %v4102_v61 = vmul.f32 %v8046_v60, %v4097_v15  ;;  %v4397_v21 = vmul.f32 0.5, %v4387_v14  ;;  %v9509_v56 = vld [vmem:[#allocation8 + $0xcc] ss:$16 sps:$4 sm:$0xff]  }
 0x6ca   :  { %8047 = vtanh.f32 %v4388_v19  ;;  %v9513_v12 = vld [vmem:[#allocation8 + $0xc0] ss:$16 sps:$4 sm:$0xff]   ;;  %v9515_v15 = vld [vmem:[#allocation8 + $0xc8] ss:$16 sps:$4 sm:$0xff]   ;;  %v9519_v63 = vld [vmem:[#allocation8 + $0xe4] ss:$16 sps:$4 sm:$0xff]  }
 0x6cb   :  { %8049 = vtanh.f32 %v4392_v17  ;;  %v7357_v18 = vpack.c.bf16 %v4102_v61, %v4102_v61  ;;  %v9521_v4 = vld [vmem:[#allocation8 + $0xec] ss:$16 sps:$4 sm:$0xff]   ;;  %v9525_v22 = vld [vmem:[#allocation8 + $0xe0] ss:$16 sps:$4 sm:$0xff]   ;;  %v9527_v60 = vld [vmem:[#allocation8 + $0xe8] ss:$16 sps:$4 sm:$0xff]  }
 0x6cc   :  { %8051 = vtanh.f32 %v4386_v42  ;;  %v9535_v19 = vld [vmem:[#allocation10 + $0x4] ss:$16 sps:$4 sm:$0xff]   ;;  %v9537_v10 = vld [vmem:[#allocation10 + $0xc] ss:$16 sps:$4 sm:$0xff]   ;;  %v9539_v6 = vld [vmem:[#allocation10] ss:$16 sps:$4 sm:$0xff]  }
 0x6cd   :  { %4834 = vmatprep.mubr.bf16.mxu0 %v7357_v18  ;;  %4875 = vmatprep.mubr.bf16.mxu1 %v7357_v18  ;;  %8053 = vtanh.f32 %v4397_v21  ;;  %v9541_v17 = vld [vmem:[#allocation10 + $0x8] ss:$16 sps:$4 sm:$0xff]   ;;  %v9547_v61 = vld [vmem:[#allocation10 + $0x24] ss:$16 sps:$4 sm:$0xff]   ;;  %v9549_v42 = vld [vmem:[#allocation10 + $0x2c] ss:$16 sps:$4 sm:$0xff]  }
 0x6ce   :  { %v9551_v24 = vld [vmem:[#allocation10 + $0x20] ss:$16 sps:$4 sm:$0xff]   ;;  %v9553_v18 = vld [vmem:[#allocation10 + $0x28] ss:$16 sps:$4 sm:$0xff]   ;;  %v9559_v14 = vld [vmem:[#allocation10 + $0x44] ss:$16 sps:$4 sm:$0xff]  }
 0x6cf   :  { %v9561_v21 = vld [vmem:[#allocation10 + $0x4c] ss:$16 sps:$4 sm:$0xff]  }
 0x6d0   :  { %10309 = vst [vmem:[#allocation22_spill] sm:$0xff] %v9561_v21 }
 0x6d4   :  { %v8048_v29 = vpop.eup %8047 }
 0x6d5   :  { %v8050_v57 = vpop.eup %8049  ;;  %v4390_v38 = vmul.f32 0.5, %v8048_v29  ;;  %v9563_v29 = vld [vmem:[#allocation10 + $0x40] ss:$16 sps:$4 sm:$0xff]  }
 0x6d6   :  { %v4394_v25 = vmul.f32 0.5, %v8050_v57  ;;  %v8052_v11 = vpop.eup %8051  ;;  %10310 = vst [vmem:[#allocation23_spill] sm:$0xff] %v9563_v29  ;;  %v9565_v57 = vld [vmem:[#allocation10 + $0x48] ss:$16 sps:$4 sm:$0xff]  }
 0x6d7   :  { %v4391_v23 = vadd.f32 0.5, %v4390_v38  ;;  %v8054_v43 = vpop.eup %8053  ;;  %10311 = vst [vmem:[#allocation24_spill] sm:$0xff] %v9565_v57  ;;  %v9571_v38 = vld [vmem:[#allocation10 + $0x64] ss:$16 sps:$4 sm:$0xff]  }
 0x6d8   :  { %v4395_v2 = vadd.f32 0.5, %v4394_v25  ;;  %v4399_v62 = vmul.f32 0.5, %v8054_v43  ;;  %10312 = vst [vmem:[#allocation25_spill] sm:$0xff] %v9571_v38  ;;  %v9573_v25 = vld [vmem:[#allocation10 + $0x6c] ss:$16 sps:$4 sm:$0xff]  }
 0x6d9   :  { %v4402_v20 = vmul.f32 %v8052_v11, %v4391_v23  ;;  %10313 = vst [vmem:[#allocation26_spill] sm:$0xff] %v9573_v25  ;;  %v9575_v23 = vld [vmem:[#allocation10 + $0x60] ss:$16 sps:$4 sm:$0xff]   ;;  %v9577_v11 = vld [vmem:[#allocation10 + $0x68] ss:$16 sps:$4 sm:$0xff]  }
 0x6da   :  { %v4401_v28 = vmul.f32 %v4395_v2, %v9320_v7  ;;  %v4400_v44 = vadd.f32 0.5, %v4399_v62  ;;  %v9451_v7 = vld [vmem:[#allocation8 + $0x20] ss:$16 sps:$4 sm:$0xff]   ;;  %10314 = vst [vmem:[#allocation27_spill] sm:$0xff] %v9575_v23  ;;  %10315 = vst [vmem:[#allocation28_spill] sm:$0xff] %v9577_v11 }
 0x6db   :  { %v9583_v2 = vld [vmem:[#allocation10 + $0x84] ss:$16 sps:$4 sm:$0xff]   ;;  %v9589_v43 = vld [vmem:[#allocation10 + $0x88] ss:$16 sps:$4 sm:$0xff]   ;;  %v9595_v62 = vld [vmem:[#allocation10 + $0xa0] ss:$16 sps:$4 sm:$0xff]  }
 0x6dc   :  { %v9434_v40 = vadd.f32 %v4402_v20, %v4401_v28  ;;  %10316 = vst [vmem:[#allocation29_spill] sm:$0xff] %v9583_v2  ;;  %v9585_v20 = vld [vmem:[#allocation10 + $0x8c] ss:$16 sps:$4 sm:$0xff]   ;;  %v9587_v28 = vld [vmem:[#allocation10 + $0x80] ss:$16 sps:$4 sm:$0xff]   ;;  %10319 = vst [vmem:[#allocation32_spill] sm:$0xff] %v9589_v43 }
 0x6dd   :  { %10317 = vst [vmem:[#allocation30_spill] sm:$0xff] %v9585_v20  ;;  %10318 = vst [vmem:[#allocation31_spill] sm:$0xff] %v9587_v28 }
 0x6de   :  { %8055 = vtanh.f32 %v9434_v40  ;;  %10320 = vst [vmem:[#allocation36_spill] sm:$0xff] %v9595_v62 }
 0x6e8   :  { %v8056_v46 = vpop.eup %8055 }
 0x6e9   :  { %v4405_v45 = vmul.f32 %v8056_v46, %v4400_v44  ;;  %v9597_v44 = vld [vmem:[#allocation10 + $0xa4] ss:$16 sps:$4 sm:$0xff]   ;;  %v9599_v46 = vld [vmem:[#allocation10 + $0xa8] ss:$16 sps:$4 sm:$0xff]  }
 0x6ea   :  { %10321 = vst [vmem:[#allocation35_spill] sm:$0xff] %v9597_v44  ;;  %10322 = vst [vmem:[#allocation34_spill] sm:$0xff] %v9599_v46 }
 0x6eb   :  { %v9441_v34 = vpack.c.bf16 %v4405_v45, %v4405_v45  ;;  %v9601_v45 = vld [vmem:[#allocation10 + $0xac] ss:$16 sps:$4 sm:$0xff]  }
 0x6ec   :  { %10323 = vst [vmem:[#allocation33_spill] sm:$0xff] %v9601_v45 }
 0x6ed   :  { %4835 = vmatmul.mubr.bf16.vlgmr.msra.gmra.mrb[44].mxu0 %v9441_v34  ;;  %4876 = vmatmul.mubr.bf16.vlgmr.msra.gmra.mrb[44].mxu1 %v9441_v34 }
 0x6ee   :  { %5102 = vmatpush1.bf16.msra.mxu0 %v9437_v0  ;;  %5143 = vmatpush1.bf16.msra.mxu1 %v9439_v33 }
 0x6ef   :  { %5103 = vmatprep.subr.bf16.mxu0 %v9443_v30  ;;  %5144 = vmatprep.subr.bf16.mxu1 %v9445_v47 }
 0x6f0   :  { %5133 = vmatprep.mubr.bf16.mxu0 %v10066_v49  ;;  %5174 = vmatprep.mubr.bf16.mxu1 %v10066_v49 }
 0x6f2   :  { %5104 = vmatpush1.bf16.msra.mxu0 %v9451_v7  ;;  %5145 = vmatpush1.bf16.msra.mxu1 %v9453_v48 }
 0x6f3   :  { %5105 = vmatprep.subr.bf16.mxu0 %v9457_v31  ;;  %5146 = vmatprep.subr.bf16.mxu1 %v9459_v35 }
 0x6f6   :  { %5106 = vmatpush1.bf16.msra.mxu0 %v9465_v36  ;;  %5147 = vmatpush1.bf16.msra.mxu1 %v9467_v37 }
 0x6f7   :  { %5107 = vmatprep.subr.bf16.mxu0 %v9471_v50  ;;  %5148 = vmatprep.subr.bf16.mxu1 %v9473_v51 }
 0x6fa   :  { %5108 = vmatpush1.bf16.msra.mxu0 %v9477_v52  ;;  %5149 = vmatpush1.bf16.msra.mxu1 %v9479_v54 }
 0x6fb   :  { %5109 = vmatprep.subr.bf16.mxu0 %v9483_v55  ;;  %5150 = vmatprep.subr.bf16.mxu1 %v9485_v58 }
 0x6fe   :  { %5110 = vmatpush1.bf16.msra.mxu0 %v9489_v59  ;;  %5151 = vmatpush1.bf16.msra.mxu1 %v9491_v13 }
 0x6ff   :  { %5111 = vmatprep.subr.bf16.mxu0 %v9495_v5  ;;  %5152 = vmatprep.subr.bf16.mxu1 %v9497_v1 }
 0x702   :  { %5112 = vmatpush1.bf16.msra.mxu0 %v9501_v8  ;;  %5153 = vmatpush1.bf16.msra.mxu1 %v9503_v3 }
 0x703   :  { %5113 = vmatprep.subr.bf16.mxu0 %v9507_v9  ;;  %5154 = vmatprep.subr.bf16.mxu1 %v9509_v56 }
 0x706   :  { %5114 = vmatpush1.bf16.msra.mxu0 %v9513_v12  ;;  %5155 = vmatpush1.bf16.msra.mxu1 %v9515_v15 }
 0x707   :  { %5115 = vmatprep.subr.bf16.mxu0 %v9519_v63  ;;  %5156 = vmatprep.subr.bf16.mxu1 %v9521_v4 }
 0x70a   :  { %5116 = vmatpush1.bf16.msra.mxu0 %v9525_v22  ;;  %5157 = vmatpush1.bf16.msra.mxu1 %v9527_v60 }
 0x70b   :  { %5601 = vmatprep.subr.bf16.mxu0 %v9535_v19  ;;  %5642 = vmatprep.subr.bf16.mxu1 %v9537_v10 }
 0x70d   :  { %5134 = vmatmul.mubr.bf16.vlgmr.msra.gmra.mrb[48].mxu0 %v9441_v34  ;;  %5175 = vmatmul.mubr.bf16.vlgmr.msra.gmra.mrb[48].mxu1 %v9441_v34  ;;  %v9603_v34 = vld [vmem:[#allocation10 + $0xc4] ss:$16 sps:$4 sm:$0xff]  }
 0x70e   :  { %5602 = vmatpush1.bf16.msra.mxu0 %v9539_v6  ;;  %5643 = vmatpush1.bf16.msra.mxu1 %v9541_v17  ;;  %10324 = vst [vmem:[#allocation37_spill] sm:$0xff] %v9603_v34 }
 0x70f   :  { %5603 = vmatprep.subr.bf16.mxu0 %v9547_v61  ;;  %5644 = vmatprep.subr.bf16.mxu1 %v9549_v42 }
 0x712   :  { %5604 = vmatpush1.bf16.msra.mxu0 %v9551_v24  ;;  %5645 = vmatpush1.bf16.msra.mxu1 %v9553_v18 }
 0x713   :  { %5605 = vmatprep.subr.bf16.mxu0 %v9559_v14  ;;  %5646 = vmatprep.subr.bf16.mxu1 %v9561_v21 }
 0x716   :  { %5606 = vmatpush1.bf16.msra.mxu0 %v9563_v29  ;;  %5647 = vmatpush1.bf16.msra.mxu1 %v9565_v57 }
 0x717   :  { %5607 = vmatprep.subr.bf16.mxu0 %v9571_v38  ;;  %5648 = vmatprep.subr.bf16.mxu1 %v9573_v25 }
 0x71a   :  { %5608 = vmatpush1.bf16.msra.mxu0 %v9575_v23  ;;  %5649 = vmatpush1.bf16.msra.mxu1 %v9577_v11  ;;  %v9606_v11 = vld [vmem:[#allocation10 + $0xcc] ss:$16 sps:$4 sm:$0xff]  }
 0x71b   :  { %5609 = vmatprep.subr.bf16.mxu0 %v9583_v2  ;;  %5650 = vmatprep.subr.bf16.mxu1 %v9585_v20  ;;  %10325 = vst [vmem:[#allocation38_spill] sm:$0xff] %v9606_v11  ;;  %v9621_v20 = vld [vmem:[#allocation10 + $0xec] ss:$16 sps:$4 sm:$0xff]  }
 0x71c   :  { %10329 = vst [vmem:[#allocation42_spill] sm:$0xff] %v9621_v20 }
 0x71e   :  { %5610 = vmatpush1.bf16.msra.mxu0 %v9587_v28  ;;  %5651 = vmatpush1.bf16.msra.mxu1 %v9589_v43  ;;  %v9610_v28 = vld [vmem:[#allocation10 + $0xc0] ss:$16 sps:$4 sm:$0xff]   ;;  %v9614_v43 = vld [vmem:[#allocation10 + $0xc8] ss:$16 sps:$4 sm:$0xff]  }
 0x71f   :  { %5611 = vmatprep.subr.bf16.mxu0 %v9597_v44  ;;  %5652 = vmatprep.subr.bf16.mxu1 %v9601_v45  ;;  %10326 = vst [vmem:[#allocation39_spill] sm:$0xff] %v9610_v28  ;;  %10327 = vst [vmem:[#allocation40_spill] sm:$0xff] %v9614_v43  ;;  %v9619_v44 = vld [vmem:[#allocation10 + $0xe4] ss:$16 sps:$4 sm:$0xff]   ;;  %v9623_v45 = vld [vmem:[#allocation10 + $0xe0] ss:$16 sps:$4 sm:$0xff]  }
 0x720   :  { %10328 = vst [vmem:[#allocation41_spill] sm:$0xff] %v9619_v44  ;;  %10330 = vst [vmem:[#allocation43_spill] sm:$0xff] %v9623_v45 }
 0x722   :  { %5612 = vmatpush1.bf16.msra.mxu0 %v9595_v62  ;;  %5653 = vmatpush1.bf16.msra.mxu1 %v9599_v46  ;;  %v9625_v62 = vld [vmem:[#allocation10 + $0xe8] ss:$16 sps:$4 sm:$0xff]  }
 0x723   :  { %5613 = vmatprep.subr.bf16.mxu0 %v9603_v34  ;;  %5654 = vmatprep.subr.bf16.mxu1 %v9606_v11  ;;  %10331 = vst [vmem:[#allocation44_spill] sm:$0xff] %v9625_v62  ;;  %v9631_v11 = vld [vmem:[#allocation10 + $0x104] ss:$16 sps:$4 sm:$0xff]   ;;  %v9637_v34 = vld [vmem:[#allocation10 + $0x108] ss:$16 sps:$4 sm:$0xff]  }
 0x724   :  { %10332 = vst [vmem:[#allocation45_spill] sm:$0xff] %v9631_v11  ;;  %10335 = vst [vmem:[#allocation48_spill] sm:$0xff] %v9637_v34 }
 0x726   :  { %5614 = vmatpush1.bf16.msra.mxu0 %v9610_v28  ;;  %5655 = vmatpush1.bf16.msra.mxu1 %v9614_v43  ;;  %v9633_v28 = vld [vmem:[#allocation10 + $0x10c] ss:$16 sps:$4 sm:$0xff]   ;;  %v9635_v43 = vld [vmem:[#allocation10 + $0x100] ss:$16 sps:$4 sm:$0xff]  }
 0x727   :  { %5615 = vmatprep.subr.bf16.mxu0 %v9619_v44  ;;  %5656 = vmatprep.subr.bf16.mxu1 %v9621_v20  ;;  %10333 = vst [vmem:[#allocation46_spill] sm:$0xff] %v9633_v28  ;;  %10334 = vst [vmem:[#allocation47_spill] sm:$0xff] %v9635_v43  ;;  %v9643_v20 = vld [vmem:[#allocation10 + $0x124] ss:$16 sps:$4 sm:$0xff]   ;;  %v9649_v44 = vld [vmem:[#allocation10 + $0x128] ss:$16 sps:$4 sm:$0xff]  }
 0x728   :  { %10336 = vst [vmem:[#allocation49_spill] sm:$0xff] %v9643_v20  ;;  %10339 = vst [vmem:[#allocation52_spill] sm:$0xff] %v9649_v44 }
 0x72a   :  { %5616 = vmatpush1.bf16.msra.mxu0 %v9623_v45  ;;  %5657 = vmatpush1.bf16.msra.mxu1 %v9625_v62  ;;  %v9645_v45 = vld [vmem:[#allocation10 + $0x12c] ss:$16 sps:$4 sm:$0xff]   ;;  %v9647_v62 = vld [vmem:[#allocation10 + $0x120] ss:$16 sps:$4 sm:$0xff]  }
 0x72b   :  { %5617 = vmatprep.subr.bf16.mxu0 %v9631_v11  ;;  %5658 = vmatprep.subr.bf16.mxu1 %v9633_v28  ;;  %10337 = vst [vmem:[#allocation50_spill] sm:$0xff] %v9645_v45  ;;  %10338 = vst [vmem:[#allocation51_spill] sm:$0xff] %v9647_v62  ;;  %v9655_v28 = vld [vmem:[#allocation10 + $0x144] ss:$16 sps:$4 sm:$0xff]   ;;  %v9661_v11 = vld [vmem:[#allocation10 + $0x148] ss:$16 sps:$4 sm:$0xff]  }
 0x72c   :  { %10340 = vst [vmem:[#allocation53_spill] sm:$0xff] %v9655_v28  ;;  %10343 = vst [vmem:[#allocation56_spill] sm:$0xff] %v9661_v11 }
 0x72e   :  { %5618 = vmatpush1.bf16.msra.mxu0 %v9635_v43  ;;  %5659 = vmatpush1.bf16.msra.mxu1 %v9637_v34  ;;  %v9657_v43 = vld [vmem:[#allocation10 + $0x14c] ss:$16 sps:$4 sm:$0xff]   ;;  %v9659_v34 = vld [vmem:[#allocation10 + $0x140] ss:$16 sps:$4 sm:$0xff]  }
 0x72f   :  { %5619 = vmatprep.subr.bf16.mxu0 %v9643_v20  ;;  %5660 = vmatprep.subr.bf16.mxu1 %v9645_v45  ;;  %10341 = vst [vmem:[#allocation54_spill] sm:$0xff] %v9657_v43  ;;  %10342 = vst [vmem:[#allocation55_spill] sm:$0xff] %v9659_v34  ;;  %v9667_v45 = vld [vmem:[#allocation10 + $0x164] ss:$16 sps:$4 sm:$0xff]   ;;  %v9673_v20 = vld [vmem:[#allocation10 + $0x168] ss:$16 sps:$4 sm:$0xff]  }
 0x730   :  { %10344 = vst [vmem:[#allocation57_spill] sm:$0xff] %v9667_v45  ;;  %10347 = vst [vmem:[#allocation60_spill] sm:$0xff] %v9673_v20 }
 0x732   :  { %5620 = vmatpush1.bf16.msra.mxu0 %v9647_v62  ;;  %5661 = vmatpush1.bf16.msra.mxu1 %v9649_v44  ;;  %v9669_v62 = vld [vmem:[#allocation10 + $0x16c] ss:$16 sps:$4 sm:$0xff]   ;;  %v9671_v44 = vld [vmem:[#allocation10 + $0x160] ss:$16 sps:$4 sm:$0xff]  }
 0x733   :  { %5621 = vmatprep.subr.bf16.mxu0 %v9655_v28  ;;  %5662 = vmatprep.subr.bf16.mxu1 %v9657_v43  ;;  %10345 = vst [vmem:[#allocation58_spill] sm:$0xff] %v9669_v62  ;;  %10346 = vst [vmem:[#allocation59_spill] sm:$0xff] %v9671_v44  ;;  %v9679_v43 = vld [vmem:[#allocation10 + $0x184] ss:$16 sps:$4 sm:$0xff]   ;;  %v9685_v28 = vld [vmem:[#allocation10 + $0x188] ss:$16 sps:$4 sm:$0xff]  }
 0x734   :  { %10348 = vst [vmem:[#allocation61_spill] sm:$0xff] %v9679_v43  ;;  %10351 = vst [vmem:[#allocation64_spill] sm:$0xff] %v9685_v28 }
 0x736   :  { %5622 = vmatpush1.bf16.msra.mxu0 %v9659_v34  ;;  %5663 = vmatpush1.bf16.msra.mxu1 %v9661_v11  ;;  %v9681_v34 = vld [vmem:[#allocation10 + $0x18c] ss:$16 sps:$4 sm:$0xff]   ;;  %v9683_v11 = vld [vmem:[#allocation10 + $0x180] ss:$16 sps:$4 sm:$0xff]  }
 0x737   :  { %5623 = vmatprep.subr.bf16.mxu0 %v9667_v45  ;;  %5664 = vmatprep.subr.bf16.mxu1 %v9669_v62  ;;  %10349 = vst [vmem:[#allocation62_spill] sm:$0xff] %v9681_v34  ;;  %10350 = vst [vmem:[#allocation63_spill] sm:$0xff] %v9683_v11  ;;  %v9691_v62 = vld [vmem:[#allocation10 + $0x1a4] ss:$16 sps:$4 sm:$0xff]   ;;  %v9697_v45 = vld [vmem:[#allocation10 + $0x1a8] ss:$16 sps:$4 sm:$0xff]  }
 0x738   :  { %10352 = vst [vmem:[#allocation65_spill] sm:$0xff] %v9691_v62  ;;  %10355 = vst [vmem:[#allocation68_spill] sm:$0xff] %v9697_v45 }
 0x73a   :  { %5624 = vmatpush1.bf16.msra.mxu0 %v9671_v44  ;;  %5665 = vmatpush1.bf16.msra.mxu1 %v9673_v20  ;;  %v9693_v44 = vld [vmem:[#allocation10 + $0x1ac] ss:$16 sps:$4 sm:$0xff]   ;;  %v9695_v20 = vld [vmem:[#allocation10 + $0x1a0] ss:$16 sps:$4 sm:$0xff]  }
 0x73b   :  { %5625 = vmatprep.subr.bf16.mxu0 %v9679_v43  ;;  %5666 = vmatprep.subr.bf16.mxu1 %v9681_v34  ;;  %10353 = vst [vmem:[#allocation66_spill] sm:$0xff] %v9693_v44  ;;  %10354 = vst [vmem:[#allocation67_spill] sm:$0xff] %v9695_v20  ;;  %v9703_v34 = vld [vmem:[#allocation10 + $0x1c4] ss:$16 sps:$4 sm:$0xff]   ;;  %v9709_v43 = vld [vmem:[#allocation10 + $0x1c8] ss:$16 sps:$4 sm:$0xff]  }
 0x73c   :  { %10356 = vst [vmem:[#allocation69_spill] sm:$0xff] %v9703_v34  ;;  %10359 = vst [vmem:[#allocation72_spill] sm:$0xff] %v9709_v43 }
 0x73e   :  { %5626 = vmatpush1.bf16.msra.mxu0 %v9683_v11  ;;  %5667 = vmatpush1.bf16.msra.mxu1 %v9685_v28  ;;  %v9705_v11 = vld [vmem:[#allocation10 + $0x1cc] ss:$16 sps:$4 sm:$0xff]   ;;  %v9707_v28 = vld [vmem:[#allocation10 + $0x1c0] ss:$16 sps:$4 sm:$0xff]  }
 0x73f   :  { %5627 = vmatprep.subr.bf16.mxu0 %v9691_v62  ;;  %5668 = vmatprep.subr.bf16.mxu1 %v9693_v44  ;;  %10357 = vst [vmem:[#allocation70_spill] sm:$0xff] %v9705_v11  ;;  %10358 = vst [vmem:[#allocation71_spill] sm:$0xff] %v9707_v28  ;;  %v9715_v44 = vld [vmem:[#allocation10 + $0x1e4] ss:$16 sps:$4 sm:$0xff]   ;;  %v9721_v62 = vld [vmem:[#allocation10 + $0x1e8] ss:$16 sps:$4 sm:$0xff]  }
 0x740   :  { %10360 = vst [vmem:[#allocation73_spill] sm:$0xff] %v9715_v44  ;;  %10363 = vst [vmem:[#allocation76_spill] sm:$0xff] %v9721_v62 }
 0x742   :  { %5628 = vmatpush1.bf16.msra.mxu0 %v9695_v20  ;;  %5669 = vmatpush1.bf16.msra.mxu1 %v9697_v45  ;;  %v9717_v20 = vld [vmem:[#allocation10 + $0x1ec] ss:$16 sps:$4 sm:$0xff]   ;;  %v9719_v45 = vld [vmem:[#allocation10 + $0x1e0] ss:$16 sps:$4 sm:$0xff]  }
 0x743   :  { %5629 = vmatprep.subr.bf16.mxu0 %v9703_v34  ;;  %5670 = vmatprep.subr.bf16.mxu1 %v9705_v11  ;;  %10361 = vst [vmem:[#allocation74_spill] sm:$0xff] %v9717_v20  ;;  %10362 = vst [vmem:[#allocation75_spill] sm:$0xff] %v9719_v45 }
 0x746   :  { %5630 = vmatpush1.bf16.msra.mxu0 %v9707_v28  ;;  %5671 = vmatpush1.bf16.msra.mxu1 %v9709_v43 }
 0x747   :  { %5631 = vmatprep.subr.bf16.mxu0 %v9715_v44  ;;  %5672 = vmatprep.subr.bf16.mxu1 %v9717_v20 }
 0x74a   :  { %5632 = vmatpush1.bf16.msra.mxu0 %v9719_v45  ;;  %5673 = vmatpush1.bf16.msra.mxu1 %v9721_v62 }
 0x74b   :  { %5900 = vmatprep.subr.bf16.mxu0 %v9419_v41  ;;  %5941 = vmatprep.subr.bf16.mxu1 %v9421_v16 }
 0x7c0   :  { %v4836_v43 = vpop.f32.mrb[44].mxu0  ;;  %v4877_v28 = vpop.f32.mrb[44].mxu1 }
 0x7c1   :  { %v4837_v11 = vadd.f32 %v4836_v43, %v10304_v27  ;;  %v4838_v34 = vpop.f32.mrb[45].mxu0  ;;  %v4879_v46 = vpop.f32.mrb[45].mxu1  ;;  %v4878_v62 = vadd.f32 %v4877_v28, %v10306_v32 }
 0x7c2   :  { %v4839_v2 = vadd.f32 %v4838_v34, %v10305_v26  ;;  %v4840_v23 = vpop.f32.mrb[46].mxu0  ;;  %v4881_v44 = vpop.f32.mrb[46].mxu1  ;;  %v4880_v41 = vadd.f32 %v4879_v46, %v10307_v39  ;;  %v4904_v46 = vld [vmem:[#allocation5 + $0x68] sm:$0xff] }
 0x7c3   :  { %v4884_v25 = vmul.f32 0.5, %v4837_v11  ;;  %v4841_v20 = vpop.f32.mrb[47].mxu0  ;;  %v4882_v38 = vpop.f32.mrb[47].mxu1  ;;  %v4908_v21 = vunpack.c.h.bf16 %v4904_v46 }
 0x7c4   :  { %v4888_v45 = vmul.f32 0.5, %v4839_v2  ;;  %v4893_v16 = vmul.f32 0.5, %v4880_v41 }
 0x7c5   :  { %8057 = vtanh.f32 %v4884_v25  ;;  %v4903_v25 = vld [vmem:[#allocation5 + $0x60] sm:$0xff] }
 0x7c6   :  { %8059 = vtanh.f32 %v4888_v45  ;;  %v4905_v28 = vunpack.c.l.bf16 %v4903_v25  ;;  %v4906_v45 = vunpack.c.h.bf16 %v4903_v25 }
 0x7c7   :  { %8061 = vtanh.f32 %v4878_v62 }
 0x7c8   :  { %8063 = vtanh.f32 %v4893_v16  ;;  %v4907_v16 = vunpack.c.l.bf16 %v4904_v46 }
 0x7cf   :  { %v8058_v57 = vpop.eup %8057 }
 0x7d0   :  { %v8060_v43 = vpop.eup %8059  ;;  %v4886_v27 = vmul.f32 0.5, %v8058_v57 }
 0x7d1   :  { %v4890_v29 = vmul.f32 0.5, %v8060_v43  ;;  %v8062_v23 = vpop.eup %8061 }
 0x7d2   :  { %v4887_v34 = vadd.f32 0.5, %v4886_v27  ;;  %v8064_v20 = vpop.eup %8063 }
 0x7d3   :  { %v4891_v44 = vadd.f32 0.5, %v4890_v29  ;;  %v4895_v62 = vmul.f32 0.5, %v8064_v20 }
 0x7d4   :  { %v4898_v11 = vmul.f32 %v8062_v23, %v4887_v34 }
 0x7d5   :  { %v4897_v38 = vmul.f32 %v4891_v44, %v9430_v53  ;;  %v4896_v29 = vadd.f32 0.5, %v4895_v62 }
 0x7d7   :  { %v9734_v2 = vadd.f32 %v4898_v11, %v4897_v38 }
 0x7d9   :  { %10364 = vst [vmem:[#allocation77_spill] sm:$0xff] %v9734_v2  ;;  %8065 = vtanh.f32 %v9734_v2 }
 0x7e0   :  { %v5135_v41 = vpop.f32.mrb[48].mxu0  ;;  %v5176_v57 = vpop.f32.mrb[48].mxu1 }
 0x7e1   :  { %v5183_v43 = vadd.f32 %v5135_v41, %v4905_v28  ;;  %v5137_v27 = vpop.f32.mrb[49].mxu0  ;;  %v5178_v39 = vpop.f32.mrb[49].mxu1  ;;  %v5185_v20 = vadd.f32 %v5176_v57, %v4907_v16 }
 0x7e2   :  { %v5184_v34 = vadd.f32 %v5137_v27, %v4906_v45  ;;  %v5139_v23 = vpop.f32.mrb[50].mxu0  ;;  %v5180_v53 = vpop.f32.mrb[50].mxu1  ;;  %v5186_v28 = vadd.f32 %v5178_v39, %v4908_v21 }
 0x7e3   :  { %v8066_v44 = vpop.eup %8065  ;;  %v5187_v11 = vmul.f32 0.5, %v5183_v43  ;;  %v5140_v38 = vpop.f32.mrb[51].mxu0 }
 0x7e4   :  { %v5181_v2 = vpop.f32.mrb[51].mxu1  ;;  %v5191_v32 = vmul.f32 0.5, %v5184_v34  ;;  %v4901_v26 = vmul.f32 %v8066_v44, %v4896_v29  ;;  %v5196_v41 = vmul.f32 0.5, %v5186_v28  ;;  %v10406_v44 = vld [vmem:[#allocation63_spill] sm:$0xff]  ;;  %v10408_v38 = vld [vmem:[#allocation65_spill] sm:$0xff]  ;;  %v10411_v28 = vld [vmem:[#allocation68_spill] sm:$0xff] }
 0x7e5   :  { %8067 = vtanh.f32 %v5187_v11  ;;  %v10407_v11 = vld [vmem:[#allocation64_spill] sm:$0xff] }
 0x7e6   :  { %8069 = vtanh.f32 %v5191_v32  ;;  %v7359_v25 = vpack.c.bf16 %v4901_v26, %v4901_v26 }
 0x7e7   :  { %8071 = vtanh.f32 %v5185_v20  ;;  %v10409_v20 = vld [vmem:[#allocation66_spill] sm:$0xff] }
 0x7e8   :  { %5633 = vmatprep.mubr.bf16.mxu0 %v7359_v25  ;;  %5674 = vmatprep.mubr.bf16.mxu1 %v7359_v25  ;;  %8073 = vtanh.f32 %v5196_v41  ;;  %v10410_v25 = vld [vmem:[#allocation67_spill] sm:$0xff]  ;;  %v10412_v41 = vld [vmem:[#allocation69_spill] sm:$0xff] }
 0x7ef   :  { %v8068_v62 = vpop.eup %8067 }
 0x7f0   :  { %v8070_v45 = vpop.eup %8069  ;;  %v5189_v27 = vmul.f32 0.5, %v8068_v62  ;;  %v10413_v62 = vld [vmem:[#allocation70_spill] sm:$0xff] }
 0x7f1   :  { %v5193_v23 = vmul.f32 0.5, %v8070_v45  ;;  %v8072_v53 = vpop.eup %8071  ;;  %v10414_v45 = vld [vmem:[#allocation71_spill] sm:$0xff] }
 0x7f2   :  { %v5190_v43 = vadd.f32 0.5, %v5189_v27  ;;  %v8074_v26 = vpop.eup %8073  ;;  %v10415_v27 = vld [vmem:[#allocation72_spill] sm:$0xff] }
 0x7f3   :  { %v5194_v2 = vadd.f32 0.5, %v5193_v23  ;;  %v5198_v32 = vmul.f32 0.5, %v8074_v26  ;;  %v10416_v23 = vld [vmem:[#allocation73_spill] sm:$0xff]  ;;  %v10420_v26 = vld [vmem:[#allocation18_spill] sm:$0xff] }
 0x7f4   :  { %v5201_v34 = vmul.f32 %v8072_v53, %v5190_v43  ;;  %v10417_v43 = vld [vmem:[#allocation74_spill] sm:$0xff]  ;;  %v10418_v53 = vld [vmem:[#allocation75_spill] sm:$0xff] }
 0x7f5   :  { %v5200_v29 = vmul.f32 %v5194_v2, %v9434_v40  ;;  %v5199_v46 = vadd.f32 0.5, %v5198_v32  ;;  %v10366_v40 = vld [vmem:[#allocation23_spill] sm:$0xff]  ;;  %v10419_v2 = vld [vmem:[#allocation76_spill] sm:$0xff] }
 0x7f7   :  { %v9738_v57 = vadd.f32 %v5201_v34, %v5200_v29 }
 0x7f9   :  { %8075 = vtanh.f32 %v9738_v57 }
 0x803   :  { %v8076_v39 = vpop.eup %8075 }
 0x804   :  { %v5204_v21 = vmul.f32 %v8076_v39, %v5199_v46 }
 0x806   :  { %v5205_v16 = vpack.c.bf16 %v5204_v21, %v5204_v21  ;;  %v10421_v21 = vld [vmem:[#allocation19_spill] sm:$0xff] }
 0x808   :  { %5634 = vmatmul.mubr.bf16.vlgmr.msra.gmra.mrb[52].mxu0 %v5205_v16  ;;  %5675 = vmatmul.mubr.bf16.vlgmr.msra.gmra.mrb[52].mxu1 %v5205_v16 }
 0x809   :  { %5901 = vmatpush1.bf16.msra.mxu0 %v9437_v0  ;;  %5942 = vmatpush1.bf16.msra.mxu1 %v9439_v33  ;;  %v10367_v0 = vld [vmem:[#allocation24_spill] sm:$0xff]  ;;  %v10368_v33 = vld [vmem:[#allocation25_spill] sm:$0xff] }
 0x80a   :  { %5902 = vmatprep.subr.bf16.mxu0 %v9443_v30  ;;  %5943 = vmatprep.subr.bf16.mxu1 %v9445_v47  ;;  %v10369_v30 = vld [vmem:[#allocation26_spill] sm:$0xff]  ;;  %v10370_v47 = vld [vmem:[#allocation27_spill] sm:$0xff] }
 0x80b   :  { %5932 = vmatprep.mubr.bf16.mxu0 %v10066_v49  ;;  %5973 = vmatprep.mubr.bf16.mxu1 %v10066_v49  ;;  %v10365_v49 = vld [vmem:[#allocation22_spill] sm:$0xff] }
 0x80d   :  { %5903 = vmatpush1.bf16.msra.mxu0 %v9451_v7  ;;  %5944 = vmatpush1.bf16.msra.mxu1 %v9453_v48  ;;  %v10371_v7 = vld [vmem:[#allocation28_spill] sm:$0xff]  ;;  %v10372_v48 = vld [vmem:[#allocation29_spill] sm:$0xff] }
 0x80e   :  { %5904 = vmatprep.subr.bf16.mxu0 %v9457_v31  ;;  %5945 = vmatprep.subr.bf16.mxu1 %v9459_v35  ;;  %v10373_v31 = vld [vmem:[#allocation30_spill] sm:$0xff]  ;;  %v10374_v35 = vld [vmem:[#allocation31_spill] sm:$0xff] }
 0x811   :  { %5905 = vmatpush1.bf16.msra.mxu0 %v9465_v36  ;;  %5946 = vmatpush1.bf16.msra.mxu1 %v9467_v37  ;;  %v10375_v36 = vld [vmem:[#allocation32_spill] sm:$0xff]  ;;  %v10376_v37 = vld [vmem:[#allocation35_spill] sm:$0xff] }
 0x812   :  { %5906 = vmatprep.subr.bf16.mxu0 %v9471_v50  ;;  %5947 = vmatprep.subr.bf16.mxu1 %v9473_v51  ;;  %v10377_v50 = vld [vmem:[#allocation33_spill] sm:$0xff]  ;;  %v10378_v51 = vld [vmem:[#allocation36_spill] sm:$0xff] }
 0x815   :  { %5907 = vmatpush1.bf16.msra.mxu0 %v9477_v52  ;;  %5948 = vmatpush1.bf16.msra.mxu1 %v9479_v54  ;;  %v10379_v52 = vld [vmem:[#allocation34_spill] sm:$0xff]  ;;  %v10380_v54 = vld [vmem:[#allocation37_spill] sm:$0xff] }
 0x816   :  { %5908 = vmatprep.subr.bf16.mxu0 %v9483_v55  ;;  %5949 = vmatprep.subr.bf16.mxu1 %v9485_v58  ;;  %v10381_v55 = vld [vmem:[#allocation38_spill] sm:$0xff]  ;;  %v10382_v58 = vld [vmem:[#allocation39_spill] sm:$0xff] }
 0x819   :  { %5909 = vmatpush1.bf16.msra.mxu0 %v9489_v59  ;;  %5950 = vmatpush1.bf16.msra.mxu1 %v9491_v13  ;;  %v10383_v59 = vld [vmem:[#allocation40_spill] sm:$0xff]  ;;  %v10384_v13 = vld [vmem:[#allocation41_spill] sm:$0xff] }
 0x81a   :  { %5910 = vmatprep.subr.bf16.mxu0 %v9495_v5  ;;  %5951 = vmatprep.subr.bf16.mxu1 %v9497_v1  ;;  %v10385_v5 = vld [vmem:[#allocation42_spill] sm:$0xff]  ;;  %v10386_v1 = vld [vmem:[#allocation43_spill] sm:$0xff] }
 0x81d   :  { %5911 = vmatpush1.bf16.msra.mxu0 %v9501_v8  ;;  %5952 = vmatpush1.bf16.msra.mxu1 %v9503_v3  ;;  %v10387_v8 = vld [vmem:[#allocation44_spill] sm:$0xff]  ;;  %v10388_v3 = vld [vmem:[#allocation45_spill] sm:$0xff] }
 0x81e   :  { %5912 = vmatprep.subr.bf16.mxu0 %v9507_v9  ;;  %5953 = vmatprep.subr.bf16.mxu1 %v9509_v56  ;;  %v10389_v9 = vld [vmem:[#allocation46_spill] sm:$0xff]  ;;  %v10390_v56 = vld [vmem:[#allocation47_spill] sm:$0xff] }
 0x821   :  { %5913 = vmatpush1.bf16.msra.mxu0 %v9513_v12  ;;  %5954 = vmatpush1.bf16.msra.mxu1 %v9515_v15  ;;  %v10391_v12 = vld [vmem:[#allocation48_spill] sm:$0xff]  ;;  %v10392_v15 = vld [vmem:[#allocation49_spill] sm:$0xff] }
 0x822   :  { %5914 = vmatprep.subr.bf16.mxu0 %v9519_v63  ;;  %5955 = vmatprep.subr.bf16.mxu1 %v9521_v4  ;;  %v10393_v63 = vld [vmem:[#allocation50_spill] sm:$0xff]  ;;  %v10394_v4 = vld [vmem:[#allocation51_spill] sm:$0xff] }
 0x825   :  { %5915 = vmatpush1.bf16.msra.mxu0 %v9525_v22  ;;  %5956 = vmatpush1.bf16.msra.mxu1 %v9527_v60  ;;  %v10395_v22 = vld [vmem:[#allocation52_spill] sm:$0xff]  ;;  %v10396_v60 = vld [vmem:[#allocation53_spill] sm:$0xff] }
 0x826   :  { %6400 = vmatprep.subr.bf16.mxu0 %v9535_v19  ;;  %6441 = vmatprep.subr.bf16.mxu1 %v9537_v10  ;;  %v10397_v19 = vld [vmem:[#allocation54_spill] sm:$0xff]  ;;  %v10398_v10 = vld [vmem:[#allocation55_spill] sm:$0xff] }
 0x828   :  { %5933 = vmatmul.mubr.bf16.vlgmr.msra.gmra.mrb[56].mxu0 %v5205_v16  ;;  %5974 = vmatmul.mubr.bf16.vlgmr.msra.gmra.mrb[56].mxu1 %v5205_v16 }
 0x829   :  { %6401 = vmatpush1.bf16.msra.mxu0 %v9539_v6  ;;  %6442 = vmatpush1.bf16.msra.mxu1 %v9541_v17  ;;  %v10399_v6 = vld [vmem:[#allocation56_spill] sm:$0xff]  ;;  %v10400_v17 = vld [vmem:[#allocation57_spill] sm:$0xff] }
 0x82a   :  { %6402 = vmatprep.subr.bf16.mxu0 %v9547_v61  ;;  %6443 = vmatprep.subr.bf16.mxu1 %v9549_v42  ;;  %v10401_v61 = vld [vmem:[#allocation58_spill] sm:$0xff]  ;;  %v10402_v42 = vld [vmem:[#allocation59_spill] sm:$0xff] }
 0x82d   :  { %6403 = vmatpush1.bf16.msra.mxu0 %v9551_v24  ;;  %6444 = vmatpush1.bf16.msra.mxu1 %v9553_v18  ;;  %v10403_v24 = vld [vmem:[#allocation60_spill] sm:$0xff]  ;;  %v10404_v18 = vld [vmem:[#allocation61_spill] sm:$0xff] }
 0x82e   :  { %6404 = vmatprep.subr.bf16.mxu0 %v9559_v14  ;;  %6445 = vmatprep.subr.bf16.mxu1 %v10365_v49  ;;  %v10405_v14 = vld [vmem:[#allocation62_spill] sm:$0xff] }
 0x831   :  { %6405 = vmatpush1.bf16.msra.mxu0 %v10366_v40  ;;  %6446 = vmatpush1.bf16.msra.mxu1 %v10367_v0 }
 0x832   :  { %6406 = vmatprep.subr.bf16.mxu0 %v10368_v33  ;;  %6447 = vmatprep.subr.bf16.mxu1 %v10369_v30 }
 0x835   :  { %6407 = vmatpush1.bf16.msra.mxu0 %v10370_v47  ;;  %6448 = vmatpush1.bf16.msra.mxu1 %v10371_v7  ;;  %v10422_v7 = vld [vmem:[#allocation20_spill] sm:$0xff] }
 0x836   :  { %6408 = vmatprep.subr.bf16.mxu0 %v10372_v48  ;;  %6449 = vmatprep.subr.bf16.mxu1 %v10373_v31  ;;  %v10423_v31 = vld [vmem:[#allocation21_spill] sm:$0xff] }
 0x839   :  { %6409 = vmatpush1.bf16.msra.mxu0 %v10374_v35  ;;  %6450 = vmatpush1.bf16.msra.mxu1 %v10375_v36 }
 0x83a   :  { %6410 = vmatprep.subr.bf16.mxu0 %v10376_v37  ;;  %6451 = vmatprep.subr.bf16.mxu1 %v10377_v50 }
 0x83d   :  { %6411 = vmatpush1.bf16.msra.mxu0 %v10378_v51  ;;  %6452 = vmatpush1.bf16.msra.mxu1 %v10379_v52 }
 0x83e   :  { %6412 = vmatprep.subr.bf16.mxu0 %v10380_v54  ;;  %6453 = vmatprep.subr.bf16.mxu1 %v10381_v55 }
 0x841   :  { %6413 = vmatpush1.bf16.msra.mxu0 %v10382_v58  ;;  %6454 = vmatpush1.bf16.msra.mxu1 %v10383_v59 }
 0x842   :  { %6414 = vmatprep.subr.bf16.mxu0 %v10384_v13  ;;  %6455 = vmatprep.subr.bf16.mxu1 %v10385_v5  ;;  %v10424_v13 = vld [vmem:[#allocation77_spill] sm:$0xff] }
 0x845   :  { %6415 = vmatpush1.bf16.msra.mxu0 %v10386_v1  ;;  %6456 = vmatpush1.bf16.msra.mxu1 %v10387_v8  ;;  %v5702_v8 = vld [vmem:[#allocation5 + $0x70] sm:$0xff] }
 0x846   :  { %6416 = vmatprep.subr.bf16.mxu0 %v10388_v3  ;;  %6457 = vmatprep.subr.bf16.mxu1 %v10389_v9  ;;  %v5704_v9 = vunpack.c.l.bf16 %v5702_v8 }
 0x849   :  { %6417 = vmatpush1.bf16.msra.mxu0 %v10390_v56  ;;  %6458 = vmatpush1.bf16.msra.mxu1 %v10391_v12  ;;  %v5703_v12 = vld [vmem:[#allocation5 + $0x78] sm:$0xff] }
 0x84a   :  { %6418 = vmatprep.subr.bf16.mxu0 %v10392_v15  ;;  %6459 = vmatprep.subr.bf16.mxu1 %v10393_v63  ;;  %v5705_v15 = vunpack.c.h.bf16 %v5702_v8 }
 0x84d   :  { %6419 = vmatpush1.bf16.msra.mxu0 %v10394_v4  ;;  %6460 = vmatpush1.bf16.msra.mxu1 %v10395_v22 }
 0x84e   :  { %6420 = vmatprep.subr.bf16.mxu0 %v10396_v60  ;;  %6461 = vmatprep.subr.bf16.mxu1 %v10397_v19  ;;  %v5706_v60 = vunpack.c.l.bf16 %v5703_v12 }
 0x851   :  { %6421 = vmatpush1.bf16.msra.mxu0 %v10398_v10  ;;  %6462 = vmatpush1.bf16.msra.mxu1 %v10399_v6 }
 0x852   :  { %6422 = vmatprep.subr.bf16.mxu0 %v10400_v17  ;;  %6463 = vmatprep.subr.bf16.mxu1 %v10401_v61 }
 0x855   :  { %6423 = vmatpush1.bf16.msra.mxu0 %v10402_v42  ;;  %6464 = vmatpush1.bf16.msra.mxu1 %v10403_v24 }
 0x856   :  { %6424 = vmatprep.subr.bf16.mxu0 %v10404_v18  ;;  %6465 = vmatprep.subr.bf16.mxu1 %v10405_v14 }
 0x859   :  { %6425 = vmatpush1.bf16.msra.mxu0 %v10406_v44  ;;  %6466 = vmatpush1.bf16.msra.mxu1 %v10407_v11 }
 0x85a   :  { %6426 = vmatprep.subr.bf16.mxu0 %v10408_v38  ;;  %6467 = vmatprep.subr.bf16.mxu1 %v10409_v20 }
 0x85d   :  { %6427 = vmatpush1.bf16.msra.mxu0 %v10410_v25  ;;  %6468 = vmatpush1.bf16.msra.mxu1 %v10411_v28  ;;  %v5707_v25 = vunpack.c.h.bf16 %v5703_v12 }
 0x85e   :  { %6428 = vmatprep.subr.bf16.mxu0 %v10412_v41  ;;  %6469 = vmatprep.subr.bf16.mxu1 %v10413_v62 }
 0x861   :  { %6429 = vmatpush1.bf16.msra.mxu0 %v10414_v45  ;;  %6470 = vmatpush1.bf16.msra.mxu1 %v10415_v27 }
 0x862   :  { %6430 = vmatprep.subr.bf16.mxu0 %v10416_v23  ;;  %6471 = vmatprep.subr.bf16.mxu1 %v10417_v43 }
 0x865   :  { %6431 = vmatpush1.bf16.msra.mxu0 %v10418_v53  ;;  %6472 = vmatpush1.bf16.msra.mxu1 %v10419_v2 }
 0x8db   :  { %v5635_v34 = vpop.f32.mrb[52].mxu0  ;;  %v5676_v29 = vpop.f32.mrb[52].mxu1 }
 0x8dc   :  { %v5636_v32 = vadd.f32 %v5635_v34, %v10420_v26  ;;  %v5637_v46 = vpop.f32.mrb[53].mxu0  ;;  %v5678_v39 = vpop.f32.mrb[53].mxu1  ;;  %v5677_v48 = vadd.f32 %v5676_v29, %v10422_v7 }
 0x8dd   :  { %v5638_v16 = vadd.f32 %v5637_v46, %v10421_v21  ;;  %v5639_v49 = vpop.f32.mrb[54].mxu0  ;;  %v5680_v40 = vpop.f32.mrb[54].mxu1  ;;  %v5679_v35 = vadd.f32 %v5678_v39, %v10423_v31 }
 0x8de   :  { %v5683_v0 = vmul.f32 0.5, %v5636_v32  ;;  %v5640_v33 = vpop.f32.mrb[55].mxu0  ;;  %v5681_v30 = vpop.f32.mrb[55].mxu1 }
 0x8df   :  { %v5687_v47 = vmul.f32 0.5, %v5638_v16  ;;  %v5692_v36 = vmul.f32 0.5, %v5679_v35 }
 0x8e0   :  { %8077 = vtanh.f32 %v5683_v0 }
 0x8e1   :  { %8079 = vtanh.f32 %v5687_v47 }
 0x8e2   :  { %8081 = vtanh.f32 %v5677_v48 }
 0x8e3   :  { %8083 = vtanh.f32 %v5692_v36 }
 0x8ea   :  { %v8078_v37 = vpop.eup %8077 }
 0x8eb   :  { %v8080_v50 = vpop.eup %8079  ;;  %v5685_v51 = vmul.f32 0.5, %v8078_v37 }
 0x8ec   :  { %v5689_v52 = vmul.f32 0.5, %v8080_v50  ;;  %v8082_v55 = vpop.eup %8081 }
 0x8ed   :  { %v5686_v54 = vadd.f32 0.5, %v5685_v51  ;;  %v8084_v3 = vpop.eup %8083 }
 0x8ee   :  { %v5690_v58 = vadd.f32 0.5, %v5689_v52  ;;  %v5694_v56 = vmul.f32 0.5, %v8084_v3 }
 0x8ef   :  { %v5697_v59 = vmul.f32 %v8082_v55, %v5686_v54 }
 0x8f0   :  { %v5696_v5 = vmul.f32 %v5690_v58, %v10424_v13  ;;  %v5695_v6 = vadd.f32 0.5, %v5694_v56 }
 0x8f2   :  { %v9842_v1 = vadd.f32 %v5697_v59, %v5696_v5 }
 0x8f4   :  { %8085 = vtanh.f32 %v9842_v1 }
 0x8fb   :  { %v5934_v63 = vpop.f32.mrb[56].mxu0  ;;  %v5975_v4 = vpop.f32.mrb[56].mxu1 }
 0x8fc   :  { %v5982_v22 = vadd.f32 %v5934_v63, %v5704_v9  ;;  %v5936_v19 = vpop.f32.mrb[57].mxu0  ;;  %v5977_v10 = vpop.f32.mrb[57].mxu1  ;;  %v5984_v20 = vadd.f32 %v5975_v4, %v5706_v60 }
 0x8fd   :  { %v5983_v17 = vadd.f32 %v5936_v19, %v5705_v15  ;;  %v5938_v61 = vpop.f32.mrb[58].mxu0  ;;  %v5979_v42 = vpop.f32.mrb[58].mxu1  ;;  %v5985_v41 = vadd.f32 %v5977_v10, %v5707_v25 }
 0x8fe   :  { %v8086_v24 = vpop.eup %8085  ;;  %v5986_v18 = vmul.f32 0.5, %v5982_v22  ;;  %v5939_v14 = vpop.f32.mrb[59].mxu0 }
 0x8ff   :  { %v5980_v44 = vpop.f32.mrb[59].mxu1  ;;  %v5990_v11 = vmul.f32 0.5, %v5983_v17  ;;  %v5700_v38 = vmul.f32 %v8086_v24, %v5695_v6  ;;  %v5995_v62 = vmul.f32 0.5, %v5985_v41 }
 0x900   :  { %8087 = vtanh.f32 %v5986_v18 }
 0x901   :  { %8089 = vtanh.f32 %v5990_v11  ;;  %v7361_v28 = vpack.c.bf16 %v5700_v38, %v5700_v38 }
 0x902   :  { %8091 = vtanh.f32 %v5984_v20 }
 0x903   :  { %6432 = vmatprep.mubr.bf16.mxu0 %v7361_v28  ;;  %6473 = vmatprep.mubr.bf16.mxu1 %v7361_v28  ;;  %8093 = vtanh.f32 %v5995_v62 }
 0x90a   :  { %v8088_v45 = vpop.eup %8087 }
 0x90b   :  { %v8090_v27 = vpop.eup %8089  ;;  %v5988_v23 = vmul.f32 0.5, %v8088_v45 }
 0x90c   :  { %v5992_v43 = vmul.f32 0.5, %v8090_v27  ;;  %v8092_v2 = vpop.eup %8091 }
 0x90d   :  { %v5989_v53 = vadd.f32 0.5, %v5988_v23  ;;  %v8094_v39 = vpop.eup %8093 }
 0x90e   :  { %v5993_v34 = vadd.f32 0.5, %v5992_v43  ;;  %v5997_v16 = vmul.f32 0.5, %v8094_v39 }
 0x90f   :  { %v6000_v29 = vmul.f32 %v8092_v2, %v5989_v53 }
 0x910   :  { %v5999_v32 = vmul.f32 %v5993_v34, %v9738_v57  ;;  %v5998_v49 = vadd.f32 0.5, %v5997_v16 }
 0x912   :  { %v6001_v46 = vadd.f32 %v6000_v29, %v5999_v32 }
 0x914   :  { %8095 = vtanh.f32 %v6001_v46 }
 0x91e   :  { %v8096_v40 = vpop.eup %8095 }
 0x91f   :  { %v6003_v0 = vmul.f32 %v8096_v40, %v5998_v49 }
 0x921   :  { %v7360_v33 = vpack.c.bf16 %v6003_v0, %v6003_v0 }
 0x923   :  { %6433 = vmatmul.mubr.bf16.vlgmr.msra.gmra.mrb[60].mxu0 %v7360_v33  ;;  %6474 = vmatmul.mubr.bf16.vlgmr.msra.gmra.mrb[60].mxu1 %v7360_v33 }
 0x9f6   :  { %v6434_v30 = vpop.f32.mrb[60].mxu0  ;;  %v6475_v47 = vpop.f32.mrb[60].mxu1 }
 0x9f7   :  { %v6435_v48 = vadd.f32 %v6434_v30, %v10420_v26  ;;  %v6436_v35 = vpop.f32.mrb[61].mxu0  ;;  %v6477_v36 = vpop.f32.mrb[61].mxu1  ;;  %v6476_v58 = vadd.f32 %v6475_v47, %v10422_v7 }
 0x9f8   :  { %v6437_v37 = vadd.f32 %v6436_v35, %v10421_v21  ;;  %v6438_v50 = vpop.f32.mrb[62].mxu0  ;;  %v6479_v57 = vpop.f32.mrb[62].mxu1  ;;  %v6478_v59 = vadd.f32 %v6477_v36, %v10423_v31 }
 0x9f9   :  { %v6482_v51 = vmul.f32 0.5, %v6435_v48  ;;  %v6439_v52 = vpop.f32.mrb[63].mxu0  ;;  %v6480_v54 = vpop.f32.mrb[63].mxu1 }
 0x9fa   :  { %v6486_v55 = vmul.f32 0.5, %v6437_v37  ;;  %v6491_v13 = vmul.f32 0.5, %v6478_v59 }
 0x9fb   :  { %8097 = vtanh.f32 %v6482_v51 }
 0x9fc   :  { %8099 = vtanh.f32 %v6486_v55 }
 0x9fd   :  { %8101 = vtanh.f32 %v6476_v58 }
 0x9fe   :  { %8103 = vtanh.f32 %v6491_v13 }
 0xa05   :  { %v8098_v5 = vpop.eup %8097 }
 0xa06   :  { %v8100_v26 = vpop.eup %8099  ;;  %v6484_v8 = vmul.f32 0.5, %v8098_v5 }
 0xa07   :  { %v6488_v3 = vmul.f32 0.5, %v8100_v26  ;;  %v8102_v9 = vpop.eup %8101 }
 0xa08   :  { %v6485_v21 = vadd.f32 0.5, %v6484_v8  ;;  %v8104_v4 = vpop.eup %8103 }
 0xa09   :  { %v6489_v56 = vadd.f32 0.5, %v6488_v3  ;;  %v6493_v7 = vmul.f32 0.5, %v8104_v4 }
 0xa0a   :  { %v6496_v12 = vmul.f32 %v8102_v9, %v6485_v21 }
 0xa0b   :  { %v6495_v15 = vmul.f32 %v6489_v56, %v9842_v1  ;;  %v6494_v22 = vadd.f32 0.5, %v6493_v7 }
 0xa0d   :  { %v6497_v63 = vadd.f32 %v6496_v12, %v6495_v15 }
 0xa0f   :  { %8105 = vtanh.f32 %v6497_v63 }
 0xa19   :  { %v8106_v31 = vpop.eup %8105 }
 0xa1a   :  { %v6499_v60 = vmul.f32 %v8106_v31, %v6494_v22 }
 0xa1c   :  { %6504 = vst [vmem:[#allocation13] sm:$0xff] %v6499_v60 }
 0xa1d   :  { %8254 = shalt.err (!%p8251_p8)
}
 0xa1e   :  { %s8255_s13 = scalar_lea.hbm %s9867_s4, 128 }
 0xa1f   :  { %p8256_p9 = scmp.ne.s32.totalorder %s9867_s4, %s8255_s13  ;;  %p8259_p10 = scmp.lt.u32.totalorder %s8255_s13, %s9867_s4 }
 0xa21   :  { %p8261_p11 = pnand %p8259_p10, %p8256_p9 }
 0xa23   :  { %8264 = shalt.err (!%p8261_p11)
}
 0xa24   :  { %6514 = dma.vmem_to_hbm [thread:$0]  %s6512_s28, 128, %s9867_s4, [#allocation7]  }
 0xa25   :  { %8271 = dma.done.wait [#allocation7], 128  }
 0xa26   :  { %8272 = vsyncadd [#allocation7], 4294967168 }
 0xa27   :  { %6518 = vsyncpa [#allocation6], 1 }
 0xa28   :  { %6519 = vsyncpa [#allocation9], 1 }
 0xa29   :  { %6520 = vsyncpa [#allocation12], 1 }
 0xa2a   :  { %6521 = vsyncpa [#allocation7], 1 }

</bundles_post_ra>
